<compile_context>
chip_gen: v7x
topology: tpu7x:2x2x1
jax: 0.10.0
libtpu: 0.0.40
codegen_flags: <defaults>
</compile_context>

<pallas_src>
import jax
import jax.numpy as jnp
from jax.experimental import pallas as pl
from jax.experimental.pallas import tpu as pltpu

FEAT = 800                       # 32 * 5 * 5
LATENT_C, LATENT_H, LATENT_W = 32, 5, 5


def _quantize_per_col(w):
    """Symmetric per-output-column int8 quantization of a (in, out) f32 matrix.
    Returns (w_q int8, scale f32 of shape (1, out)) with w ~= w_q * scale."""
    amax = jnp.max(jnp.abs(w), axis=0, keepdims=True)            # (1, out)
    scale = jnp.where(amax > 0.0, amax / 127.0, 1.0).astype(jnp.float32)
    w_q = jnp.round(w / scale).astype(jnp.int8)                  # |q| <= 127
    return w_q, scale


def _vae_head_kernel(h_ref, wmu_ref, smu_ref, bmu_ref,
                     wls_ref, sls_ref, bls_ref, eps_ref,
                     z_ref, mu_ref, sigma_ref):
    """Single grid step (whole problem in VMEM):
         mu        = (h @ dequant(W_mu_q)) * s_mu + b_mu
         log_sigma = (h @ dequant(W_ls_q)) * s_ls + b_ls
         sigma     = exp(log_sigma)
         z         = mu + sigma * eps
    """
    h = h_ref[...]                                               # (B, 800) bf16

    # Dequantize the int8 *codes* only (exact in bf16 since |q| <= 127 < 256);
    # the per-column scale is applied after the f32 MXU accumulation.
    # Two-step int8 -> f32 -> bf16 cast keeps the lowering on the well-trodden
    # convert paths.
    wmu = wmu_ref[...].astype(jnp.float32).astype(jnp.bfloat16)  # (800, 800)
    wls = wls_ref[...].astype(jnp.float32).astype(jnp.bfloat16)

    mu = (jnp.dot(h, wmu, preferred_element_type=jnp.float32)
          * smu_ref[...] + bmu_ref[...])                         # (B, 800) f32
    log_sigma = (jnp.dot(h, wls, preferred_element_type=jnp.float32)
                 * sls_ref[...] + bls_ref[...])
    sigma = jnp.exp(log_sigma)                                   # EUP slot

    mu_ref[...] = mu
    sigma_ref[...] = sigma
    z_ref[...] = mu + sigma * eps_ref[...]


def vae_sample_latent(h_flat, w_mu_q, s_mu, b_mu, w_ls_q, s_ls, b_ls, key):
    """Reparameterization head.
    h_flat: (B, 800) f32.  w_*_q: (800, 800) int8 (layout = in x out, i.e. the
    transpose of PyTorch's Linear.weight).  s_*: (1, 800) f32 per-column
    scales.  b_*: (1, 800) f32.  Returns (z, mu, sigma), each (B, 800) f32."""
    B = h_flat.shape[0]
    h_bf16 = h_flat.astype(jnp.bfloat16)
    eps = jax.random.normal(key, (B, FEAT), jnp.float32)

    full = lambda shape: pl.BlockSpec(shape, lambda i: (0, 0))   # full-array block
    out_shape = tuple(jax.ShapeDtypeStruct((B, FEAT), jnp.float32)
                      for _ in range(3))

    z, mu, sigma = pl.pallas_call(
        _vae_head_kernel,
        grid=(1,),
        in_specs=[
            full((B, FEAT)),        # h            (bf16)
            full((FEAT, FEAT)),     # W_mu codes   (int8)
            full((1, FEAT)),        # s_mu         (f32)
            full((1, FEAT)),        # b_mu         (f32)
            full((FEAT, FEAT)),     # W_ls codes   (int8)
            full((1, FEAT)),        # s_ls         (f32)
            full((1, FEAT)),        # b_ls         (f32)
            full((B, FEAT)),        # eps          (f32)
        ],
        out_specs=(
            full((B, FEAT)),        # z
            full((B, FEAT)),        # mu
            full((B, FEAT)),        # sigma
        ),
        out_shape=out_shape,
        compiler_params=pltpu.CompilerParams(
            dimension_semantics=("arbitrary",),
            vmem_limit_bytes=32 << 20,   # headroom for the dequant intermediates
        ),
    )(h_bf16, w_mu_q, s_mu, b_mu, w_ls_q, s_ls, b_ls, eps)

    return z, mu, sigma


class VAE:
    """JAX/Pallas port of the PyTorch VAE module's forward pass."""

    def __init__(self, encoder, decoder, key):
        self.encoder = encoder
        self.decoder = decoder
        # torch.nn.Linear(800, 800) init: U(-1/sqrt(in), 1/sqrt(in)).
        k1, k2, k3, k4 = jax.random.split(key, 4)
        bound = FEAT ** -0.5
        # stored as (in_features, out_features) == W^T of PyTorch's (out, in)
        self.w_mu = jax.random.uniform(k1, (FEAT, FEAT), jnp.float32,
                                       -bound, bound)
        self.b_mu = jax.random.uniform(k2, (FEAT,), jnp.float32, -bound, bound)
        self.w_ls = jax.random.uniform(k3, (FEAT, FEAT), jnp.float32,
                                       -bound, bound)
        self.b_ls = jax.random.uniform(k4, (FEAT,), jnp.float32, -bound, bound)
        # int8 weight-only quantization for the kernel (f32 copies above are
        # kept for reference checks only).
        self.w_mu_q, self.s_mu = _quantize_per_col(self.w_mu)
        self.w_ls_q, self.s_ls = _quantize_per_col(self.w_ls)
        self.b_mu_2d = self.b_mu.reshape(1, FEAT)
        self.b_ls_2d = self.b_ls.reshape(1, FEAT)
        self.z_mean = None
        self.z_sigma = None

    def _sample_latent(self, sh_enc, key):
        B = sh_enc.shape[0]
        h_enc = sh_enc.reshape(B, -1).astype(jnp.float32)        # (B, 800)
        z, mu, sigma = vae_sample_latent(
            h_enc, self.w_mu_q, self.s_mu, self.b_mu_2d,
            self.w_ls_q, self.s_ls, self.b_ls_2d, key)
        # NOTE: attribute side effects mirror the PyTorch module; if forward()
        # is ever wrapped in jax.jit, return (z, mu, sigma) instead.
        self.z_mean = mu
        self.z_sigma = sigma
        return z

    def forward(self, state, key):
        h_enc = self.encoder(state)
        z = self._sample_latent(h_enc, key)
        zs = z.reshape(z.shape[0], LATENT_C, LATENT_H, LATENT_W)
        return self.decoder(zs)


# --- deterministic stand-ins for the injected encoder / decoder modules -----
def identity_encoder(state):
    # state: (B, 32, 5, 5) NCHW; VAE only requires that it flattens to (B, 800)
    return state


def identity_decoder(zs):
    # zs: (B, 32, 5, 5) NCHW
    return zs


if __name__ == "__main__":
    key = jax.random.PRNGKey(0)
    k_params, k_state, k_eps = jax.random.split(key, 3)

    B = 2
    state = jax.random.normal(k_state, (B, LATENT_C, LATENT_H, LATENT_W),
                              jnp.float32)   # NCHW, flattens to (B, 800)

    vae = VAE(identity_encoder, identity_decoder, k_params)
    out = jax.block_until_ready(vae.forward(state, k_eps))
    mu = jax.block_until_ready(vae.z_mean)
    sigma = jax.block_until_ready(vae.z_sigma)

    assert out.shape == (B, LATENT_C, LATENT_H, LATENT_W)
    assert mu.shape == (B, FEAT) and sigma.shape == (B, FEAT)
    assert bool(jnp.all(jnp.isfinite(out)))
    assert bool(jnp.all(sigma > 0))

    # Deterministic-part check against a pure-JAX f32 reference.  The kernel
    # uses int8 weights + bf16 activations with f32 accumulation, so expected
    # errors are ~0.5%; loose tolerance covers it.
    h = state.reshape(B, -1)
    mu_expect = h @ vae.w_mu + vae.b_mu
    sigma_expect = jnp.exp(h @ vae.w_ls + vae.b_ls)
    assert bool(jnp.allclose(mu, mu_expect, rtol=0.1, atol=0.1))
    assert bool(jnp.allclose(sigma, sigma_expect, rtol=0.1, atol=0.1))

    # z = mu + sigma * eps: reconstruct eps from the kernel outputs and compare
    # with the wrapper's deterministic draw (same key, same shape).
    z = out.reshape(B, FEAT)
    eps_expect = jax.random.normal(k_eps, (B, FEAT), jnp.float32)
    eps_hat = (z - mu) / sigma
    assert bool(jnp.allclose(eps_hat, eps_expect, rtol=1e-2, atol=1e-2))

    print("KERNEL_OK")
</pallas_src>

<mosaic_0001>
module attributes {stable_mosaic.version = 11 : i64} {
  func.func @_vae_head_kernel(%arg0: i32, %arg1: memref<2x800xbf16, #tpu.memory_space<vmem>>, %arg2: memref<800x800xi8, #tpu.memory_space<vmem>>, %arg3: memref<1x800xf32, #tpu.memory_space<vmem>>, %arg4: memref<1x800xf32, #tpu.memory_space<vmem>>, %arg5: memref<800x800xi8, #tpu.memory_space<vmem>>, %arg6: memref<1x800xf32, #tpu.memory_space<vmem>>, %arg7: memref<1x800xf32, #tpu.memory_space<vmem>>, %arg8: memref<2x800xf32, #tpu.memory_space<vmem>>, %arg9: memref<2x800xf32, #tpu.memory_space<vmem>>, %arg10: memref<2x800xf32, #tpu.memory_space<vmem>>, %arg11: memref<2x800xf32, #tpu.memory_space<vmem>>) attributes {dimension_semantics = [#tpu.dimension_semantics<arbitrary>], iteration_bounds = array<i64: 1>, scalar_prefetch = 0 : i64, scratch_operands = 0 : i64, tpu.core_type = #tpu.core_type<tc>, window_params = [{pipeline_mode = #tpu.pipeline_mode<synchronous>, transform_indices = @transform_0, window_bounds = array<i64: 2, 800>}, {pipeline_mode = #tpu.pipeline_mode<synchronous>, transform_indices = @transform_1, window_bounds = array<i64: 800, 800>}, {pipeline_mode = #tpu.pipeline_mode<synchronous>, transform_indices = @transform_2, window_bounds = array<i64: 1, 800>}, {pipeline_mode = #tpu.pipeline_mode<synchronous>, transform_indices = @transform_3, window_bounds = array<i64: 1, 800>}, {pipeline_mode = #tpu.pipeline_mode<synchronous>, transform_indices = @transform_4, window_bounds = array<i64: 800, 800>}, {pipeline_mode = #tpu.pipeline_mode<synchronous>, transform_indices = @transform_5, window_bounds = array<i64: 1, 800>}, {pipeline_mode = #tpu.pipeline_mode<synchronous>, transform_indices = @transform_6, window_bounds = array<i64: 1, 800>}, {pipeline_mode = #tpu.pipeline_mode<synchronous>, transform_indices = @transform_7, window_bounds = array<i64: 2, 800>}, {pipeline_mode = #tpu.pipeline_mode<synchronous>, transform_indices = @transform_8, window_bounds = array<i64: 2, 800>}, {pipeline_mode = #tpu.pipeline_mode<synchronous>, transform_indices = @transform_9, window_bounds = array<i64: 2, 800>}, {pipeline_mode = #tpu.pipeline_mode<synchronous>, transform_indices = @transform_10, window_bounds = array<i64: 2, 800>}]} {
    %c0 = arith.constant 0 : index
    %c0_0 = arith.constant 0 : index
    %0 = vector.load %arg1[%c0, %c0_0] : memref<2x800xbf16, #tpu.memory_space<vmem>>, vector<2x800xbf16>
    %c0_1 = arith.constant 0 : index
    %c0_2 = arith.constant 0 : index
    %1 = vector.load %arg2[%c0_1, %c0_2] : memref<800x800xi8, #tpu.memory_space<vmem>>, vector<800x800xi8>
    %2 = arith.sitofp %1 : vector<800x800xi8> to vector<800x800xf32>
    %3 = arith.truncf %2 : vector<800x800xf32> to vector<800x800xbf16>
    %c0_3 = arith.constant 0 : index
    %c0_4 = arith.constant 0 : index
    %4 = vector.load %arg5[%c0_3, %c0_4] : memref<800x800xi8, #tpu.memory_space<vmem>>, vector<800x800xi8>
    %5 = arith.sitofp %4 : vector<800x800xi8> to vector<800x800xf32>
    %6 = arith.truncf %5 : vector<800x800xf32> to vector<800x800xbf16>
    %cst = arith.constant dense<0.000000e+00> : vector<2x800xf32>
    %7 = tpu.matmul %0, %3, %cst {dimension_numbers = #tpu.dot_dimension_numbers<[1], [0], [0], [1], [0, 0, 1, 1], [], []>} : vector<2x800xbf16>, vector<800x800xbf16>, vector<2x800xf32> -> vector<2x800xf32>
    %c0_5 = arith.constant 0 : index
    %c0_6 = arith.constant 0 : index
    %8 = vector.load %arg3[%c0_5, %c0_6] : memref<1x800xf32, #tpu.memory_space<vmem>>, vector<1x800xf32>
    %9 = vector.broadcast %8 : vector<1x800xf32> to vector<2x800xf32>
    %10 = arith.mulf %7, %9 : vector<2x800xf32>
    %c0_7 = arith.constant 0 : index
    %c0_8 = arith.constant 0 : index
    %11 = vector.load %arg4[%c0_7, %c0_8] : memref<1x800xf32, #tpu.memory_space<vmem>>, vector<1x800xf32>
    %12 = vector.broadcast %11 : vector<1x800xf32> to vector<2x800xf32>
    %13 = arith.addf %10, %12 : vector<2x800xf32>
    %cst_9 = arith.constant dense<0.000000e+00> : vector<2x800xf32>
    %14 = tpu.matmul %0, %6, %cst_9 {dimension_numbers = #tpu.dot_dimension_numbers<[1], [0], [0], [1], [0, 0, 1, 1], [], []>} : vector<2x800xbf16>, vector<800x800xbf16>, vector<2x800xf32> -> vector<2x800xf32>
    %c0_10 = arith.constant 0 : index
    %c0_11 = arith.constant 0 : index
    %15 = vector.load %arg6[%c0_10, %c0_11] : memref<1x800xf32, #tpu.memory_space<vmem>>, vector<1x800xf32>
    %16 = vector.broadcast %15 : vector<1x800xf32> to vector<2x800xf32>
    %17 = arith.mulf %14, %16 : vector<2x800xf32>
    %c0_12 = arith.constant 0 : index
    %c0_13 = arith.constant 0 : index
    %18 = vector.load %arg7[%c0_12, %c0_13] : memref<1x800xf32, #tpu.memory_space<vmem>>, vector<1x800xf32>
    %19 = vector.broadcast %18 : vector<1x800xf32> to vector<2x800xf32>
    %20 = arith.addf %17, %19 : vector<2x800xf32>
    %21 = math.exp %20 : vector<2x800xf32>
    %c0_14 = arith.constant 0 : index
    %c0_15 = arith.constant 0 : index
    %22 = vector.load %arg10[%c0_14, %c0_15] : memref<2x800xf32, #tpu.memory_space<vmem>>, vector<2x800xf32>
    tpu.vector_store %arg10[%c0_14, %c0_15], %13 {strides = array<i32>} : memref<2x800xf32, #tpu.memory_space<vmem>>, vector<2x800xf32>,
    %c0_16 = arith.constant 0 : index
    %c0_17 = arith.constant 0 : index
    %23 = vector.load %arg11[%c0_16, %c0_17] : memref<2x800xf32, #tpu.memory_space<vmem>>, vector<2x800xf32>
    tpu.vector_store %arg11[%c0_16, %c0_17], %21 {strides = array<i32>} : memref<2x800xf32, #tpu.memory_space<vmem>>, vector<2x800xf32>,
    %c0_18 = arith.constant 0 : index
    %c0_19 = arith.constant 0 : index
    %24 = vector.load %arg8[%c0_18, %c0_19] : memref<2x800xf32, #tpu.memory_space<vmem>>, vector<2x800xf32>
    %25 = arith.mulf %21, %24 : vector<2x800xf32>
    %26 = arith.addf %13, %25 : vector<2x800xf32>
    %c0_20 = arith.constant 0 : index
    %c0_21 = arith.constant 0 : index
    %27 = vector.load %arg9[%c0_20, %c0_21] : memref<2x800xf32, #tpu.memory_space<vmem>>, vector<2x800xf32>
    tpu.vector_store %arg9[%c0_20, %c0_21], %26 {strides = array<i32>} : memref<2x800xf32, #tpu.memory_space<vmem>>, vector<2x800xf32>,
    return
  }
  func.func @transform_0(%arg0: i32) -> (i32, i32) {
    %c0_i32 = arith.constant 0 : i32
    %c0_i32_0 = arith.constant 0 : i32
    %c0_i32_1 = arith.constant 0 : i32
    return %c0_i32, %c0_i32_0 : i32, i32
  }
  func.func @transform_1(%arg0: i32) -> (i32, i32) {
    %c0_i32 = arith.constant 0 : i32
    %c0_i32_0 = arith.constant 0 : i32
    %c0_i32_1 = arith.constant 0 : i32
    return %c0_i32, %c0_i32_0 : i32, i32
  }
  func.func @transform_2(%arg0: i32) -> (i32, i32) {
    %c0_i32 = arith.constant 0 : i32
    %c0_i32_0 = arith.constant 0 : i32
    %c0_i32_1 = arith.constant 0 : i32
    return %c0_i32, %c0_i32_0 : i32, i32
  }
  func.func @transform_3(%arg0: i32) -> (i32, i32) {
    %c0_i32 = arith.constant 0 : i32
    %c0_i32_0 = arith.constant 0 : i32
    %c0_i32_1 = arith.constant 0 : i32
    return %c0_i32, %c0_i32_0 : i32, i32
  }
  func.func @transform_4(%arg0: i32) -> (i32, i32) {
    %c0_i32 = arith.constant 0 : i32
    %c0_i32_0 = arith.constant 0 : i32
    %c0_i32_1 = arith.constant 0 : i32
    return %c0_i32, %c0_i32_0 : i32, i32
  }
  func.func @transform_5(%arg0: i32) -> (i32, i32) {
    %c0_i32 = arith.constant 0 : i32
    %c0_i32_0 = arith.constant 0 : i32
    %c0_i32_1 = arith.constant 0 : i32
    return %c0_i32, %c0_i32_0 : i32, i32
  }
  func.func @transform_6(%arg0: i32) -> (i32, i32) {
    %c0_i32 = arith.constant 0 : i32
    %c0_i32_0 = arith.constant 0 : i32
    %c0_i32_1 = arith.constant 0 : i32
    return %c0_i32, %c0_i32_0 : i32, i32
  }
  func.func @transform_7(%arg0: i32) -> (i32, i32) {
    %c0_i32 = arith.constant 0 : i32
    %c0_i32_0 = arith.constant 0 : i32
    %c0_i32_1 = arith.constant 0 : i32
    return %c0_i32, %c0_i32_0 : i32, i32
  }
  func.func @transform_8(%arg0: i32) -> (i32, i32) {
    %c0_i32 = arith.constant 0 : i32
    %c0_i32_0 = arith.constant 0 : i32
    %c0_i32_1 = arith.constant 0 : i32
    return %c0_i32, %c0_i32_0 : i32, i32
  }
  func.func @transform_9(%arg0: i32) -> (i32, i32) {
    %c0_i32 = arith.constant 0 : i32
    %c0_i32_0 = arith.constant 0 : i32
    %c0_i32_1 = arith.constant 0 : i32
    return %c0_i32, %c0_i32_0 : i32, i32
  }
  func.func @transform_10(%arg0: i32) -> (i32, i32) {
    %c0_i32 = arith.constant 0 : i32
    %c0_i32_0 = arith.constant 0 : i32
    %c0_i32_1 = arith.constant 0 : i32
    return %c0_i32, %c0_i32_0 : i32, i32
  }
}

</mosaic_0001>

<bundles_post_ra>
// kernel: tpu_custom_call.1
= control target key start
LH: loop header
LB: loop body
LE: loop exit
PB: predicated region body
PF: predicated region fallthrough
CT: control target
= control target key end

     0   :  { %16 = vsyncpa [#allocation3], 0  ;;  %s3874_s0 = inlined_call_operand.hbm [shape: bf16[2,800], index: 0, kind: input, shape index: {}]   ;;  %s3875_s1 = inlined_call_operand.hbm [shape: s8[800,800], index: 1, kind: input, shape index: {}]   ;;  %s3876_s2 = inlined_call_operand.vmem [shape: f32[1,800], index: 2, kind: input, shape index: {}]   ;;  %s3877_s3 = inlined_call_operand.hbm [shape: f32[1,800], index: 3, kind: input, shape index: {}]   ;;  %s3878_s4 = inlined_call_operand.hbm [shape: s8[800,800], index: 4, kind: input, shape index: {}]   ;;  %s3879_s5 = inlined_call_operand.hbm [shape: f32[1,800], index: 5, kind: input, shape index: {}]   ;;  %s3880_s6 = inlined_call_operand.hbm [shape: f32[1,800], index: 6, kind: input, shape index: {}]   ;;  %s3881_s7 = inlined_call_operand.vmem [shape: f32[2,800], index: 7, kind: input, shape index: {}]   ;;  %s3882_s8 = inlined_call_operand.hbm [shape: f32[2,800], index: 8, kind: output, shape index: {0}]   ;;  %s3883_s9 = inlined_call_operand.hbm [shape: f32[2,800], index: 9, kind: output, shape index: {1}]   ;;  %s3884_s10 = inlined_call_operand.hbm [shape: f32[2,800], index: 10, kind: output, shape index: {2}]  }
   0x1   :  { %17 = vsyncpa [#allocation6], 0 }
   0x2   :  { %18 = vsyncpa [#allocation9], 0 }
   0x3   :  { %19 = vsyncpa [#allocation12], 0 }
   0x4   :  { %20 = vsyncpa [#allocation4], 0 }
   0x5   :  { %21 = vsyncpa [#allocation15], 0  ;;  %s3431_s13 = smov [#allocation5]   ;;  %s3221_s17 = scalar_lea.hbm %s3875_s1, 22400 }
   0x6   :  { %s37_s14 = sshll.u32 %s3431_s13, 4  ;;  %p3222_p0 = scmp.ne.s32.totalorder %s3875_s1, %s3221_s17  ;;  %s38_s14 = int_to_ptr.vmem [resolvable:$true] %s37_s14 }
   0x7   :  { %p3225_p1 = scmp.lt.u32.totalorder %s3221_s17, %s3875_s1 }
   0x9   :  { %p3227_p2 = pnand %p3225_p1, %p3222_p0 }
   0xb   :  { %3230 = shalt.err (!%p3227_p2)
}
   0xc   :  { %s3231_s22 = scalar_lea.vmem %s38_s14, 22400  ;;  %p3236_p4 = scmp.lt.s32.totalorder %s38_s14, %s38_s14 }
   0xd   :  { %p3232_p3 = scmp.ne.s32.totalorder %s38_s14, %s3231_s22  ;;  %p3237_p5 = scmp.lt.s32.totalorder %s3231_s22, %s3231_s22 }
   0xf   :  { %p3238_p6 = por %p3237_p5, %p3236_p4 }
  0x11   :  { %p3239_p7 = pnand %p3238_p6, %p3232_p3 }
  0x13   :  { %3242 = shalt.err (!%p3239_p7)
}
  0x14   :  { %s3432_s23 = smov 896   ;;  %s3433_s24 = smov 56  }
  0x15   :  { %43 = dma.hbm_to_vmem [thread:$0]  %s3875_s1, 22400, %s38_s14, [#allocation6], %s3432_s23, %s3432_s23, %s3433_s24  }
  0x16   :  { %s3434_s27 = smov [#allocation8]   ;;  %s3435_s29 = smov [#allocation2]  }
  0x17   :  { %s61_s28 = sshll.u32 %s3434_s27, 4  ;;  %s28_s30 = sshll.u32 %s3435_s29, 4  ;;  %s62_s28 = int_to_ptr.vmem [resolvable:$true] %s61_s28  ;;  %s29_s30 = int_to_ptr.vmem [resolvable:$true] %s28_s30 }
  0x18   :  { %s3243_s13 = scalar_lea.hbm %s3878_s4, 22400 }
  0x19   :  { %p3244_p8 = scmp.ne.s32.totalorder %s3878_s4, %s3243_s13  ;;  %p3247_p9 = scmp.lt.u32.totalorder %s3243_s13, %s3878_s4 }
  0x1b   :  { %p3249_p10 = pnand %p3247_p9, %p3244_p8 }
  0x1d   :  { %3252 = shalt.err (!%p3249_p10)
}
  0x1e   :  { %s3253_s1 = scalar_lea.vmem %s62_s28, 22400  ;;  %p3258_p12 = scmp.lt.s32.totalorder %s62_s28, %s62_s28 }
  0x1f   :  { %p3254_p11 = scmp.ne.s32.totalorder %s62_s28, %s3253_s1  ;;  %p3259_p13 = scmp.lt.s32.totalorder %s3253_s1, %s3253_s1 }
  0x21   :  { %p3260_p0 = por %p3259_p13, %p3258_p12 }
  0x23   :  { %p3261_p1 = pnand %p3260_p0, %p3254_p11 }
  0x25   :  { %3264 = shalt.err (!%p3261_p1)
}
  0x26   :  { %67 = dma.hbm_to_vmem [thread:$0]  %s3878_s4, 22400, %s62_s28, [#allocation9], %s3432_s23, %s3432_s23, %s3433_s24  }
  0x27   :  { %s3265_s22 = scalar_lea.hbm %s3874_s0, 112 }
  0x28   :  { %p3266_p2 = scmp.ne.s32.totalorder %s3874_s0, %s3265_s22  ;;  %p3269_p3 = scmp.lt.u32.totalorder %s3265_s22, %s3874_s0 }
  0x2a   :  { %p3271_p4 = pnand %p3269_p3, %p3266_p2 }
  0x2c   :  { %3274 = shalt.err (!%p3271_p4)
}
  0x2d   :  { %s3275_s11 = scalar_lea.vmem %s29_s30, 112  ;;  %s3279_s12 = scalar_lea.vmem %s29_s30, 128 }
  0x2e   :  { %p3276_p5 = scmp.ne.s32.totalorder %s29_s30, %s3275_s11  ;;  %p3280_p6 = scmp.lt.s32.totalorder %s29_s30, %s29_s30 }
  0x2f   :  { %p3281_p7 = scmp.lt.s32.totalorder %s3279_s12, %s3275_s11 }
  0x31   :  { %p3282_p8 = por %p3281_p7, %p3280_p6 }
  0x33   :  { %p3283_p9 = pnand %p3282_p8, %p3276_p5 }
  0x35   :  { %3286 = shalt.err (!%p3283_p9)
}
  0x36   :  { %31 = dma.hbm_to_vmem [thread:$0]  %s3874_s0, 112, %s29_s30, [#allocation3]  }
  0x37   :  { %s3436_s24 = smov [#allocation7]   ;;  %s3437_s13 = smov [#allocation10]  }
  0x38   :  { %s52_s28 = sshll.u32 %s3436_s24, 4  ;;  %s74_s15 = sshll.u32 %s3437_s13, 4  ;;  %s53_s28 = int_to_ptr.vmem [resolvable:$true] %s52_s28  ;;  %s75_s15 = int_to_ptr.vmem [resolvable:$true] %s74_s15 }
  0x39   :  { %s3287_s18 = scalar_lea.hbm %s3877_s3, 112 }
  0x3a   :  { %p3288_p10 = scmp.ne.s32.totalorder %s3877_s3, %s3287_s18  ;;  %p3291_p11 = scmp.lt.u32.totalorder %s3287_s18, %s3877_s3 }
  0x3c   :  { %p3293_p12 = pnand %p3291_p11, %p3288_p10 }
  0x3e   :  { %3296 = shalt.err (!%p3293_p12)
}
  0x3f   :  { %s3297_s0 = scalar_lea.vmem %s53_s28, 112  ;;  %s3301_s30 = scalar_lea.vmem %s53_s28, 128 }
  0x40   :  { %p3298_p13 = scmp.ne.s32.totalorder %s53_s28, %s3297_s0  ;;  %p3302_p0 = scmp.lt.s32.totalorder %s53_s28, %s53_s28 }
  0x41   :  { %p3303_p1 = scmp.lt.s32.totalorder %s3301_s30, %s3297_s0 }
  0x43   :  { %p3304_p2 = por %p3303_p1, %p3302_p0 }
  0x45   :  { %p3305_p3 = pnand %p3304_p2, %p3298_p13 }
  0x47   :  { %3308 = shalt.err (!%p3305_p3)
}
  0x48   :  { %55 = dma.hbm_to_vmem [thread:$0]  %s3877_s3, 112, %s53_s28, [#allocation6]  }
  0x49   :  { %s3309_s27 = scalar_lea.hbm %s3879_s5, 112 }
  0x4a   :  { %p3310_p4 = scmp.ne.s32.totalorder %s3879_s5, %s3309_s27  ;;  %p3313_p5 = scmp.lt.u32.totalorder %s3309_s27, %s3879_s5 }
  0x4c   :  { %p3315_p6 = pnand %p3313_p5, %p3310_p4 }
  0x4e   :  { %3318 = shalt.err (!%p3315_p6)
}
  0x4f   :  { %s3319_s23 = scalar_lea.vmem %s75_s15, 112  ;;  %s3323_s24 = scalar_lea.vmem %s75_s15, 128 }
  0x50   :  { %p3320_p7 = scmp.ne.s32.totalorder %s75_s15, %s3319_s23  ;;  %p3324_p8 = scmp.lt.s32.totalorder %s75_s15, %s75_s15 }
  0x51   :  { %p3325_p9 = scmp.lt.s32.totalorder %s3323_s24, %s3319_s23 }
  0x53   :  { %p3326_p10 = por %p3325_p9, %p3324_p8 }
  0x55   :  { %p3327_p11 = pnand %p3326_p10, %p3320_p7 }
  0x57   :  { %3330 = shalt.err (!%p3327_p11)
}
  0x58   :  { %77 = dma.hbm_to_vmem [thread:$0]  %s3879_s5, 112, %s75_s15, [#allocation9]  }
  0x59   :  { %s3438_s13 = smov [#allocation11]   ;;  %s3331_s1 = scalar_lea.hbm %s3880_s6, 112 }
  0x5a   :  { %s84_s16 = sshll.u32 %s3438_s13, 4  ;;  %p3332_p12 = scmp.ne.s32.totalorder %s3880_s6, %s3331_s1  ;;  %s85_s16 = int_to_ptr.vmem [resolvable:$true] %s84_s16 }
  0x5b   :  { %p3335_p13 = scmp.lt.u32.totalorder %s3331_s1, %s3880_s6 }
  0x5d   :  { %p3337_p0 = pnand %p3335_p13, %p3332_p12 }
  0x5f   :  { %3340 = shalt.err (!%p3337_p0)
}
  0x60   :  { %s3341_s30 = scalar_lea.vmem %s85_s16, 112  ;;  %s3345_s5 = scalar_lea.vmem %s85_s16, 128 }
  0x61   :  { %p3342_p1 = scmp.ne.s32.totalorder %s85_s16, %s3341_s30  ;;  %p3346_p2 = scmp.lt.s32.totalorder %s85_s16, %s85_s16 }
  0x62   :  { %p3347_p3 = scmp.lt.s32.totalorder %s3345_s5, %s3341_s30 }
  0x64   :  { %p3348_p4 = por %p3347_p3, %p3346_p2 }
  0x66   :  { %p3349_p5 = pnand %p3348_p4, %p3342_p1 }
  0x68   :  { %3352 = shalt.err (!%p3349_p5)
}
  0x69   :  { %87 = dma.hbm_to_vmem [thread:$0]  %s3880_s6, 112, %s85_s16, [#allocation12]  }
  0x6a   :  { %3419 = dma.done.wait [#allocation3], 112  }
  0x6b   :  { %3420 = vsyncadd [#allocation3], 4294967184 }
  0x6c   :  { %3421 = dma.done.wait [#allocation6], 22512  }
  0x6d   :  { %3422 = vsyncadd [#allocation6], 4294944784 }
  0x6e   :  { %3423 = dma.done.wait [#allocation9], 22512  }
  0x6f   :  { %3424 = vsyncadd [#allocation9], 4294944784 }
  0x70   :  { %3425 = dma.done.wait [#allocation12], 112  }
  0x71   :  { %3426 = vsyncadd [#allocation12], 4294967184  ;;  %v111_v0 = vld [vmem:[#allocation5 + $0x8] sm:$0xff]  ;;  %v113_v1 = vld [vmem:[#allocation5 + $0x18] sm:$0xff]  ;;  %v3439_v18 = vmov 1966171168   ;;  %v1165_v20 = vlaneseq }
  0x72   :  { %v110_v2 = vld [vmem:[#allocation5] sm:$0xff]  ;;  %v286_v3 = vunpack.c.l.s8.bf16 %v111_v0  ;;  %v293_v4 = vunpack.c.h.s8.bf16 %v111_v0  ;;  %v288_v5 = vunpack.c.l.s8.bf16 %v113_v1  ;;  %v295_v6 = vunpack.c.h.s8.bf16 %v113_v1  ;;  %v112_v7 = vld [vmem:[#allocation5 + $0x10] sm:$0xff]  ;;  %v117_v16 = vld [vmem:[#allocation5 + $0x38] sm:$0xff]  ;;  %s3444_s29 = smov [#allocation14]  }
  0x73   :  { %v285_v8 = vunpack.c.l.s8.bf16 %v110_v2  ;;  %v287_v9 = vunpack.c.l.s8.bf16 %v112_v7  ;;  %v118_v10 = vld [vmem:[#allocation5 + $0x40] sm:$0xff]  ;;  %v120_v11 = vld [vmem:[#allocation5 + $0x50] sm:$0xff]  ;;  %v292_v12 = vunpack.c.h.s8.bf16 %v110_v2  ;;  %v294_v13 = vunpack.c.h.s8.bf16 %v112_v7  ;;  %v119_v17 = vld [vmem:[#allocation5 + $0x48] sm:$0xff]  ;;  %s2924_s11 = sshll.u32 %s3444_s29, 4  ;;  %s2925_s11 = int_to_ptr.vmem [resolvable:$true] %s2924_s11 }
  0x74   :  { %1219 = vmatprep.subr.bf16.mxu0 %v286_v3  ;;  %1383 = vmatprep.subr.bf16.mxu1 %v288_v5  ;;  %v300_v14 = vunpack.c.l.s8.bf16 %v118_v10  ;;  %v302_v15 = vunpack.c.l.s8.bf16 %v120_v11  ;;  %v1163_v19 = vunpack.c.l.s4 %v3439_v18  ;;  %v299_v21 = vunpack.c.l.s8.bf16 %v117_v16  ;;  %v125_v27 = vld [vmem:[#allocation5 + $0x78] sm:$0xff]  ;;  %v127_v28 = vld [vmem:[#allocation5 + $0x88] sm:$0xff]  ;;  %v124_v33 = vld [vmem:[#allocation5 + $0x70] sm:$0xff]  ;;  %s3353_s12 = scalar_lea.vmem %s2925_s11, 224  ;;  %p3358_p7 = scmp.lt.s32.totalorder %s2925_s11, %s2925_s11 }
  0x75   :  { %1220 = vmatpush1.bf16.msra.mxu0 %v285_v8  ;;  %1384 = vmatpush1.bf16.msra.mxu1 %v287_v9  ;;  %v301_v22 = vunpack.c.l.s8.bf16 %v119_v17  ;;  %v307_v23 = vunpack.c.h.s8.bf16 %v118_v10  ;;  %v309_v24 = vunpack.c.h.s8.bf16 %v120_v11  ;;  %v3574_v26 = vshrl.u32 %v1165_v20, 7  ;;  %v126_v34 = vld [vmem:[#allocation5 + $0x80] sm:$0xff]  ;;  %v3579_v36 = vld [vmem:[#allocation2] sm:$0x7f]  ;;  %v132_v42 = vld [vmem:[#allocation5 + $0xb0] sm:$0xff]  ;;  %p3354_p6 = scmp.ne.s32.totalorder %s2925_s11, %s3353_s12  ;;  %p3359_p8 = scmp.lt.s32.totalorder %s3353_s12, %s3353_s12 }
  0x76   :  { %1221 = vmatprep.subr.bf16.mxu0 %v293_v4  ;;  %1385 = vmatprep.subr.bf16.mxu1 %v295_v6  ;;  %v1164_v25 = vunpack.c.0.s8 %v1163_v19  ;;  %v306_v29 = vunpack.c.h.s8.bf16 %v117_v16  ;;  %v308_v30 = vunpack.c.h.s8.bf16 %v119_v17  ;;  %v314_v31 = vunpack.c.l.s8.bf16 %v125_v27  ;;  %v134_v43 = vld [vmem:[#allocation5 + $0xc0] sm:$0xff]  ;;  %v131_v49 = vld [vmem:[#allocation5 + $0xa8] sm:$0xff]  ;;  %v133_v50 = vld [vmem:[#allocation5 + $0xb8] sm:$0xff] }
  0x77   :  { %v316_v32 = vunpack.c.l.s8.bf16 %v127_v28  ;;  %v313_v37 = vunpack.c.l.s8.bf16 %v124_v33  ;;  %v315_v38 = vunpack.c.l.s8.bf16 %v126_v34  ;;  %v321_v39 = vunpack.c.h.s8.bf16 %v125_v27  ;;  %v139_v56 = vld [vmem:[#allocation5 + $0xe8] sm:$0xff]  ;;  %v141_v57 = vld [vmem:[#allocation5 + $0xf8] sm:$0xff]  ;;  %v138_v62 = vld [vmem:[#allocation5 + $0xe0] sm:$0xff]  ;;  %p3360_p9 = por %p3359_p8, %p3358_p7 }
  0x78   :  { %v3577_v35 = vsub.s32 %v1164_v25, %v3574_v26  ;;  %v323_v40 = vunpack.c.h.s8.bf16 %v127_v28  ;;  %v320_v45 = vunpack.c.h.s8.bf16 %v124_v33  ;;  %v322_v46 = vunpack.c.h.s8.bf16 %v126_v34  ;;  %v140_v63 = vld [vmem:[#allocation5 + $0xf0] sm:$0xff]  ;;  %v146_v4 = vld [vmem:[#allocation5 + $0x120] sm:$0xff]  ;;  %v145_v10 = vld [vmem:[#allocation5 + $0x118] sm:$0xff] }
  0x79   :  { %1222 = vmatpush1.bf16.msra.mxu0 %v292_v12  ;;  %1386 = vmatpush1.bf16.msra.mxu1 %v294_v13  ;;  %v328_v47 = vunpack.c.l.s8.bf16 %v132_v42  ;;  %v330_v48 = vunpack.c.l.s8.bf16 %v134_v43  ;;  %v327_v52 = vunpack.c.l.s8.bf16 %v131_v49  ;;  %v329_v53 = vunpack.c.l.s8.bf16 %v133_v50  ;;  %v148_v5 = vld [vmem:[#allocation5 + $0x130] sm:$0xff]  ;;  %v147_v11 = vld [vmem:[#allocation5 + $0x128] sm:$0xff]  ;;  %v153_v16 = vld [vmem:[#allocation5 + $0x158] sm:$0xff]  ;;  %p3361_p10 = pnand %p3360_p9, %p3354_p6 }
  0x7a   :  { %1223 = vmatprep.subr.bf16.mxu0 %v300_v14  ;;  %1387 = vmatprep.subr.bf16.mxu1 %v302_v15  ;;  %v3583_v41 = vrot.slane %v3579_v36, %v3577_v35  ;;  %v335_v54 = vunpack.c.h.s8.bf16 %v132_v42  ;;  %v337_v55 = vunpack.c.h.s8.bf16 %v134_v43  ;;  %v334_v58 = vunpack.c.h.s8.bf16 %v131_v49  ;;  %v155_v17 = vld [vmem:[#allocation5 + $0x168] sm:$0xff] }
  0x7b   :  { %v336_v59 = vunpack.c.h.s8.bf16 %v133_v50  ;;  %v342_v60 = vunpack.c.l.s8.bf16 %v139_v56  ;;  %v344_v61 = vunpack.c.l.s8.bf16 %v141_v57  ;;  %v341_v0 = vunpack.c.l.s8.bf16 %v138_v62 }
  0x7c   :  { %v1176_v44 = vcombine.high %v3583_v41, %v3583_v41  ;;  %v343_v1 = vunpack.c.l.s8.bf16 %v140_v63  ;;  %v349_v2 = vunpack.c.h.s8.bf16 %v139_v56  ;;  %v351_v3 = vunpack.c.h.s8.bf16 %v141_v57 }
  0x7d   :  { %1224 = vmatpush1.bf16.msra.mxu0 %v299_v21  ;;  %1388 = vmatpush1.bf16.msra.mxu1 %v301_v22  ;;  %v348_v6 = vunpack.c.h.s8.bf16 %v138_v62  ;;  %v350_v7 = vunpack.c.h.s8.bf16 %v140_v63  ;;  %v356_v8 = vunpack.c.l.s8.bf16 %v146_v4  ;;  %v358_v9 = vunpack.c.l.s8.bf16 %v148_v5  ;;  %v152_v22 = vld [vmem:[#allocation5 + $0x150] sm:$0xff]  ;;  %v174_v62 = vld [vmem:[#allocation5 + $0x200] sm:$0xff] }
  0x7e   :  { %1225 = vmatprep.subr.bf16.mxu0 %v307_v23  ;;  %1389 = vmatprep.subr.bf16.mxu1 %v309_v24  ;;  %v3588_v51 = vrot.slane %v1176_v44, %v3577_v35  ;;  %v355_v12 = vunpack.c.l.s8.bf16 %v145_v10  ;;  %v357_v13 = vunpack.c.l.s8.bf16 %v147_v11  ;;  %v363_v14 = vunpack.c.h.s8.bf16 %v146_v4  ;;  %v154_v23 = vld [vmem:[#allocation5 + $0x160] sm:$0xff]  ;;  %v167_v44 = vld [vmem:[#allocation5 + $0x1c8] sm:$0xff]  ;;  %v176_v63 = vld [vmem:[#allocation5 + $0x210] sm:$0xff] }
  0x7f   :  { %v365_v15 = vunpack.c.h.s8.bf16 %v148_v5  ;;  %v362_v18 = vunpack.c.h.s8.bf16 %v145_v10  ;;  %v364_v19 = vunpack.c.h.s8.bf16 %v147_v11  ;;  %v370_v20 = vunpack.c.l.s8.bf16 %v153_v16  ;;  %v175_v4 = vld [vmem:[#allocation5 + $0x208] sm:$0xff] }
  0x80   :  { %1251 = vmatprep.mubr.bf16.mxu0 %v3588_v51  ;;  %1415 = vmatprep.mubr.bf16.mxu1 %v3588_v51  ;;  %v372_v21 = vunpack.c.l.s8.bf16 %v155_v17  ;;  %v369_v24 = vunpack.c.l.s8.bf16 %v152_v22  ;;  %v371_v25 = vunpack.c.l.s8.bf16 %v154_v23  ;;  %v377_v27 = vunpack.c.h.s8.bf16 %v153_v16  ;;  %v183_v10 = vld [vmem:[#allocation5 + $0x248] sm:$0xff]  ;;  %v182_v16 = vld [vmem:[#allocation5 + $0x240] sm:$0xff] }
  0x81   :  { %1226 = vmatpush1.bf16.msra.mxu0 %v306_v29  ;;  %1390 = vmatpush1.bf16.msra.mxu1 %v308_v30  ;;  %v379_v28 = vunpack.c.h.s8.bf16 %v155_v17  ;;  %v160_v29 = vld [vmem:[#allocation5 + $0x190] sm:$0xff]  ;;  %v162_v30 = vld [vmem:[#allocation5 + $0x1a0] sm:$0xff]  ;;  %v398_v50 = vunpack.c.l.s8.bf16 %v167_v44  ;;  %v3597_v56 = vrot.slane %v3583_v41, %v3577_v35  ;;  %v3607_v41 = vcombine.high %v3588_v51, %v3588_v51 }
  0x82   :  { %1227 = vmatprep.subr.bf16.mxu0 %v314_v31  ;;  %1391 = vmatprep.subr.bf16.mxu1 %v316_v32  ;;  %v376_v31 = vunpack.c.h.s8.bf16 %v152_v22  ;;  %v378_v32 = vunpack.c.h.s8.bf16 %v154_v23  ;;  %v384_v33 = vunpack.c.l.s8.bf16 %v160_v29  ;;  %v386_v34 = vunpack.c.l.s8.bf16 %v162_v30  ;;  %v190_v22 = vld [vmem:[#allocation5 + $0x280] sm:$0xff] }
  0x83   :  { %v391_v42 = vunpack.c.h.s8.bf16 %v160_v29  ;;  %v393_v43 = vunpack.c.h.s8.bf16 %v162_v30  ;;  %v189_v29 = vld [vmem:[#allocation5 + $0x278] sm:$0xff]  ;;  %vm1215_vm0 = vcmask 261120   ;;  %vm3442_vm1 = vmmov 0  }
  0x84   :  { %vm2756_vm2 = vcmask 1041408   ;;  %vm2757_vm3 = vcmask 1043458   ;;  %vm2759_vm5 = vcmask 259076  }
  0x85   :  { %1228 = vmatpush1.bf16.msra.mxu0 %v313_v37  ;;  %1392 = vmatpush1.bf16.msra.mxu1 %v315_v38  ;;  %v159_v37 = vld [vmem:[#allocation5 + $0x188] sm:$0xff]  ;;  %v161_v38 = vld [vmem:[#allocation5 + $0x198] sm:$0xff]  ;;  %vm2758_vm4 = vmor %vm2757_vm3, %vm2756_vm2 }
  0x86   :  { %1229 = vmatprep.subr.bf16.mxu0 %v321_v39  ;;  %1393 = vmatprep.subr.bf16.mxu1 %v323_v40  ;;  %v383_v39 = vunpack.c.l.s8.bf16 %v159_v37  ;;  %v385_v40 = vunpack.c.l.s8.bf16 %v161_v38  ;;  %vm3754_vm6 = vmor %vm2759_vm5, %vm2758_vm4 }
  0x89   :  { %1230 = vmatpush1.bf16.msra.mxu0 %v320_v45  ;;  %1394 = vmatpush1.bf16.msra.mxu1 %v322_v46  ;;  %v169_v45 = vld [vmem:[#allocation5 + $0x1d8] sm:$0xff]  ;;  %v1161_v46 = vcombine.high %v3579_v36, %v3579_v36 }
  0x8a   :  { %1231 = vmatprep.subr.bf16.mxu0 %v328_v47  ;;  %1395 = vmatprep.subr.bf16.mxu1 %v330_v48  ;;  %v390_v47 = vunpack.c.h.s8.bf16 %v159_v37  ;;  %v392_v48 = vunpack.c.h.s8.bf16 %v161_v38  ;;  %v197_v37 = vld [vmem:[#allocation5 + $0x2b8] sm:$0xff] }
  0x8b   :  { %v1175_v49 = vrot.slane %v1161_v46, %v3577_v35 }
  0x8d   :  { %1232 = vmatpush1.bf16.msra.mxu0 %v327_v52  ;;  %1396 = vmatpush1.bf16.msra.mxu1 %v329_v53  ;;  %v400_v52 = vunpack.c.l.s8.bf16 %v169_v45  ;;  %v166_v53 = vld [vmem:[#allocation5 + $0x1c0] sm:$0xff] }
  0x8e   :  { %1233 = vmatprep.subr.bf16.mxu0 %v335_v54  ;;  %1397 = vmatprep.subr.bf16.mxu1 %v337_v55  ;;  %v168_v54 = vld [vmem:[#allocation5 + $0x1d0] sm:$0xff]  ;;  %v1177_v55 = vcombine.high %v1175_v49, %v1175_v49  ;;  %v397_v36 = vunpack.c.l.s8.bf16 %v166_v53 }
  0x8f   :  { %v399_v57 = vunpack.c.l.s8.bf16 %v168_v54 }
  0x91   :  { %1234 = vmatpush1.bf16.msra.mxu0 %v334_v58  ;;  %1398 = vmatpush1.bf16.msra.mxu1 %v336_v59  ;;  %v3600_v58 = vrot.slane %v1175_v49, %v3577_v35  ;;  %v3603_v59 = vrot.slane %v1177_v55, %v3577_v35  ;;  %v412_v35 = vunpack.c.l.s8.bf16 %v174_v62  ;;  %v202_v49 = vld [vmem:[#allocation5 + $0x2e0] sm:$0xff] }
  0x92   :  { %1235 = vmatprep.subr.bf16.mxu0 %v342_v60  ;;  %1399 = vmatprep.subr.bf16.mxu1 %v344_v61  ;;  %v405_v60 = vunpack.c.h.s8.bf16 %v167_v44  ;;  %v407_v61 = vunpack.c.h.s8.bf16 %v169_v45  ;;  %v196_v44 = vld [vmem:[#allocation5 + $0x2b0] sm:$0xff] }
  0x93   :  { %v455_v46 = vunpack.c.l.s8.bf16 %v196_v44 }
  0x95   :  { %1236 = vmatpush1.bf16.msra.mxu0 %v341_v0  ;;  %1400 = vmatpush1.bf16.msra.mxu1 %v343_v1  ;;  %v404_v0 = vunpack.c.h.s8.bf16 %v166_v53  ;;  %v406_v1 = vunpack.c.h.s8.bf16 %v168_v54  ;;  %v462_v53 = vunpack.c.h.s8.bf16 %v196_v44  ;;  %v468_v54 = vunpack.c.l.s8.bf16 %v202_v49 }
  0x96   :  { %1237 = vmatprep.subr.bf16.mxu0 %v349_v2  ;;  %1401 = vmatprep.subr.bf16.mxu1 %v351_v3  ;;  %v414_v2 = vunpack.c.l.s8.bf16 %v176_v63  ;;  %v173_v3 = vld [vmem:[#allocation5 + $0x1f8] sm:$0xff] }
  0x97   :  { %v411_v5 = vunpack.c.l.s8.bf16 %v173_v3  ;;  %v418_v11 = vunpack.c.h.s8.bf16 %v173_v3 }
  0x99   :  { %1238 = vmatpush1.bf16.msra.mxu0 %v348_v6  ;;  %1402 = vmatpush1.bf16.msra.mxu1 %v350_v7  ;;  %v413_v6 = vunpack.c.l.s8.bf16 %v175_v4  ;;  %v419_v7 = vunpack.c.h.s8.bf16 %v174_v62  ;;  %v475_v62 = vunpack.c.h.s8.bf16 %v202_v49 }
  0x9a   :  { %1239 = vmatprep.subr.bf16.mxu0 %v356_v8  ;;  %1403 = vmatprep.subr.bf16.mxu1 %v358_v9  ;;  %v421_v8 = vunpack.c.h.s8.bf16 %v176_v63  ;;  %v181_v9 = vld [vmem:[#allocation5 + $0x238] sm:$0xff] }
  0x9d   :  { %1240 = vmatpush1.bf16.msra.mxu0 %v355_v12  ;;  %1404 = vmatpush1.bf16.msra.mxu1 %v357_v13  ;;  %v420_v12 = vunpack.c.h.s8.bf16 %v175_v4  ;;  %v426_v13 = vunpack.c.l.s8.bf16 %v181_v9 }
  0x9e   :  { %1241 = vmatprep.subr.bf16.mxu0 %v363_v14  ;;  %1405 = vmatprep.subr.bf16.mxu1 %v365_v15  ;;  %v428_v14 = vunpack.c.l.s8.bf16 %v183_v10  ;;  %v180_v15 = vld [vmem:[#allocation5 + $0x230] sm:$0xff] }
  0x9f   :  { %v425_v17 = vunpack.c.l.s8.bf16 %v180_v15  ;;  %v432_v23 = vunpack.c.h.s8.bf16 %v180_v15 }
  0xa1   :  { %1242 = vmatpush1.bf16.msra.mxu0 %v362_v18  ;;  %1406 = vmatpush1.bf16.msra.mxu1 %v364_v19  ;;  %v427_v18 = vunpack.c.l.s8.bf16 %v182_v16  ;;  %v433_v19 = vunpack.c.h.s8.bf16 %v181_v9 }
  0xa2   :  { %1243 = vmatprep.subr.bf16.mxu0 %v370_v20  ;;  %1407 = vmatprep.subr.bf16.mxu1 %v372_v21  ;;  %v435_v20 = vunpack.c.h.s8.bf16 %v183_v10  ;;  %v188_v21 = vld [vmem:[#allocation5 + $0x270] sm:$0xff] }
  0xa5   :  { %1244 = vmatpush1.bf16.msra.mxu0 %v369_v24  ;;  %1408 = vmatpush1.bf16.msra.mxu1 %v371_v25  ;;  %v434_v24 = vunpack.c.h.s8.bf16 %v182_v16  ;;  %v440_v25 = vunpack.c.l.s8.bf16 %v188_v21 }
  0xa6   :  { %1245 = vmatprep.subr.bf16.mxu0 %v377_v27  ;;  %1409 = vmatprep.subr.bf16.mxu1 %v379_v28  ;;  %v442_v27 = vunpack.c.l.s8.bf16 %v190_v22  ;;  %v187_v28 = vld [vmem:[#allocation5 + $0x268] sm:$0xff] }
  0xa7   :  { %v439_v30 = vunpack.c.l.s8.bf16 %v187_v28  ;;  %v446_v38 = vunpack.c.h.s8.bf16 %v187_v28 }
  0xa9   :  { %1246 = vmatpush1.bf16.msra.mxu0 %v376_v31  ;;  %1410 = vmatpush1.bf16.msra.mxu1 %v378_v32  ;;  %v441_v31 = vunpack.c.l.s8.bf16 %v189_v29  ;;  %v447_v32 = vunpack.c.h.s8.bf16 %v188_v21 }
  0xaa   :  { %1247 = vmatprep.subr.bf16.mxu0 %v384_v33  ;;  %1411 = vmatprep.subr.bf16.mxu1 %v386_v34  ;;  %v449_v33 = vunpack.c.h.s8.bf16 %v190_v22  ;;  %v195_v34 = vld [vmem:[#allocation5 + $0x2a8] sm:$0xff] }
  0xad   :  { %1248 = vmatpush1.bf16.msra.mxu0 %v383_v39  ;;  %1412 = vmatpush1.bf16.msra.mxu1 %v385_v40  ;;  %v448_v39 = vunpack.c.h.s8.bf16 %v189_v29  ;;  %v454_v40 = vunpack.c.l.s8.bf16 %v195_v34 }
  0xae   :  { %1249 = vmatprep.subr.bf16.mxu0 %v391_v42  ;;  %1413 = vmatprep.subr.bf16.mxu1 %v393_v43  ;;  %v456_v42 = vunpack.c.l.s8.bf16 %v197_v37  ;;  %v194_v43 = vld [vmem:[#allocation5 + $0x2a0] sm:$0xff] }
  0xaf   :  { %v453_v45 = vunpack.c.l.s8.bf16 %v194_v43 }
  0xb1   :  { %1250 = vmatpush1.bf16.msra.mxu0 %v390_v47  ;;  %1414 = vmatpush1.bf16.msra.mxu1 %v392_v48  ;;  %v461_v47 = vunpack.c.h.s8.bf16 %v195_v34  ;;  %v463_v48 = vunpack.c.h.s8.bf16 %v197_v37 }
  0xb2   :  { %1260 = vmatprep.subr.bf16.mxu0 %v398_v50  ;;  %1424 = vmatprep.subr.bf16.mxu1 %v400_v52  ;;  %v204_v50 = vld [vmem:[#allocation5 + $0x2f0] sm:$0xff]  ;;  %v460_v52 = vunpack.c.h.s8.bf16 %v194_v43 }
  0xb3   :  { %v470_v55 = vunpack.c.l.s8.bf16 %v204_v50  ;;  %v477_v63 = vunpack.c.h.s8.bf16 %v204_v50 }
  0xb4   :  { %1252 = vmatmul.mubr.bf16.vlgmr.msra.gmra.mrb[0].mxu0 %v3597_v56  ;;  %1416 = vmatmul.mubr.bf16.vlgmr.msra.gmra.mrb[0].mxu1 %v3597_v56 }
  0xb5   :  { %1261 = vmatpush1.bf16.msra.mxu0 %v397_v36  ;;  %1425 = vmatpush1.bf16.msra.mxu1 %v399_v57  ;;  %v201_v36 = vld [vmem:[#allocation5 + $0x2d8] sm:$0xff]  ;;  %v203_v57 = vld [vmem:[#allocation5 + $0x2e8] sm:$0xff] }
  0xb6   :  { %1262 = vmatprep.subr.bf16.mxu0 %v405_v60  ;;  %1426 = vmatprep.subr.bf16.mxu1 %v407_v61  ;;  %v467_v60 = vunpack.c.l.s8.bf16 %v201_v36  ;;  %v469_v61 = vunpack.c.l.s8.bf16 %v203_v57 }
  0xb7   :  { %1292 = vmatprep.mubr.bf16.mxu0 %v3607_v41  ;;  %1456 = vmatprep.mubr.bf16.mxu1 %v3607_v41 }
  0xb9   :  { %1263 = vmatpush1.bf16.msra.mxu0 %v404_v0  ;;  %1427 = vmatpush1.bf16.msra.mxu1 %v406_v1  ;;  %v209_v0 = vld [vmem:[#allocation5 + $0x318] sm:$0xff]  ;;  %v211_v1 = vld [vmem:[#allocation5 + $0x328] sm:$0xff] }
  0xba   :  { %1264 = vmatprep.subr.bf16.mxu0 %v412_v35  ;;  %1428 = vmatprep.subr.bf16.mxu1 %v414_v2  ;;  %v474_v35 = vunpack.c.h.s8.bf16 %v201_v36  ;;  %v476_v2 = vunpack.c.h.s8.bf16 %v203_v57  ;;  %v482_v3 = vunpack.c.l.s8.bf16 %v209_v0  ;;  %v484_v4 = vunpack.c.l.s8.bf16 %v211_v1 }
  0xbb   :  { %v489_v9 = vunpack.c.h.s8.bf16 %v209_v0  ;;  %v491_v10 = vunpack.c.h.s8.bf16 %v211_v1 }
  0xbd   :  { %1265 = vmatpush1.bf16.msra.mxu0 %v411_v5  ;;  %1429 = vmatpush1.bf16.msra.mxu1 %v413_v6  ;;  %v208_v5 = vld [vmem:[#allocation5 + $0x310] sm:$0xff]  ;;  %v210_v6 = vld [vmem:[#allocation5 + $0x320] sm:$0xff] }
  0xbe   :  { %1266 = vmatprep.subr.bf16.mxu0 %v419_v7  ;;  %1430 = vmatprep.subr.bf16.mxu1 %v421_v8  ;;  %v481_v7 = vunpack.c.l.s8.bf16 %v208_v5  ;;  %v483_v8 = vunpack.c.l.s8.bf16 %v210_v6 }
  0xc1   :  { %1267 = vmatpush1.bf16.msra.mxu0 %v418_v11  ;;  %1431 = vmatpush1.bf16.msra.mxu1 %v420_v12  ;;  %v216_v11 = vld [vmem:[#allocation5 + $0x350] sm:$0xff]  ;;  %v218_v12 = vld [vmem:[#allocation5 + $0x360] sm:$0xff] }
  0xc2   :  { %1268 = vmatprep.subr.bf16.mxu0 %v426_v13  ;;  %1432 = vmatprep.subr.bf16.mxu1 %v428_v14  ;;  %v488_v13 = vunpack.c.h.s8.bf16 %v208_v5  ;;  %v490_v14 = vunpack.c.h.s8.bf16 %v210_v6  ;;  %v496_v15 = vunpack.c.l.s8.bf16 %v216_v11  ;;  %v498_v16 = vunpack.c.l.s8.bf16 %v218_v12 }
  0xc3   :  { %v503_v21 = vunpack.c.h.s8.bf16 %v216_v11  ;;  %v505_v22 = vunpack.c.h.s8.bf16 %v218_v12 }
  0xc5   :  { %1269 = vmatpush1.bf16.msra.mxu0 %v425_v17  ;;  %1433 = vmatpush1.bf16.msra.mxu1 %v427_v18  ;;  %v215_v17 = vld [vmem:[#allocation5 + $0x348] sm:$0xff]  ;;  %v217_v18 = vld [vmem:[#allocation5 + $0x358] sm:$0xff] }
  0xc6   :  { %1270 = vmatprep.subr.bf16.mxu0 %v433_v19  ;;  %1434 = vmatprep.subr.bf16.mxu1 %v435_v20  ;;  %v495_v19 = vunpack.c.l.s8.bf16 %v215_v17  ;;  %v497_v20 = vunpack.c.l.s8.bf16 %v217_v18 }
  0xc9   :  { %1271 = vmatpush1.bf16.msra.mxu0 %v432_v23  ;;  %1435 = vmatpush1.bf16.msra.mxu1 %v434_v24  ;;  %v223_v23 = vld [vmem:[#allocation5 + $0x388] sm:$0xff]  ;;  %v225_v24 = vld [vmem:[#allocation5 + $0x398] sm:$0xff] }
  0xca   :  { %1272 = vmatprep.subr.bf16.mxu0 %v440_v25  ;;  %1436 = vmatprep.subr.bf16.mxu1 %v442_v27  ;;  %v502_v25 = vunpack.c.h.s8.bf16 %v215_v17  ;;  %v504_v27 = vunpack.c.h.s8.bf16 %v217_v18  ;;  %v510_v28 = vunpack.c.l.s8.bf16 %v223_v23  ;;  %v512_v29 = vunpack.c.l.s8.bf16 %v225_v24 }
  0xcb   :  { %v517_v37 = vunpack.c.h.s8.bf16 %v223_v23 }
  0xcd   :  { %1273 = vmatpush1.bf16.msra.mxu0 %v439_v30  ;;  %1437 = vmatpush1.bf16.msra.mxu1 %v441_v31  ;;  %v222_v30 = vld [vmem:[#allocation5 + $0x380] sm:$0xff]  ;;  %v224_v31 = vld [vmem:[#allocation5 + $0x390] sm:$0xff] }
  0xce   :  { %1274 = vmatprep.subr.bf16.mxu0 %v447_v32  ;;  %1438 = vmatprep.subr.bf16.mxu1 %v449_v33  ;;  %v3615_v32 = vcombine.high %v3597_v56, %v3597_v56  ;;  %v509_v33 = vunpack.c.l.s8.bf16 %v222_v30  ;;  %v511_v34 = vunpack.c.l.s8.bf16 %v224_v31  ;;  %v518_v43 = vunpack.c.h.s8.bf16 %v224_v31 }
  0xd1   :  { %1275 = vmatpush1.bf16.msra.mxu0 %v446_v38  ;;  %1439 = vmatpush1.bf16.msra.mxu1 %v448_v39  ;;  %v519_v38 = vunpack.c.h.s8.bf16 %v225_v24  ;;  %v230_v39 = vld [vmem:[#allocation5 + $0x3c0] sm:$0xff] }
  0xd2   :  { %1276 = vmatprep.subr.bf16.mxu0 %v454_v40  ;;  %1440 = vmatprep.subr.bf16.mxu1 %v456_v42  ;;  %v232_v40 = vld [vmem:[#allocation5 + $0x3d0] sm:$0xff]  ;;  %v516_v42 = vunpack.c.h.s8.bf16 %v222_v30  ;;  %v524_v44 = vunpack.c.l.s8.bf16 %v230_v39  ;;  %v531_v50 = vunpack.c.h.s8.bf16 %v230_v39 }
  0xd5   :  { %1277 = vmatpush1.bf16.msra.mxu0 %v453_v45  ;;  %1441 = vmatpush1.bf16.msra.mxu1 %v455_v46  ;;  %v526_v45 = vunpack.c.l.s8.bf16 %v232_v40  ;;  %v229_v46 = vld [vmem:[#allocation5 + $0x3b8] sm:$0xff] }
  0xd6   :  { %1278 = vmatprep.subr.bf16.mxu0 %v461_v47  ;;  %1442 = vmatprep.subr.bf16.mxu1 %v463_v48  ;;  %v231_v47 = vld [vmem:[#allocation5 + $0x3c8] sm:$0xff]  ;;  %v523_v48 = vunpack.c.l.s8.bf16 %v229_v46 }
  0xd7   :  { %v525_v49 = vunpack.c.l.s8.bf16 %v231_v47  ;;  %v532_v36 = vunpack.c.h.s8.bf16 %v231_v47 }
  0xd9   :  { %1279 = vmatpush1.bf16.msra.mxu0 %v460_v52  ;;  %1443 = vmatpush1.bf16.msra.mxu1 %v462_v53  ;;  %v533_v52 = vunpack.c.h.s8.bf16 %v232_v40  ;;  %v237_v53 = vld [vmem:[#allocation5 + $0x3f8] sm:$0xff] }
  0xda   :  { %1280 = vmatprep.subr.bf16.mxu0 %v468_v54  ;;  %1444 = vmatprep.subr.bf16.mxu1 %v470_v55  ;;  %v239_v54 = vld [vmem:[#allocation5 + $0x408] sm:$0xff]  ;;  %v530_v55 = vunpack.c.h.s8.bf16 %v229_v46  ;;  %v538_v57 = vunpack.c.l.s8.bf16 %v237_v53  ;;  %v545_v1 = vunpack.c.h.s8.bf16 %v237_v53 }
  0xdd   :  { %1281 = vmatpush1.bf16.msra.mxu0 %v467_v60  ;;  %1445 = vmatpush1.bf16.msra.mxu1 %v469_v61  ;;  %v540_v60 = vunpack.c.l.s8.bf16 %v239_v54  ;;  %v236_v61 = vld [vmem:[#allocation5 + $0x3f0] sm:$0xff] }
  0xde   :  { %1282 = vmatprep.subr.bf16.mxu0 %v475_v62  ;;  %1446 = vmatprep.subr.bf16.mxu1 %v477_v63  ;;  %v238_v62 = vld [vmem:[#allocation5 + $0x400] sm:$0xff]  ;;  %v537_v63 = vunpack.c.l.s8.bf16 %v236_v61 }
  0xdf   :  { %v539_v0 = vunpack.c.l.s8.bf16 %v238_v62  ;;  %v546_v5 = vunpack.c.h.s8.bf16 %v238_v62 }
  0xe1   :  { %1283 = vmatpush1.bf16.msra.mxu0 %v474_v35  ;;  %1447 = vmatpush1.bf16.msra.mxu1 %v476_v2  ;;  %v547_v35 = vunpack.c.h.s8.bf16 %v239_v54  ;;  %v244_v2 = vld [vmem:[#allocation5 + $0x430] sm:$0xff] }
  0xe2   :  { %1284 = vmatprep.subr.bf16.mxu0 %v482_v3  ;;  %1448 = vmatprep.subr.bf16.mxu1 %v484_v4  ;;  %v246_v3 = vld [vmem:[#allocation5 + $0x440] sm:$0xff]  ;;  %v544_v4 = vunpack.c.h.s8.bf16 %v236_v61  ;;  %v552_v6 = vunpack.c.l.s8.bf16 %v244_v2  ;;  %v559_v12 = vunpack.c.h.s8.bf16 %v244_v2 }
  0xe5   :  { %1285 = vmatpush1.bf16.msra.mxu0 %v481_v7  ;;  %1449 = vmatpush1.bf16.msra.mxu1 %v483_v8  ;;  %v554_v7 = vunpack.c.l.s8.bf16 %v246_v3  ;;  %v243_v8 = vld [vmem:[#allocation5 + $0x428] sm:$0xff] }
  0xe6   :  { %1286 = vmatprep.subr.bf16.mxu0 %v489_v9  ;;  %1450 = vmatprep.subr.bf16.mxu1 %v491_v10  ;;  %v245_v9 = vld [vmem:[#allocation5 + $0x438] sm:$0xff]  ;;  %v551_v10 = vunpack.c.l.s8.bf16 %v243_v8 }
  0xe7   :  { %v553_v11 = vunpack.c.l.s8.bf16 %v245_v9  ;;  %v560_v17 = vunpack.c.h.s8.bf16 %v245_v9 }
  0xe9   :  { %1287 = vmatpush1.bf16.msra.mxu0 %v488_v13  ;;  %1451 = vmatpush1.bf16.msra.mxu1 %v490_v14  ;;  %v561_v13 = vunpack.c.h.s8.bf16 %v246_v3  ;;  %v251_v14 = vld [vmem:[#allocation5 + $0x468] sm:$0xff] }
  0xea   :  { %1288 = vmatprep.subr.bf16.mxu0 %v496_v15  ;;  %1452 = vmatprep.subr.bf16.mxu1 %v498_v16  ;;  %v253_v15 = vld [vmem:[#allocation5 + $0x478] sm:$0xff]  ;;  %v558_v16 = vunpack.c.h.s8.bf16 %v243_v8  ;;  %v566_v18 = vunpack.c.l.s8.bf16 %v251_v14  ;;  %v573_v24 = vunpack.c.h.s8.bf16 %v251_v14 }
  0xed   :  { %1289 = vmatpush1.bf16.msra.mxu0 %v495_v19  ;;  %1453 = vmatpush1.bf16.msra.mxu1 %v497_v20  ;;  %v568_v19 = vunpack.c.l.s8.bf16 %v253_v15  ;;  %v250_v20 = vld [vmem:[#allocation5 + $0x460] sm:$0xff] }
  0xee   :  { %1290 = vmatprep.subr.bf16.mxu0 %v503_v21  ;;  %1454 = vmatprep.subr.bf16.mxu1 %v505_v22  ;;  %v252_v21 = vld [vmem:[#allocation5 + $0x470] sm:$0xff]  ;;  %v565_v22 = vunpack.c.l.s8.bf16 %v250_v20 }
  0xef   :  { %v567_v23 = vunpack.c.l.s8.bf16 %v252_v21  ;;  %v574_v30 = vunpack.c.h.s8.bf16 %v252_v21 }
  0xf1   :  { %1291 = vmatpush1.bf16.msra.mxu0 %v502_v25  ;;  %1455 = vmatpush1.bf16.msra.mxu1 %v504_v27  ;;  %v575_v25 = vunpack.c.h.s8.bf16 %v253_v15  ;;  %v258_v27 = vld [vmem:[#allocation5 + $0x4a0] sm:$0xff] }
  0xf2   :  { %1301 = vmatprep.subr.bf16.mxu0 %v510_v28  ;;  %1465 = vmatprep.subr.bf16.mxu1 %v512_v29  ;;  %v260_v28 = vld [vmem:[#allocation5 + $0x4b0] sm:$0xff]  ;;  %v572_v29 = vunpack.c.h.s8.bf16 %v250_v20  ;;  %v580_v31 = vunpack.c.l.s8.bf16 %v258_v27  ;;  %v587_v40 = vunpack.c.h.s8.bf16 %v258_v27  ;;  %v3627_v27 = vcombine.high %v3600_v58, %v3600_v58 }
  0xf4   :  { %1293 = vmatmul.mubr.bf16.vlgmr.msra.gmra.mrb[0].mxu0 %v3615_v32  ;;  %1457 = vmatmul.mubr.bf16.vlgmr.msra.gmra.mrb[0].mxu1 %v3615_v32 }
  0xf5   :  { %1302 = vmatpush1.bf16.msra.mxu0 %v509_v33  ;;  %1466 = vmatpush1.bf16.msra.mxu1 %v511_v34  ;;  %v582_v33 = vunpack.c.l.s8.bf16 %v260_v28  ;;  %v257_v34 = vld [vmem:[#allocation5 + $0x498] sm:$0xff] }
  0xf6   :  { %1303 = vmatprep.subr.bf16.mxu0 %v517_v37  ;;  %1467 = vmatprep.subr.bf16.mxu1 %v519_v38  ;;  %v259_v37 = vld [vmem:[#allocation5 + $0x4a8] sm:$0xff]  ;;  %v579_v38 = vunpack.c.l.s8.bf16 %v257_v34 }
  0xf7   :  { %1333 = vmatprep.mubr.bf16.mxu0 %v3603_v59  ;;  %1497 = vmatprep.mubr.bf16.mxu1 %v3603_v59  ;;  %v581_v39 = vunpack.c.l.s8.bf16 %v259_v37  ;;  %v588_v46 = vunpack.c.h.s8.bf16 %v259_v37 }
  0xf9   :  { %1304 = vmatpush1.bf16.msra.mxu0 %v516_v42  ;;  %1468 = vmatpush1.bf16.msra.mxu1 %v518_v43  ;;  %v589_v42 = vunpack.c.h.s8.bf16 %v260_v28  ;;  %v265_v43 = vld [vmem:[#allocation5 + $0x4d8] sm:$0xff] }
  0xfa   :  { %1305 = vmatprep.subr.bf16.mxu0 %v524_v44  ;;  %1469 = vmatprep.subr.bf16.mxu1 %v526_v45  ;;  %v267_v44 = vld [vmem:[#allocation5 + $0x4e8] sm:$0xff]  ;;  %v586_v45 = vunpack.c.h.s8.bf16 %v257_v34  ;;  %v594_v47 = vunpack.c.l.s8.bf16 %v265_v43  ;;  %v601_v54 = vunpack.c.h.s8.bf16 %v265_v43 }
  0xfb   :  { %v151_v34 = vld [vmem:[#allocation5 + $0x148] sm:$0xff] }
  0xfc   :  { %v123_v43 = vld [vmem:[#allocation5 + $0x68] sm:$0xff] }
  0xfd   :  { %1306 = vmatpush1.bf16.msra.mxu0 %v523_v48  ;;  %1470 = vmatpush1.bf16.msra.mxu1 %v525_v49  ;;  %v596_v48 = vunpack.c.l.s8.bf16 %v267_v44  ;;  %v264_v49 = vld [vmem:[#allocation5 + $0x4d0] sm:$0xff] }
  0xfe   :  { %1307 = vmatprep.subr.bf16.mxu0 %v531_v50  ;;  %1471 = vmatprep.subr.bf16.mxu1 %v533_v52  ;;  %v266_v50 = vld [vmem:[#allocation5 + $0x4e0] sm:$0xff]  ;;  %v593_v52 = vunpack.c.l.s8.bf16 %v264_v49 }
  0xff   :  { %v595_v53 = vunpack.c.l.s8.bf16 %v266_v50  ;;  %v602_v61 = vunpack.c.h.s8.bf16 %v266_v50 }
 0x101   :  { %1308 = vmatpush1.bf16.msra.mxu0 %v530_v55  ;;  %1472 = vmatpush1.bf16.msra.mxu1 %v532_v36  ;;  %v603_v55 = vunpack.c.h.s8.bf16 %v267_v44  ;;  %v272_v36 = vld [vmem:[#allocation5 + $0x510] sm:$0xff] }
 0x102   :  { %1309 = vmatprep.subr.bf16.mxu0 %v538_v57  ;;  %1473 = vmatprep.subr.bf16.mxu1 %v540_v60  ;;  %v274_v57 = vld [vmem:[#allocation5 + $0x520] sm:$0xff]  ;;  %v600_v60 = vunpack.c.h.s8.bf16 %v264_v49  ;;  %v608_v62 = vunpack.c.l.s8.bf16 %v272_v36  ;;  %v615_v3 = vunpack.c.h.s8.bf16 %v272_v36 }
 0x103   :  { %v158_v49 = vld [vmem:[#allocation5 + $0x180] sm:$0xff] }
 0x104   :  { %v130_v36 = vld [vmem:[#allocation5 + $0xa0] sm:$0xff] }
 0x105   :  { %1310 = vmatpush1.bf16.msra.mxu0 %v537_v63  ;;  %1474 = vmatpush1.bf16.msra.mxu1 %v539_v0  ;;  %v610_v63 = vunpack.c.l.s8.bf16 %v274_v57  ;;  %v271_v0 = vld [vmem:[#allocation5 + $0x508] sm:$0xff] }
 0x106   :  { %1311 = vmatprep.subr.bf16.mxu0 %v545_v1  ;;  %1475 = vmatprep.subr.bf16.mxu1 %v547_v35  ;;  %v273_v1 = vld [vmem:[#allocation5 + $0x518] sm:$0xff]  ;;  %v607_v35 = vunpack.c.l.s8.bf16 %v271_v0 }
 0x107   :  { %v609_v2 = vunpack.c.l.s8.bf16 %v273_v1  ;;  %v616_v8 = vunpack.c.h.s8.bf16 %v273_v1 }
 0x109   :  { %1312 = vmatpush1.bf16.msra.mxu0 %v544_v4  ;;  %1476 = vmatpush1.bf16.msra.mxu1 %v546_v5  ;;  %v617_v4 = vunpack.c.h.s8.bf16 %v274_v57  ;;  %v281_v5 = vld [vmem:[#allocation5 + $0x558] sm:$0xff] }
 0x10a   :  { %1313 = vmatprep.subr.bf16.mxu0 %v552_v6  ;;  %1477 = vmatprep.subr.bf16.mxu1 %v554_v7  ;;  %v279_v6 = vld [vmem:[#allocation5 + $0x548] sm:$0xff]  ;;  %v614_v7 = vunpack.c.h.s8.bf16 %v271_v0  ;;  %v624_v9 = vunpack.c.l.s8.bf16 %v281_v5  ;;  %v631_v15 = vunpack.c.h.s8.bf16 %v281_v5  ;;  %v165_v0 = vld [vmem:[#allocation5 + $0x1b8] sm:$0xff] }
 0x10b   :  { %v137_v5 = vld [vmem:[#allocation5 + $0xd8] sm:$0xff] }
 0x10d   :  { %1314 = vmatpush1.bf16.msra.mxu0 %v551_v10  ;;  %1478 = vmatpush1.bf16.msra.mxu1 %v553_v11  ;;  %v280_v10 = vld [vmem:[#allocation5 + $0x550] sm:$0xff]  ;;  %v622_v11 = vunpack.c.l.s8.bf16 %v279_v6 }
 0x10e   :  { %1315 = vmatprep.subr.bf16.mxu0 %v559_v12  ;;  %1479 = vmatprep.subr.bf16.mxu1 %v561_v13  ;;  %v278_v12 = vld [vmem:[#allocation5 + $0x540] sm:$0xff]  ;;  %v623_v13 = vunpack.c.l.s8.bf16 %v280_v10 }
 0x10f   :  { %v621_v14 = vunpack.c.l.s8.bf16 %v278_v12  ;;  %v628_v20 = vunpack.c.h.s8.bf16 %v278_v12 }
 0x111   :  { %1316 = vmatpush1.bf16.msra.mxu0 %v558_v16  ;;  %1480 = vmatpush1.bf16.msra.mxu1 %v560_v17  ;;  %v629_v16 = vunpack.c.h.s8.bf16 %v279_v6  ;;  %v115_v17 = vld [vmem:[#allocation5 + $0x28] sm:$0xff] }
 0x112   :  { %1317 = vmatprep.subr.bf16.mxu0 %v566_v18  ;;  %1481 = vmatprep.subr.bf16.mxu1 %v568_v19  ;;  %v144_v18 = vld [vmem:[#allocation5 + $0x110] sm:$0xff]  ;;  %v630_v19 = vunpack.c.h.s8.bf16 %v280_v10  ;;  %v290_v21 = vunpack.c.l.s8.bf16 %v115_v17  ;;  %v143_v10 = vld [vmem:[#allocation5 + $0x108] sm:$0xff] }
 0x115   :  { %1318 = vmatpush1.bf16.msra.mxu0 %v565_v22  ;;  %1482 = vmatpush1.bf16.msra.mxu1 %v567_v23  ;;  %v347_v22 = vunpack.c.l.s8.bf16 %v144_v18  ;;  %v3440_v23 = vmov 0  }
 0x116   :  { %1319 = vmatprep.subr.bf16.mxu0 %v573_v24  ;;  %1483 = vmatprep.subr.bf16.mxu1 %v575_v25  ;;  %v114_v24 = vld [vmem:[#allocation5 + $0x20] sm:$0xff]  ;;  %v116_v25 = vld [vmem:[#allocation5 + $0x30] sm:$0xff] }
 0x117   :  { %v289_v28 = vunpack.c.l.s8.bf16 %v114_v24  ;;  %v296_v37 = vunpack.c.h.s8.bf16 %v114_v24  ;;  %v207_v24 = vld [vmem:[#allocation5 + $0x308] sm:$0xff] }
 0x119   :  { %1320 = vmatpush1.bf16.msra.mxu0 %v572_v29  ;;  %1484 = vmatpush1.bf16.msra.mxu1 %v574_v30  ;;  %v291_v29 = vunpack.c.l.s8.bf16 %v116_v25  ;;  %v297_v30 = vunpack.c.h.s8.bf16 %v115_v17  ;;  %v172_v17 = vld [vmem:[#allocation5 + $0x1f0] sm:$0xff] }
 0x11a   :  { %1321 = vmatprep.subr.bf16.mxu0 %v580_v31  ;;  %1485 = vmatprep.subr.bf16.mxu1 %v582_v33  ;;  %v354_v31 = vunpack.c.h.s8.bf16 %v144_v18  ;;  %v122_v33 = vld [vmem:[#allocation5 + $0x60] sm:$0xff] }
 0x11d   :  { %1322 = vmatpush1.bf16.msra.mxu0 %v579_v38  ;;  %1486 = vmatpush1.bf16.msra.mxu1 %v581_v39  ;;  %v298_v38 = vunpack.c.h.s8.bf16 %v116_v25  ;;  %v304_v39 = vunpack.c.l.s8.bf16 %v122_v33 }
 0x11e   :  { %1323 = vmatprep.subr.bf16.mxu0 %v587_v40  ;;  %1487 = vmatprep.subr.bf16.mxu1 %v589_v42  ;;  %v361_v40 = vunpack.c.l.s8.bf16 %v151_v34  ;;  %v121_v42 = vld [vmem:[#allocation5 + $0x58] sm:$0xff] }
 0x11f   :  { %v303_v44 = vunpack.c.l.s8.bf16 %v121_v42  ;;  %v310_v50 = vunpack.c.h.s8.bf16 %v121_v42  ;;  %v214_v42 = vld [vmem:[#allocation5 + $0x340] sm:$0xff] }
 0x121   :  { %1324 = vmatpush1.bf16.msra.mxu0 %v586_v45  ;;  %1488 = vmatpush1.bf16.msra.mxu1 %v588_v46  ;;  %v305_v45 = vunpack.c.l.s8.bf16 %v123_v43  ;;  %v311_v46 = vunpack.c.h.s8.bf16 %v122_v33  ;;  %v179_v33 = vld [vmem:[#allocation5 + $0x228] sm:$0xff] }
 0x122   :  { %1325 = vmatprep.subr.bf16.mxu0 %v594_v47  ;;  %1489 = vmatprep.subr.bf16.mxu1 %v596_v48  ;;  %v368_v47 = vunpack.c.h.s8.bf16 %v151_v34  ;;  %v129_v48 = vld [vmem:[#allocation5 + $0x98] sm:$0xff] }
 0x125   :  { %1326 = vmatpush1.bf16.msra.mxu0 %v593_v52  ;;  %1490 = vmatpush1.bf16.msra.mxu1 %v595_v53  ;;  %v312_v52 = vunpack.c.h.s8.bf16 %v123_v43  ;;  %v318_v53 = vunpack.c.l.s8.bf16 %v129_v48 }
 0x126   :  { %1327 = vmatprep.subr.bf16.mxu0 %v601_v54  ;;  %1491 = vmatprep.subr.bf16.mxu1 %v603_v55  ;;  %v375_v54 = vunpack.c.l.s8.bf16 %v158_v49  ;;  %v128_v55 = vld [vmem:[#allocation5 + $0x90] sm:$0xff] }
 0x127   :  { %v317_v57 = vunpack.c.l.s8.bf16 %v128_v55  ;;  %v324_v1 = vunpack.c.h.s8.bf16 %v128_v55  ;;  %v221_v55 = vld [vmem:[#allocation5 + $0x378] sm:$0xff] }
 0x129   :  { %1328 = vmatpush1.bf16.msra.mxu0 %v600_v60  ;;  %1492 = vmatpush1.bf16.msra.mxu1 %v602_v61  ;;  %v319_v60 = vunpack.c.l.s8.bf16 %v130_v36  ;;  %v325_v61 = vunpack.c.h.s8.bf16 %v129_v48  ;;  %v186_v48 = vld [vmem:[#allocation5 + $0x260] sm:$0xff] }
 0x12a   :  { %1329 = vmatprep.subr.bf16.mxu0 %v608_v62  ;;  %1493 = vmatprep.subr.bf16.mxu1 %v610_v63  ;;  %v382_v62 = vunpack.c.h.s8.bf16 %v158_v49  ;;  %v136_v63 = vld [vmem:[#allocation5 + $0xd0] sm:$0xff] }
 0x12d   :  { %1330 = vmatpush1.bf16.msra.mxu0 %v607_v35  ;;  %1494 = vmatpush1.bf16.msra.mxu1 %v609_v2  ;;  %v326_v35 = vunpack.c.h.s8.bf16 %v130_v36  ;;  %v332_v2 = vunpack.c.l.s8.bf16 %v136_v63 }
 0x12e   :  { %1331 = vmatprep.subr.bf16.mxu0 %v615_v3  ;;  %1495 = vmatprep.subr.bf16.mxu1 %v617_v4  ;;  %v389_v3 = vunpack.c.l.s8.bf16 %v165_v0  ;;  %v135_v4 = vld [vmem:[#allocation5 + $0xc8] sm:$0xff] }
 0x12f   :  { %v331_v6 = vunpack.c.l.s8.bf16 %v135_v4  ;;  %v338_v12 = vunpack.c.h.s8.bf16 %v135_v4  ;;  %v256_v4 = vld [vmem:[#allocation5 + $0x490] sm:$0xff] }
 0x131   :  { %1332 = vmatpush1.bf16.msra.mxu0 %v614_v7  ;;  %1496 = vmatpush1.bf16.msra.mxu1 %v616_v8  ;;  %v333_v7 = vunpack.c.l.s8.bf16 %v137_v5  ;;  %v339_v8 = vunpack.c.h.s8.bf16 %v136_v63  ;;  %v193_v63 = vld [vmem:[#allocation5 + $0x298] sm:$0xff] }
 0x132   :  { %1506 = vmatprep.subr.bf16.mxu1 %v624_v9  ;;  %1342 = vmatprep.subr.bf16.mxu0 %v622_v11  ;;  %v396_v9 = vunpack.c.h.s8.bf16 %v165_v0  ;;  %v200_v11 = vld [vmem:[#allocation5 + $0x2d0] sm:$0xff] }
 0x134   :  { %1334 = vmatmul.mubr.bf16.vlgmr.msra.gmra.mrb[0].mxu0 %v3600_v58  ;;  %1498 = vmatmul.mubr.bf16.vlgmr.msra.gmra.mrb[0].mxu1 %v3600_v58 }
 0x135   :  { %1507 = vmatpush1.bf16.msra.mxu1 %v623_v13  ;;  %1343 = vmatpush1.bf16.msra.mxu0 %v621_v14  ;;  %v340_v13 = vunpack.c.h.s8.bf16 %v137_v5  ;;  %v346_v14 = vunpack.c.l.s8.bf16 %v143_v10 }
 0x136   :  { %1508 = vmatprep.subr.bf16.mxu1 %v631_v15  ;;  %1344 = vmatprep.subr.bf16.mxu0 %v629_v16  ;;  %v459_v15 = vunpack.c.l.s8.bf16 %v200_v11  ;;  %v142_v16 = vld [vmem:[#allocation5 + $0x100] sm:$0xff] }
 0x137   :  { %1374 = vmatprep.mubr.bf16.mxu0 %v3440_v23  ;;  %1538 = vmatprep.mubr.bf16.mxu1 %v3440_v23  ;;  %v345_v18 = vunpack.c.l.s8.bf16 %v142_v16  ;;  %v352_v25 = vunpack.c.h.s8.bf16 %v142_v16  ;;  %v263_v16 = vld [vmem:[#allocation5 + $0x4c8] sm:$0xff] }
 0x139   :  { %1509 = vmatpush1.bf16.msra.mxu1 %v630_v19  ;;  %1345 = vmatpush1.bf16.msra.mxu0 %v628_v20  ;;  %v403_v19 = vunpack.c.l.s8.bf16 %v172_v17  ;;  %v353_v20 = vunpack.c.h.s8.bf16 %v143_v10  ;;  %v228_v10 = vld [vmem:[#allocation5 + $0x3b0] sm:$0xff] }
 0x13a   :  { %1547 = vmatprep.subr.bf16.mxu0 %v290_v21  ;;  %2961 = vmatprep.subr.bf16.mxu1 %v347_v22  ;;  %v466_v21 = vunpack.c.h.s8.bf16 %v200_v11  ;;  %v150_v22 = vld [vmem:[#allocation5 + $0x140] sm:$0xff] }
 0x140   :  { %2953 = vmatmul.mubr.msk.bf16.vlgmr.msra.gmra.mrb[0].mxu0 %vm1215_vm0, %v3627_v27  ;;  %2954 = vmatmul.mubr.msk.bf16.vlgmr.msra.gmra.mrb[0].mxu1 %vm1215_vm0, %v3627_v27 }
 0x141   :  { %1548 = vmatpush1.bf16.msra.mxu0 %v289_v28  ;;  %2962 = vmatpush3.bf16.msra.mxu1 %v291_v29  ;;  %v410_v28 = vunpack.c.h.s8.bf16 %v172_v17  ;;  %v360_v29 = vunpack.c.l.s8.bf16 %v150_v22 }
 0x142   :  { %1549 = vmatprep.subr.bf16.mxu0 %v297_v30  ;;  %2963 = vmatprep.subr.bf16.mxu1 %v354_v31  ;;  %v473_v30 = vunpack.c.l.s8.bf16 %v207_v24  ;;  %v149_v31 = vld [vmem:[#allocation5 + $0x138] sm:$0xff] }
 0x143   :  { %1743 = vmatprep.mubr.bf16.mxu1 %v3588_v51  ;;  %1579 = vmatprep.mubr.bf16.mxu0 %v3588_v51  ;;  %v359_v34 = vunpack.c.l.s8.bf16 %v149_v31  ;;  %v366_v43 = vunpack.c.h.s8.bf16 %v149_v31  ;;  %v270_v31 = vld [vmem:[#allocation5 + $0x500] sm:$0xff] }
 0x145   :  { %1550 = vmatpush1.bf16.msra.mxu0 %v296_v37  ;;  %2964 = vmatpush3.bf16.msra.mxu1 %v298_v38  ;;  %v417_v37 = vunpack.c.l.s8.bf16 %v179_v33  ;;  %v367_v38 = vunpack.c.h.s8.bf16 %v150_v22  ;;  %v235_v22 = vld [vmem:[#allocation5 + $0x3e8] sm:$0xff] }
 0x146   :  { %1551 = vmatprep.subr.bf16.mxu0 %v304_v39  ;;  %2965 = vmatprep.subr.bf16.mxu1 %v361_v40  ;;  %v480_v39 = vunpack.c.h.s8.bf16 %v207_v24  ;;  %v157_v40 = vld [vmem:[#allocation5 + $0x178] sm:$0xff] }
 0x149   :  { %1552 = vmatpush1.bf16.msra.mxu0 %v303_v44  ;;  %2966 = vmatpush3.bf16.msra.mxu1 %v305_v45  ;;  %v424_v44 = vunpack.c.h.s8.bf16 %v179_v33  ;;  %v374_v45 = vunpack.c.l.s8.bf16 %v157_v40 }
 0x14a   :  { %1553 = vmatprep.subr.bf16.mxu0 %v311_v46  ;;  %2967 = vmatprep.subr.bf16.mxu1 %v368_v47  ;;  %v487_v46 = vunpack.c.l.s8.bf16 %v214_v42  ;;  %v156_v47 = vld [vmem:[#allocation5 + $0x170] sm:$0xff] }
 0x14b   :  { %v373_v49 = vunpack.c.l.s8.bf16 %v156_v47  ;;  %v380_v36 = vunpack.c.h.s8.bf16 %v156_v47  ;;  %v277_v47 = vld [vmem:[#allocation5 + $0x538] sm:$0xff] }
 0x14d   :  { %1554 = vmatpush1.bf16.msra.mxu0 %v310_v50  ;;  %2968 = vmatpush3.bf16.msra.mxu1 %v312_v52  ;;  %v431_v50 = vunpack.c.l.s8.bf16 %v186_v48  ;;  %v381_v52 = vunpack.c.h.s8.bf16 %v157_v40  ;;  %v242_v40 = vld [vmem:[#allocation5 + $0x420] sm:$0xff] }
 0x14e   :  { %1555 = vmatprep.subr.bf16.mxu0 %v318_v53  ;;  %2969 = vmatprep.subr.bf16.mxu1 %v375_v54  ;;  %v494_v53 = vunpack.c.h.s8.bf16 %v214_v42  ;;  %v164_v54 = vld [vmem:[#allocation5 + $0x1b0] sm:$0xff] }
 0x151   :  { %1556 = vmatpush1.bf16.msra.mxu0 %v317_v57  ;;  %2970 = vmatpush3.bf16.msra.mxu1 %v319_v60  ;;  %v438_v57 = vunpack.c.h.s8.bf16 %v186_v48  ;;  %v388_v60 = vunpack.c.l.s8.bf16 %v164_v54 }
 0x152   :  { %1557 = vmatprep.subr.bf16.mxu0 %v325_v61  ;;  %2971 = vmatprep.subr.bf16.mxu1 %v382_v62  ;;  %v501_v61 = vunpack.c.l.s8.bf16 %v221_v55  ;;  %v163_v62 = vld [vmem:[#allocation5 + $0x1a8] sm:$0xff] }
 0x153   :  { %v387_v0 = vunpack.c.l.s8.bf16 %v163_v62  ;;  %v394_v5 = vunpack.c.h.s8.bf16 %v163_v62 }
 0x155   :  { %1558 = vmatpush1.bf16.msra.mxu0 %v324_v1  ;;  %2972 = vmatpush3.bf16.msra.mxu1 %v326_v35  ;;  %v445_v1 = vunpack.c.l.s8.bf16 %v193_v63  ;;  %v395_v35 = vunpack.c.h.s8.bf16 %v164_v54  ;;  %v249_v54 = vld [vmem:[#allocation5 + $0x458] sm:$0xff] }
 0x156   :  { %1559 = vmatprep.subr.bf16.mxu0 %v332_v2  ;;  %2973 = vmatprep.subr.bf16.mxu1 %v389_v3  ;;  %v508_v2 = vunpack.c.h.s8.bf16 %v221_v55  ;;  %v171_v3 = vld [vmem:[#allocation5 + $0x1e8] sm:$0xff] }
 0x159   :  { %1560 = vmatpush1.bf16.msra.mxu0 %v331_v6  ;;  %2974 = vmatpush3.bf16.msra.mxu1 %v333_v7  ;;  %v452_v6 = vunpack.c.h.s8.bf16 %v193_v63  ;;  %v402_v7 = vunpack.c.l.s8.bf16 %v171_v3  ;;  %v564_v63 = vunpack.c.h.s8.bf16 %v249_v54 }
 0x15a   :  { %1561 = vmatprep.subr.bf16.mxu0 %v339_v8  ;;  %2975 = vmatprep.subr.bf16.mxu1 %v396_v9  ;;  %v571_v8 = vunpack.c.l.s8.bf16 %v256_v4  ;;  %v170_v9 = vld [vmem:[#allocation5 + $0x1e0] sm:$0xff] }
 0x15b   :  { %v401_v11 = vunpack.c.l.s8.bf16 %v170_v9  ;;  %v408_v17 = vunpack.c.h.s8.bf16 %v170_v9 }
 0x15d   :  { %1562 = vmatpush1.bf16.msra.mxu0 %v338_v12  ;;  %2976 = vmatpush3.bf16.msra.mxu1 %v340_v13  ;;  %v515_v12 = vunpack.c.l.s8.bf16 %v228_v10  ;;  %v409_v13 = vunpack.c.h.s8.bf16 %v171_v3 }
 0x15e   :  { %1563 = vmatprep.subr.bf16.mxu0 %v346_v14  ;;  %2983 = vmatprep.subr.bf16.mxu1 %v459_v15  ;;  %v578_v14 = vunpack.c.h.s8.bf16 %v256_v4  ;;  %v178_v15 = vld [vmem:[#allocation5 + $0x220] sm:$0xff]  ;;  %v3441_v4 = vmov 0.0  }
 0x160   :  { %1744 = vmatmul.mubr.bf16.vlgmr.msra.gmra.mrb[4].mxu1 %v3597_v56 }
 0x161   :  { %1564 = vmatpush1.bf16.msra.mxu0 %v345_v18  ;;  %2984 = vmatpush3.bf16.msra.mxu1 %v403_v19  ;;  %v522_v18 = vunpack.c.h.s8.bf16 %v228_v10  ;;  %v416_v19 = vunpack.c.l.s8.bf16 %v178_v15 }
 0x162   :  { %1565 = vmatprep.subr.bf16.mxu0 %v353_v20  ;;  %2985 = vmatprep.subr.bf16.mxu1 %v466_v21  ;;  %v585_v20 = vunpack.c.l.s8.bf16 %v263_v16  ;;  %v177_v21 = vld [vmem:[#allocation5 + $0x218] sm:$0xff] }
 0x163   :  { %1783 = vmatprep.mubr.bf16.mxu1 %v3607_v41  ;;  %v415_v24 = vunpack.c.l.s8.bf16 %v177_v21  ;;  %v422_v33 = vunpack.c.h.s8.bf16 %v177_v21 }
 0x165   :  { %1566 = vmatpush1.bf16.msra.mxu0 %v352_v25  ;;  %2986 = vmatpush3.bf16.msra.mxu1 %v410_v28  ;;  %v529_v25 = vunpack.c.l.s8.bf16 %v235_v22  ;;  %v423_v28 = vunpack.c.h.s8.bf16 %v178_v15 }
 0x166   :  { %1567 = vmatprep.subr.bf16.mxu0 %v360_v29  ;;  %2987 = vmatprep.subr.bf16.mxu1 %v473_v30  ;;  %v592_v29 = vunpack.c.h.s8.bf16 %v263_v16  ;;  %v185_v30 = vld [vmem:[#allocation5 + $0x258] sm:$0xff] }
 0x169   :  { %1568 = vmatpush1.bf16.msra.mxu0 %v359_v34  ;;  %2988 = vmatpush3.bf16.msra.mxu1 %v417_v37  ;;  %v536_v34 = vunpack.c.h.s8.bf16 %v235_v22  ;;  %v430_v37 = vunpack.c.l.s8.bf16 %v185_v30 }
 0x16a   :  { %1569 = vmatprep.subr.bf16.mxu0 %v367_v38  ;;  %2989 = vmatprep.subr.bf16.mxu1 %v480_v39  ;;  %v599_v38 = vunpack.c.l.s8.bf16 %v270_v31  ;;  %v184_v39 = vld [vmem:[#allocation5 + $0x250] sm:$0xff] }
 0x16b   :  { %v429_v42 = vunpack.c.l.s8.bf16 %v184_v39  ;;  %v436_v48 = vunpack.c.h.s8.bf16 %v184_v39 }
 0x16d   :  { %1570 = vmatpush1.bf16.msra.mxu0 %v366_v43  ;;  %2990 = vmatpush3.bf16.msra.mxu1 %v424_v44  ;;  %v543_v43 = vunpack.c.l.s8.bf16 %v242_v40  ;;  %v437_v44 = vunpack.c.h.s8.bf16 %v185_v30 }
 0x16e   :  { %1571 = vmatprep.subr.bf16.mxu0 %v374_v45  ;;  %2991 = vmatprep.subr.bf16.mxu1 %v487_v46  ;;  %v606_v45 = vunpack.c.h.s8.bf16 %v270_v31  ;;  %v192_v46 = vld [vmem:[#allocation5 + $0x290] sm:$0xff] }
 0x171   :  { %1572 = vmatpush1.bf16.msra.mxu0 %v373_v49  ;;  %2992 = vmatpush3.bf16.msra.mxu1 %v431_v50  ;;  %v550_v49 = vunpack.c.h.s8.bf16 %v242_v40  ;;  %v444_v50 = vunpack.c.l.s8.bf16 %v192_v46 }
 0x172   :  { %1573 = vmatprep.subr.bf16.mxu0 %v381_v52  ;;  %2993 = vmatprep.subr.bf16.mxu1 %v494_v53  ;;  %v613_v52 = vunpack.c.l.s8.bf16 %v277_v47  ;;  %v191_v53 = vld [vmem:[#allocation5 + $0x288] sm:$0xff] }
 0x173   :  { %v443_v55 = vunpack.c.l.s8.bf16 %v191_v53  ;;  %v450_v62 = vunpack.c.h.s8.bf16 %v191_v53 }
 0x175   :  { %1574 = vmatpush1.bf16.msra.mxu0 %v380_v36  ;;  %2994 = vmatpush3.bf16.msra.mxu1 %v438_v57  ;;  %v557_v36 = vunpack.c.l.s8.bf16 %v249_v54  ;;  %v451_v57 = vunpack.c.h.s8.bf16 %v192_v46 }
 0x176   :  { %1575 = vmatprep.subr.bf16.mxu0 %v388_v60  ;;  %2995 = vmatprep.subr.bf16.mxu1 %v501_v61  ;;  %v620_v60 = vunpack.c.h.s8.bf16 %v277_v47  ;;  %v199_v61 = vld [vmem:[#allocation5 + $0x2c8] sm:$0xff] }
 0x179   :  { %1576 = vmatpush1.bf16.msra.mxu0 %v387_v0  ;;  %2996 = vmatpush3.bf16.msra.mxu1 %v445_v1  ;;  %v458_v0 = vunpack.c.l.s8.bf16 %v199_v61  ;;  %v198_v1 = vld [vmem:[#allocation5 + $0x2c0] sm:$0xff] }
 0x17a   :  { %1577 = vmatprep.subr.bf16.mxu0 %v395_v35  ;;  %2997 = vmatprep.subr.bf16.mxu1 %v508_v2  ;;  %v284_v35 = vld [vmem:[#allocation5 + $0x570] sm:$0xff]  ;;  %v457_v2 = vunpack.c.l.s8.bf16 %v198_v1 }
 0x17b   :  { %v627_v3 = vunpack.c.l.s8.bf16 %v284_v35  ;;  %v634_v9 = vunpack.c.h.s8.bf16 %v284_v35 }
 0x17d   :  { %1578 = vmatpush1.bf16.msra.mxu0 %v394_v5  ;;  %2998 = vmatpush3.bf16.msra.mxu1 %v452_v6  ;;  %v465_v5 = vunpack.c.h.s8.bf16 %v199_v61  ;;  %v206_v6 = vld [vmem:[#allocation5 + $0x300] sm:$0xff] }
 0x17e   :  { %1588 = vmatprep.subr.bf16.mxu0 %v402_v7  ;;  %3005 = vmatprep.subr.bf16.mxu1 %v571_v8  ;;  %v636_v7 = vld [vmem:[#allocation8 + $0x8] sm:$0xff]  ;;  %v464_v8 = vunpack.c.h.s8.bf16 %v198_v1  ;;  %v472_v10 = vunpack.c.l.s8.bf16 %v206_v6  ;;  %v479_v16 = vunpack.c.h.s8.bf16 %v206_v6  ;;  %v233_v6 = vld [vmem:[#allocation5 + $0x3d8] sm:$0xff] }
 0x17f   :  { %v664_v1 = vld [vmem:[#allocation8 + $0xe8] sm:$0xff] }
 0x180   :  { %1784 = vmatmul.mubr.bf16.vlgmr.msra.gmra.mrb[8].mxu1 %v3615_v32  ;;  %1580 = vmatmul.mubr.bf16.vlgmr.msra.gmra.mrb[4].mxu0 %v3597_v56 }
 0x181   :  { %1589 = vmatpush1.bf16.msra.mxu0 %v401_v11  ;;  %3006 = vmatpush3.bf16.msra.mxu1 %v515_v12  ;;  %v811_v11 = vunpack.c.l.s8.bf16 %v636_v7  ;;  %v205_v12 = vld [vmem:[#allocation5 + $0x2f8] sm:$0xff] }
 0x182   :  { %1590 = vmatprep.subr.bf16.mxu0 %v409_v13  ;;  %3007 = vmatprep.subr.bf16.mxu1 %v578_v14  ;;  %v635_v13 = vld [vmem:[#allocation8] sm:$0xff]  ;;  %v471_v14 = vunpack.c.l.s8.bf16 %v205_v12 }
 0x183   :  { %1823 = vmatprep.mubr.bf16.mxu1 %v3603_v59  ;;  %1620 = vmatprep.mubr.bf16.mxu0 %v3607_v41  ;;  %v810_v15 = vunpack.c.l.s8.bf16 %v635_v13  ;;  %v817_v21 = vunpack.c.h.s8.bf16 %v635_v13  ;;  %v671_v13 = vld [vmem:[#allocation8 + $0x120] sm:$0xff] }
 0x185   :  { %1591 = vmatpush1.bf16.msra.mxu0 %v408_v17  ;;  %3008 = vmatpush3.bf16.msra.mxu1 %v522_v18  ;;  %v818_v17 = vunpack.c.h.s8.bf16 %v636_v7  ;;  %v213_v18 = vld [vmem:[#allocation5 + $0x338] sm:$0xff]  ;;  %v663_v7 = vld [vmem:[#allocation8 + $0xe0] sm:$0xff] }
 0x186   :  { %1592 = vmatprep.subr.bf16.mxu0 %v416_v19  ;;  %3009 = vmatprep.subr.bf16.mxu1 %v585_v20  ;;  %v643_v19 = vld [vmem:[#allocation8 + $0x40] sm:$0xff]  ;;  %v478_v20 = vunpack.c.h.s8.bf16 %v205_v12  ;;  %v486_v22 = vunpack.c.l.s8.bf16 %v213_v18  ;;  %v493_v31 = vunpack.c.h.s8.bf16 %v213_v18  ;;  %v241_v12 = vld [vmem:[#allocation5 + $0x418] sm:$0xff]  ;;  %v240_v18 = vld [vmem:[#allocation5 + $0x410] sm:$0xff] }
 0x189   :  { %1593 = vmatpush1.bf16.msra.mxu0 %v415_v24  ;;  %3010 = vmatpush3.bf16.msra.mxu1 %v529_v25  ;;  %v825_v24 = vunpack.c.l.s8.bf16 %v643_v19  ;;  %v212_v25 = vld [vmem:[#allocation5 + $0x330] sm:$0xff] }
 0x18a   :  { %1594 = vmatprep.subr.bf16.mxu0 %v423_v28  ;;  %3011 = vmatprep.subr.bf16.mxu1 %v592_v29  ;;  %v642_v28 = vld [vmem:[#allocation8 + $0x38] sm:$0xff]  ;;  %v485_v29 = vunpack.c.l.s8.bf16 %v212_v25 }
 0x18b   :  { %v824_v30 = vunpack.c.l.s8.bf16 %v642_v28  ;;  %v831_v39 = vunpack.c.h.s8.bf16 %v642_v28  ;;  %v678_v28 = vld [vmem:[#allocation8 + $0x158] sm:$0xff] }
 0x18d   :  { %1595 = vmatpush1.bf16.msra.mxu0 %v422_v33  ;;  %3012 = vmatpush3.bf16.msra.mxu1 %v536_v34  ;;  %v832_v33 = vunpack.c.h.s8.bf16 %v643_v19  ;;  %v220_v34 = vld [vmem:[#allocation5 + $0x370] sm:$0xff]  ;;  %v670_v19 = vld [vmem:[#allocation8 + $0x118] sm:$0xff] }
 0x18e   :  { %1596 = vmatprep.subr.bf16.mxu0 %v430_v37  ;;  %3013 = vmatprep.subr.bf16.mxu1 %v599_v38  ;;  %v650_v37 = vld [vmem:[#allocation8 + $0x78] sm:$0xff]  ;;  %v492_v38 = vunpack.c.h.s8.bf16 %v212_v25  ;;  %v500_v40 = vunpack.c.l.s8.bf16 %v220_v34  ;;  %v507_v47 = vunpack.c.h.s8.bf16 %v220_v34  ;;  %v248_v25 = vld [vmem:[#allocation5 + $0x450] sm:$0xff]  ;;  %v247_v34 = vld [vmem:[#allocation5 + $0x448] sm:$0xff] }
 0x191   :  { %1597 = vmatpush1.bf16.msra.mxu0 %v429_v42  ;;  %3014 = vmatpush3.bf16.msra.mxu1 %v543_v43  ;;  %v839_v42 = vunpack.c.l.s8.bf16 %v650_v37  ;;  %v219_v43 = vld [vmem:[#allocation5 + $0x368] sm:$0xff] }
 0x192   :  { %1598 = vmatprep.subr.bf16.mxu0 %v437_v44  ;;  %3015 = vmatprep.subr.bf16.mxu1 %v606_v45  ;;  %v649_v44 = vld [vmem:[#allocation8 + $0x70] sm:$0xff]  ;;  %v499_v45 = vunpack.c.l.s8.bf16 %v219_v43 }
 0x193   :  { %v838_v46 = vunpack.c.l.s8.bf16 %v649_v44  ;;  %v845_v53 = vunpack.c.h.s8.bf16 %v649_v44  ;;  %v685_v44 = vld [vmem:[#allocation8 + $0x190] sm:$0xff] }
 0x195   :  { %1599 = vmatpush1.bf16.msra.mxu0 %v436_v48  ;;  %3016 = vmatpush3.bf16.msra.mxu1 %v550_v49  ;;  %v846_v48 = vunpack.c.h.s8.bf16 %v650_v37  ;;  %v227_v49 = vld [vmem:[#allocation5 + $0x3a8] sm:$0xff]  ;;  %v677_v37 = vld [vmem:[#allocation8 + $0x150] sm:$0xff] }
 0x196   :  { %1600 = vmatprep.subr.bf16.mxu0 %v444_v50  ;;  %3017 = vmatprep.subr.bf16.mxu1 %v613_v52  ;;  %v657_v50 = vld [vmem:[#allocation8 + $0xb0] sm:$0xff]  ;;  %v506_v52 = vunpack.c.h.s8.bf16 %v219_v43  ;;  %v514_v54 = vunpack.c.l.s8.bf16 %v227_v49  ;;  %v255_v43 = vld [vmem:[#allocation5 + $0x488] sm:$0xff] }
 0x199   :  { %1601 = vmatpush1.bf16.msra.mxu0 %v443_v55  ;;  %3018 = vmatpush3.bf16.msra.mxu1 %v557_v36  ;;  %v853_v55 = vunpack.c.l.s8.bf16 %v657_v50  ;;  %v226_v36 = vld [vmem:[#allocation5 + $0x3a0] sm:$0xff] }
 0x19a   :  { %1602 = vmatprep.subr.bf16.mxu0 %v451_v57  ;;  %3019 = vmatprep.subr.bf16.mxu1 %v620_v60  ;;  %v656_v57 = vld [vmem:[#allocation8 + $0xa8] sm:$0xff]  ;;  %v513_v60 = vunpack.c.l.s8.bf16 %v226_v36  ;;  %v520_v35 = vunpack.c.h.s8.bf16 %v226_v36  ;;  %v262_v36 = vld [vmem:[#allocation5 + $0x4c0] sm:$0xff] }
 0x19b   :  { %v852_v61 = vunpack.c.l.s8.bf16 %v656_v57 }
 0x19d   :  { %1603 = vmatpush1.bf16.msra.mxu0 %v450_v62  ;;  %3020 = vmatpush3.bf16.msra.mxu1 %v564_v63  ;;  %v521_v62 = vunpack.c.h.s8.bf16 %v227_v49  ;;  %v860_v63 = vunpack.c.h.s8.bf16 %v657_v50  ;;  %v254_v49 = vld [vmem:[#allocation5 + $0x480] sm:$0xff]  ;;  %v684_v50 = vld [vmem:[#allocation8 + $0x188] sm:$0xff] }
 0x19e   :  { %1604 = vmatprep.subr.bf16.mxu0 %v458_v0  ;;  %3099 = vmatprep.subr.bf16.mxu1 %v3441_v4  ;;  %v234_v0 = vld [vmem:[#allocation5 + $0x3e0] sm:$0xff] }
 0x1a0   :  { %1824 = vmatmul.mubr.bf16.vlgmr.msra.gmra.mrb[12].mxu1 %v3600_v58 }
 0x1a1   :  { %1605 = vmatpush1.bf16.msra.mxu0 %v457_v2  ;;  %3100 = vmatpush3.bf16.msra.mxu1 %v627_v3  ;;  %v859_v2 = vunpack.c.h.s8.bf16 %v656_v57  ;;  %v528_v3 = vunpack.c.l.s8.bf16 %v234_v0  ;;  %v692_v57 = vld [vmem:[#allocation8 + $0x1c8] sm:$0xff] }
 0x1a2   :  { %1606 = vmatprep.subr.bf16.mxu0 %v465_v5  ;;  %3101 = vmatprep.subr.bf16.mxu1 %v3441_v4  ;;  %v867_v5 = vunpack.c.l.s8.bf16 %v664_v1 }
 0x1a3   :  { %3103 = vmatprep.mubr.msk.bf16.mxu1 %vm3442_vm1, %v3441_v4 }
 0x1a5   :  { %1607 = vmatpush1.bf16.msra.mxu0 %v464_v8  ;;  %3102 = vmatpush3.bf16.msra.mxu1 %v634_v9  ;;  %v527_v8 = vunpack.c.l.s8.bf16 %v233_v6  ;;  %v866_v9 = vunpack.c.l.s8.bf16 %v663_v7 }
 0x1a6   :  { %1608 = vmatprep.subr.bf16.mxu0 %v472_v10  ;;  %1959 = vmatprep.subr.bf16.mxu1 %v811_v11  ;;  %v535_v10 = vunpack.c.h.s8.bf16 %v234_v0  ;;  %v874_v11 = vunpack.c.h.s8.bf16 %v664_v1  ;;  %v261_v0 = vld [vmem:[#allocation5 + $0x4b8] sm:$0xff]  ;;  %v691_v1 = vld [vmem:[#allocation8 + $0x1c0] sm:$0xff] }
 0x1a8   :  { %3104 = vmatmul.mubr.msk.bf16.vlgmr.msra.gmra.mrb[16].mxu1 %vm1215_vm0, %v3627_v27 }
 0x1a9   :  { %1609 = vmatpush1.bf16.msra.mxu0 %v471_v14  ;;  %1960 = vmatpush1.bf16.msra.mxu1 %v810_v15  ;;  %v534_v14 = vunpack.c.h.s8.bf16 %v233_v6  ;;  %v873_v15 = vunpack.c.h.s8.bf16 %v663_v7  ;;  %v269_v6 = vld [vmem:[#allocation5 + $0x4f8] sm:$0xff]  ;;  %v699_v7 = vld [vmem:[#allocation8 + $0x200] sm:$0xff] }
 0x1aa   :  { %1610 = vmatprep.subr.bf16.mxu0 %v479_v16  ;;  %1961 = vmatprep.subr.bf16.mxu1 %v818_v17  ;;  %v542_v16 = vunpack.c.l.s8.bf16 %v241_v12  ;;  %v881_v17 = vunpack.c.l.s8.bf16 %v671_v13 }
 0x1ab   :  { %1991 = vmatprep.mubr.bf16.mxu1 %v3588_v51 }
 0x1ad   :  { %1611 = vmatpush1.bf16.msra.mxu0 %v478_v20  ;;  %1962 = vmatpush1.bf16.msra.mxu1 %v817_v21  ;;  %v541_v20 = vunpack.c.l.s8.bf16 %v240_v18  ;;  %v880_v21 = vunpack.c.l.s8.bf16 %v670_v19 }
 0x1ae   :  { %1612 = vmatprep.subr.bf16.mxu0 %v486_v22  ;;  %1963 = vmatprep.subr.bf16.mxu1 %v825_v24  ;;  %v549_v22 = vunpack.c.h.s8.bf16 %v241_v12  ;;  %v888_v24 = vunpack.c.h.s8.bf16 %v671_v13  ;;  %v268_v12 = vld [vmem:[#allocation5 + $0x4f0] sm:$0xff]  ;;  %v698_v13 = vld [vmem:[#allocation8 + $0x1f8] sm:$0xff] }
 0x1b1   :  { %1613 = vmatpush1.bf16.msra.mxu0 %v485_v29  ;;  %1964 = vmatpush1.bf16.msra.mxu1 %v824_v30  ;;  %v548_v29 = vunpack.c.h.s8.bf16 %v240_v18  ;;  %v887_v30 = vunpack.c.h.s8.bf16 %v670_v19  ;;  %v276_v18 = vld [vmem:[#allocation5 + $0x530] sm:$0xff]  ;;  %v706_v19 = vld [vmem:[#allocation8 + $0x238] sm:$0xff] }
 0x1b2   :  { %1614 = vmatprep.subr.bf16.mxu0 %v493_v31  ;;  %1965 = vmatprep.subr.bf16.mxu1 %v832_v33  ;;  %v556_v31 = vunpack.c.l.s8.bf16 %v248_v25  ;;  %v895_v33 = vunpack.c.l.s8.bf16 %v678_v28 }
 0x1b5   :  { %1615 = vmatpush1.bf16.msra.mxu0 %v492_v38  ;;  %1966 = vmatpush1.bf16.msra.mxu1 %v831_v39  ;;  %v555_v38 = vunpack.c.l.s8.bf16 %v247_v34  ;;  %v894_v39 = vunpack.c.l.s8.bf16 %v677_v37 }
 0x1b6   :  { %1616 = vmatprep.subr.bf16.mxu0 %v500_v40  ;;  %1967 = vmatprep.subr.bf16.mxu1 %v839_v42  ;;  %v563_v40 = vunpack.c.h.s8.bf16 %v248_v25  ;;  %v902_v42 = vunpack.c.h.s8.bf16 %v678_v28  ;;  %v275_v25 = vld [vmem:[#allocation5 + $0x528] sm:$0xff]  ;;  %v705_v28 = vld [vmem:[#allocation8 + $0x230] sm:$0xff] }
 0x1b9   :  { %1617 = vmatpush1.bf16.msra.mxu0 %v499_v45  ;;  %1968 = vmatpush1.bf16.msra.mxu1 %v838_v46  ;;  %v562_v45 = vunpack.c.h.s8.bf16 %v247_v34  ;;  %v901_v46 = vunpack.c.h.s8.bf16 %v677_v37  ;;  %v713_v34 = vld [vmem:[#allocation8 + $0x270] sm:$0xff]  ;;  %v283_v37 = vld [vmem:[#allocation5 + $0x568] sm:$0xff] }
 0x1ba   :  { %1618 = vmatprep.subr.bf16.mxu0 %v507_v47  ;;  %1969 = vmatprep.subr.bf16.mxu1 %v846_v48  ;;  %v570_v47 = vunpack.c.l.s8.bf16 %v255_v43  ;;  %v909_v48 = vunpack.c.l.s8.bf16 %v685_v44 }
 0x1bd   :  { %1619 = vmatpush1.bf16.msra.mxu0 %v506_v52  ;;  %1970 = vmatpush1.bf16.msra.mxu1 %v845_v53  ;;  %v569_v52 = vunpack.c.l.s8.bf16 %v254_v49  ;;  %v908_v53 = vunpack.c.l.s8.bf16 %v684_v50 }
 0x1be   :  { %1629 = vmatprep.subr.bf16.mxu0 %v514_v54  ;;  %1971 = vmatprep.subr.bf16.mxu1 %v853_v55  ;;  %v577_v54 = vunpack.c.h.s8.bf16 %v255_v43  ;;  %v916_v55 = vunpack.c.h.s8.bf16 %v685_v44  ;;  %v626_v43 = vunpack.c.l.s8.bf16 %v283_v37  ;;  %v282_v44 = vld [vmem:[#allocation5 + $0x560] sm:$0xff] }
 0x1c0   :  { %1621 = vmatmul.mubr.bf16.vlgmr.msra.gmra.mrb[4].mxu0 %v3615_v32 }
 0x1c1   :  { %1630 = vmatpush1.bf16.msra.mxu0 %v513_v60  ;;  %1972 = vmatpush1.bf16.msra.mxu1 %v852_v61  ;;  %v576_v60 = vunpack.c.h.s8.bf16 %v254_v49  ;;  %v915_v61 = vunpack.c.h.s8.bf16 %v684_v50  ;;  %v720_v49 = vld [vmem:[#allocation8 + $0x2a8] sm:$0xff]  ;;  %v638_v50 = vld [vmem:[#allocation8 + $0x18] sm:$0xff] }
 0x1c2   :  { %1631 = vmatprep.subr.bf16.mxu0 %v521_v62  ;;  %1973 = vmatprep.subr.bf16.mxu1 %v860_v63  ;;  %v584_v62 = vunpack.c.l.s8.bf16 %v262_v36  ;;  %v923_v63 = vunpack.c.l.s8.bf16 %v692_v57 }
 0x1c3   :  { %1661 = vmatprep.mubr.bf16.mxu0 %v3603_v59 }
 0x1c5   :  { %1632 = vmatpush1.bf16.msra.mxu0 %v520_v35  ;;  %1974 = vmatpush1.bf16.msra.mxu1 %v859_v2  ;;  %v583_v35 = vunpack.c.l.s8.bf16 %v261_v0  ;;  %v922_v2 = vunpack.c.l.s8.bf16 %v691_v1 }
 0x1c6   :  { %1633 = vmatprep.subr.bf16.mxu0 %v528_v3  ;;  %1975 = vmatprep.subr.bf16.mxu1 %v867_v5  ;;  %v591_v3 = vunpack.c.h.s8.bf16 %v262_v36  ;;  %v930_v5 = vunpack.c.h.s8.bf16 %v692_v57  ;;  %v813_v36 = vunpack.c.l.s8.bf16 %v638_v50 }
 0x1c9   :  { %1634 = vmatpush1.bf16.msra.mxu0 %v527_v8  ;;  %1976 = vmatpush1.bf16.msra.mxu1 %v866_v9  ;;  %v590_v8 = vunpack.c.h.s8.bf16 %v261_v0  ;;  %v929_v9 = vunpack.c.h.s8.bf16 %v691_v1  ;;  %v820_v1 = vunpack.c.h.s8.bf16 %v638_v50 }
 0x1ca   :  { %1635 = vmatprep.subr.bf16.mxu0 %v535_v10  ;;  %1977 = vmatprep.subr.bf16.mxu1 %v874_v11  ;;  %v598_v10 = vunpack.c.l.s8.bf16 %v269_v6  ;;  %v937_v11 = vunpack.c.l.s8.bf16 %v699_v7 }
 0x1cd   :  { %1636 = vmatpush1.bf16.msra.mxu0 %v534_v14  ;;  %1978 = vmatpush1.bf16.msra.mxu1 %v873_v15  ;;  %v597_v14 = vunpack.c.l.s8.bf16 %v268_v12  ;;  %v936_v15 = vunpack.c.l.s8.bf16 %v698_v13 }
 0x1ce   :  { %1637 = vmatprep.subr.bf16.mxu0 %v542_v16  ;;  %1979 = vmatprep.subr.bf16.mxu1 %v881_v17  ;;  %v605_v16 = vunpack.c.h.s8.bf16 %v269_v6  ;;  %v944_v17 = vunpack.c.h.s8.bf16 %v699_v7  ;;  %v3661_v6 = vsub.s32 2, %v3574_v26 }
 0x1d1   :  { %1638 = vmatpush1.bf16.msra.mxu0 %v541_v20  ;;  %1980 = vmatpush1.bf16.msra.mxu1 %v880_v21  ;;  %v604_v20 = vunpack.c.h.s8.bf16 %v268_v12  ;;  %v943_v21 = vunpack.c.h.s8.bf16 %v698_v13 }
 0x1d2   :  { %1639 = vmatprep.subr.bf16.mxu0 %v549_v22  ;;  %1981 = vmatprep.subr.bf16.mxu1 %v888_v24  ;;  %v612_v22 = vunpack.c.l.s8.bf16 %v276_v18  ;;  %v951_v24 = vunpack.c.l.s8.bf16 %v706_v19 }
 0x1d5   :  { %1640 = vmatpush1.bf16.msra.mxu0 %v548_v29  ;;  %1982 = vmatpush1.bf16.msra.mxu1 %v887_v30  ;;  %v611_v29 = vunpack.c.l.s8.bf16 %v275_v25  ;;  %v950_v30 = vunpack.c.l.s8.bf16 %v705_v28 }
 0x1d6   :  { %1641 = vmatprep.subr.bf16.mxu0 %v556_v31  ;;  %1983 = vmatprep.subr.bf16.mxu1 %v895_v33  ;;  %v619_v31 = vunpack.c.h.s8.bf16 %v276_v18  ;;  %v958_v33 = vunpack.c.h.s8.bf16 %v706_v19  ;;  %v734_v18 = vld [vmem:[#allocation8 + $0x318] sm:$0xff] }
 0x1d9   :  { %1642 = vmatpush1.bf16.msra.mxu0 %v555_v38  ;;  %1984 = vmatpush1.bf16.msra.mxu1 %v894_v39  ;;  %v618_v38 = vunpack.c.h.s8.bf16 %v275_v25  ;;  %v957_v39 = vunpack.c.h.s8.bf16 %v705_v28 }
 0x1da   :  { %1643 = vmatprep.subr.bf16.mxu0 %v563_v40  ;;  %1985 = vmatprep.subr.bf16.mxu1 %v902_v42  ;;  %v965_v40 = vunpack.c.l.s8.bf16 %v713_v34  ;;  %v712_v42 = vld [vmem:[#allocation8 + $0x268] sm:$0xff] }
 0x1dd   :  { %1644 = vmatpush1.bf16.msra.mxu0 %v562_v45  ;;  %1986 = vmatpush1.bf16.msra.mxu1 %v901_v46  ;;  %v964_v45 = vunpack.c.l.s8.bf16 %v712_v42  ;;  %v625_v46 = vunpack.c.l.s8.bf16 %v282_v44 }
 0x1de   :  { %1645 = vmatprep.subr.bf16.mxu0 %v570_v47  ;;  %1987 = vmatprep.subr.bf16.mxu1 %v909_v48  ;;  %v972_v47 = vunpack.c.h.s8.bf16 %v713_v34  ;;  %v633_v48 = vunpack.c.h.s8.bf16 %v283_v37 }
 0x1e1   :  { %1646 = vmatpush1.bf16.msra.mxu0 %v569_v52  ;;  %1988 = vmatpush1.bf16.msra.mxu1 %v908_v53  ;;  %v971_v52 = vunpack.c.h.s8.bf16 %v712_v42  ;;  %v632_v53 = vunpack.c.h.s8.bf16 %v282_v44  ;;  %v652_v42 = vld [vmem:[#allocation8 + $0x88] sm:$0xff] }
 0x1e2   :  { %1647 = vmatprep.subr.bf16.mxu0 %v577_v54  ;;  %1989 = vmatprep.subr.bf16.mxu1 %v916_v55  ;;  %v979_v54 = vunpack.c.l.s8.bf16 %v720_v49  ;;  %v719_v55 = vld [vmem:[#allocation8 + $0x2a0] sm:$0xff] }
 0x1e3   :  { %v978_v57 = vunpack.c.l.s8.bf16 %v719_v55  ;;  %v985_v0 = vunpack.c.h.s8.bf16 %v719_v55 }
 0x1e5   :  { %1648 = vmatpush1.bf16.msra.mxu0 %v576_v60  ;;  %1990 = vmatpush1.bf16.msra.mxu1 %v915_v61  ;;  %v986_v60 = vunpack.c.h.s8.bf16 %v720_v49  ;;  %v637_v61 = vld [vmem:[#allocation8 + $0x10] sm:$0xff] }
 0x1e6   :  { %1649 = vmatprep.subr.bf16.mxu0 %v584_v62  ;;  %2000 = vmatprep.subr.bf16.mxu1 %v923_v63  ;;  %v727_v62 = vld [vmem:[#allocation8 + $0x2e0] sm:$0xff]  ;;  %v812_v63 = vunpack.c.l.s8.bf16 %v637_v61  ;;  %v819_v7 = vunpack.c.h.s8.bf16 %v637_v61  ;;  %v1014_v61 = vunpack.c.h.s8.bf16 %v734_v18 }
 0x1e7   :  { %v1000_v13 = vunpack.c.h.s8.bf16 %v727_v62 }
 0x1e8   :  { %1992 = vmatmul.mubr.bf16.vlgmr.msra.gmra.mrb[20].mxu1 %v3597_v56 }
 0x1e9   :  { %1650 = vmatpush1.bf16.msra.mxu0 %v583_v35  ;;  %2001 = vmatpush1.bf16.msra.mxu1 %v922_v2  ;;  %v993_v35 = vunpack.c.l.s8.bf16 %v727_v62  ;;  %v726_v2 = vld [vmem:[#allocation8 + $0x2d8] sm:$0xff]  ;;  %v651_v62 = vld [vmem:[#allocation8 + $0x80] sm:$0xff] }
 0x1ea   :  { %1651 = vmatprep.subr.bf16.mxu0 %v591_v3  ;;  %2002 = vmatprep.subr.bf16.mxu1 %v930_v5  ;;  %v645_v3 = vld [vmem:[#allocation8 + $0x50] sm:$0xff]  ;;  %v3658_v5 = vsub.s32 0, %v3574_v26  ;;  %v999_v25 = vunpack.c.h.s8.bf16 %v726_v2 }
 0x1eb   :  { %2032 = vmatprep.mubr.bf16.mxu1 %v3607_v41  ;;  %v827_v12 = vunpack.c.l.s8.bf16 %v645_v3 }
 0x1ed   :  { %1652 = vmatpush1.bf16.msra.mxu0 %v590_v8  ;;  %2003 = vmatpush1.bf16.msra.mxu1 %v929_v9  ;;  %v992_v8 = vunpack.c.l.s8.bf16 %v726_v2  ;;  %v1871_v9 = vld [vmem:[%s3876_s2] sm:$0x7f] }
 0x1ee   :  { %1653 = vmatprep.subr.bf16.mxu0 %v598_v10  ;;  %2004 = vmatprep.subr.bf16.mxu1 %v937_v11  ;;  %v3667_v10 = vsub.s32 1, %v3574_v26  ;;  %v3670_v11 = vsub.s32 3, %v3574_v26  ;;  %v1876_v19 = vrot.slane %v1871_v9, %v3658_v5 }
 0x1f1   :  { %1654 = vmatpush1.bf16.msra.mxu0 %v597_v14  ;;  %2005 = vmatpush1.bf16.msra.mxu1 %v936_v15  ;;  %v644_v14 = vld [vmem:[#allocation8 + $0x48] sm:$0xff]  ;;  %v1915_v15 = vld [vmem:[#allocation7] sm:$0x7f] }
 0x1f2   :  { %1655 = vmatprep.subr.bf16.mxu0 %v605_v16  ;;  %2006 = vmatprep.subr.bf16.mxu1 %v944_v17  ;;  %v3443_v16 = vmov 1983009808   ;;  %v1920_v28 = vrot.slane %v1915_v15, %v3658_v5 }
 0x1f3   :  { %v2723_v17 = vunpack.c.l.s4 %v3443_v16  ;;  %v659_v16 = vld [vmem:[#allocation8 + $0xc0] sm:$0xff] }
 0x1f5   :  { %1656 = vmatpush1.bf16.msra.mxu0 %v604_v20  ;;  %2007 = vmatpush1.bf16.msra.mxu1 %v943_v21  ;;  %v1884_v20 = vrot.slane %v1871_v9, %v3661_v6  ;;  %v826_v21 = vunpack.c.l.s8.bf16 %v644_v14 }
 0x1f6   :  { %1657 = vmatprep.subr.bf16.mxu0 %v612_v22  ;;  %2008 = vmatprep.subr.bf16.mxu1 %v951_v24  ;;  %v1880_v22 = vrot.slane %v1871_v9, %v3667_v10  ;;  %v1888_v24 = vrot.slane %v1871_v9, %v3670_v11  ;;  %v848_v9 = vunpack.c.h.s8.bf16 %v652_v42 }
 0x1f9   :  { %1658 = vmatpush1.bf16.msra.mxu0 %v611_v29  ;;  %2009 = vmatpush1.bf16.msra.mxu1 %v950_v30  ;;  %v1928_v29 = vrot.slane %v1915_v15, %v3661_v6  ;;  %v834_v30 = vunpack.c.h.s8.bf16 %v645_v3 }
 0x1fa   :  { %1659 = vmatprep.subr.bf16.mxu0 %v619_v31  ;;  %2010 = vmatprep.subr.bf16.mxu1 %v958_v33  ;;  %v1007_v31 = vunpack.c.l.s8.bf16 %v734_v18  ;;  %v733_v33 = vld [vmem:[#allocation8 + $0x310] sm:$0xff] }
 0x1fd   :  { %1660 = vmatpush1.bf16.msra.mxu0 %v618_v38  ;;  %2011 = vmatpush1.bf16.msra.mxu1 %v957_v39  ;;  %v1924_v38 = vrot.slane %v1915_v15, %v3667_v10  ;;  %v2724_v39 = vunpack.c.0.s8 %v2723_v17  ;;  %v847_v17 = vunpack.c.h.s8.bf16 %v651_v62 }
 0x1fe   :  { %2012 = vmatprep.subr.bf16.mxu1 %v965_v40  ;;  %1670 = vmatprep.subr.bf16.mxu0 %v626_v43  ;;  %v1932_v40 = vrot.slane %v1915_v15, %v3670_v11 }
 0x200   :  { %1662 = vmatmul.mubr.bf16.vlgmr.msra.gmra.mrb[4].mxu0 %v3600_v58 }
 0x201   :  { %2013 = vmatpush1.bf16.msra.mxu1 %v964_v45  ;;  %1671 = vmatpush1.bf16.msra.mxu0 %v625_v46 }
 0x202   :  { %2014 = vmatprep.subr.bf16.mxu1 %v972_v47  ;;  %1672 = vmatprep.subr.bf16.mxu0 %v633_v48 }
 0x203   :  { %1702 = vmatprep.mubr.bf16.mxu0 %v3440_v23 }
 0x205   :  { %2015 = vmatpush1.bf16.msra.mxu1 %v971_v52  ;;  %1673 = vmatpush1.bf16.msra.mxu0 %v632_v53  ;;  %v833_v52 = vunpack.c.h.s8.bf16 %v644_v14  ;;  %v1006_v53 = vunpack.c.l.s8.bf16 %v733_v33 }
 0x206   :  { %2016 = vmatprep.subr.bf16.mxu1 %v979_v54  ;;  %2123 = vmatprep.subr.bf16.mxu0 %v813_v36 }
 0x209   :  { %2017 = vmatpush1.bf16.msra.mxu1 %v978_v57 }
 0x20a   :  { %2018 = vmatprep.subr.bf16.mxu1 %v986_v60  ;;  %v841_v60 = vunpack.c.l.s8.bf16 %v652_v42  ;;  %v755_v42 = vld [vmem:[#allocation8 + $0x3c0] sm:$0xff] }
 0x20c   :  { %2955 = vmatmul.mubr.msk.bf16.vlgmr.msra.gmra.mrb[4].mxu0 %vm1215_vm0, %v3627_v27 }
 0x20d   :  { %2124 = vmatpush1.bf16.msra.mxu0 %v812_v63  ;;  %2019 = vmatpush1.bf16.msra.mxu1 %v985_v0  ;;  %v3688_v0 = vsub.s32 %v2724_v39, %v3574_v26 }
 0x20e   :  { %2125 = vmatprep.subr.bf16.mxu0 %v820_v1  ;;  %2020 = vmatprep.subr.bf16.mxu1 %v993_v35  ;;  %v741_v35 = vld [vmem:[#allocation8 + $0x350] sm:$0xff] }
 0x20f   :  { %2155 = vmatprep.mubr.bf16.mxu0 %v3588_v51 }
 0x211   :  { %2126 = vmatpush1.bf16.msra.mxu0 %v819_v7  ;;  %2021 = vmatpush1.bf16.msra.mxu1 %v992_v8  ;;  %v840_v7 = vunpack.c.l.s8.bf16 %v651_v62  ;;  %v1013_v8 = vunpack.c.h.s8.bf16 %v733_v33  ;;  %v666_v33 = vld [vmem:[#allocation8 + $0xf8] sm:$0xff] }
 0x212   :  { %2127 = vmatprep.subr.bf16.mxu0 %v827_v12  ;;  %2022 = vmatprep.subr.bf16.mxu1 %v1000_v13  ;;  %v1021_v12 = vunpack.c.l.s8.bf16 %v741_v35  ;;  %v740_v13 = vld [vmem:[#allocation8 + $0x348] sm:$0xff] }
 0x213   :  { %v1376_v34 = vpop.f32.mrb[0].mxu0  ;;  %v1540_v37 = vpop.f32.mrb[0].mxu1  ;;  %v1020_v18 = vunpack.c.l.s8.bf16 %v740_v13 }
 0x214   :  { %v1908_v43 = vmul.f32 %v1876_v19, %v1376_v34  ;;  %v1910_v44 = vmul.f32 %v1884_v20, %v1540_v37  ;;  %v1378_v45 = vpop.f32.mrb[1].mxu0  ;;  %v1542_v46 = vpop.f32.mrb[1].mxu1  ;;  %v855_v20 = vunpack.c.l.s8.bf16 %v659_v16 }
 0x215   :  { %2128 = vmatpush1.bf16.msra.mxu0 %v826_v21  ;;  %v1909_v47 = vmul.f32 %v1880_v22, %v1378_v45  ;;  %v1911_v48 = vmul.f32 %v1888_v24, %v1542_v46  ;;  %2023 = vmatpush1.bf16.msra.mxu1 %v999_v25  ;;  %v1380_v49 = vpop.f32.mrb[2].mxu0  ;;  %v1544_v50 = vpop.f32.mrb[2].mxu1  ;;  %v1028_v21 = vunpack.c.h.s8.bf16 %v741_v35  ;;  %v658_v22 = vld [vmem:[#allocation8 + $0xb8] sm:$0xff]  ;;  %v748_v24 = vld [vmem:[#allocation8 + $0x388] sm:$0xff]  ;;  %v876_v45 = vunpack.c.h.s8.bf16 %v666_v33 }
 0x216   :  { %v3681_v54 = vadd.f32 %v1920_v28, %v1908_v43  ;;  %v3683_v55 = vadd.f32 %v1928_v29, %v1910_v44  ;;  %v1381_v36 = vpop.f32.mrb[3].mxu0  ;;  %v1545_v57 = vpop.f32.mrb[3].mxu1  ;;  %2129 = vmatprep.subr.bf16.mxu0 %v834_v30  ;;  %2024 = vmatprep.subr.bf16.mxu1 %v1007_v31  ;;  %v854_v25 = vunpack.c.l.s8.bf16 %v658_v22  ;;  %v1027_v28 = vunpack.c.h.s8.bf16 %v740_v13  ;;  %v747_v31 = vld [vmem:[#allocation8 + $0x380] sm:$0xff] }
 0x217   :  { %v3685_v63 = vadd.f32 %v1924_v38, %v1909_v47  ;;  %v3690_v1 = vadd.f32 %v1932_v40, %v1911_v48  ;;  %v862_v29 = vunpack.c.h.s8.bf16 %v659_v16  ;;  %v1035_v30 = vunpack.c.l.s8.bf16 %v748_v24  ;;  %v665_v40 = vld [vmem:[#allocation8 + $0xf0] sm:$0xff]  ;;  %v754_v47 = vld [vmem:[#allocation8 + $0x3b8] sm:$0xff]  ;;  %v672_v36 = vld [vmem:[#allocation8 + $0x128] sm:$0xff] }
 0x218   :  { %v861_v34 = vunpack.c.h.s8.bf16 %v658_v22  ;;  %v1034_v37 = vunpack.c.l.s8.bf16 %v747_v31  ;;  %v869_v38 = vunpack.c.l.s8.bf16 %v666_v33  ;;  %v1042_v39 = vunpack.c.h.s8.bf16 %v748_v24  ;;  %v673_v48 = vld [vmem:[#allocation8 + $0x130] sm:$0xff]  ;;  %v762_v57 = vld [vmem:[#allocation8 + $0x3f8] sm:$0xff] }
 0x219   :  { %v2720_v2 = vcombine.low %v3681_v54, %v3685_v63  ;;  %v2721_v3 = vcombine.low %v3683_v55, %v3690_v1  ;;  %2130 = vmatpush1.bf16.msra.mxu0 %v833_v52  ;;  %2025 = vmatpush1.bf16.msra.mxu1 %v1006_v53  ;;  %v868_v43 = vunpack.c.l.s8.bf16 %v665_v40  ;;  %v1041_v44 = vunpack.c.h.s8.bf16 %v747_v31 }
 0x21a   :  { %2131 = vmatprep.subr.bf16.mxu0 %v841_v60  ;;  %2026 = vmatprep.subr.bf16.mxu1 %v1014_v61  ;;  %v1049_v46 = vunpack.c.l.s8.bf16 %v755_v42  ;;  %v875_v49 = vunpack.c.h.s8.bf16 %v665_v40  ;;  %v1048_v50 = vunpack.c.l.s8.bf16 %v754_v47  ;;  %v883_v52 = vunpack.c.l.s8.bf16 %v673_v48 }
 0x21b   :  { %v2728_v14 = vrot.slane %v2720_v2, %v3688_v0  ;;  %v2735_v15 = vrot.slane %v2721_v3, %v3688_v0  ;;  %v1056_v53 = vunpack.c.h.s8.bf16 %v755_v42  ;;  %v882_v60 = vunpack.c.l.s8.bf16 %v672_v36  ;;  %v761_v2 = vld [vmem:[#allocation8 + $0x3f0] sm:$0xff] }
 0x21c   :  { %v1055_v61 = vunpack.c.h.s8.bf16 %v754_v47  ;;  %v890_v62 = vunpack.c.h.s8.bf16 %v673_v48  ;;  %v1063_v35 = vunpack.c.l.s8.bf16 %v762_v57  ;;  %v889_v13 = vunpack.c.h.s8.bf16 %v672_v36 }
 0x21d   :  { %2132 = vmatpush1.bf16.msra.mxu0 %v840_v7  ;;  %2027 = vmatpush1.bf16.msra.mxu1 %v1013_v8  ;;  %v2736_v19 = vcombine.low %v2728_v14, %v2735_v15  ;;  %v680_v7 = vld [vmem:[#allocation8 + $0x168] sm:$0xff]  ;;  %v1062_v14 = vunpack.c.l.s8.bf16 %v761_v2 }
 0x21e   :  { %2133 = vmatprep.subr.bf16.mxu0 %v848_v9  ;;  %2028 = vmatprep.subr.bf16.mxu1 %v1021_v12  ;;  %v897_v16 = vunpack.c.l.s8.bf16 %v680_v7  ;;  %v904_v22 = vunpack.c.h.s8.bf16 %v680_v7  ;;  %v700_v7 = vld [vmem:[#allocation8 + $0x208] sm:$0xff] }
 0x21f   :  { %2755 = vst [vmem:[#allocation14] sm:$0xff] %v2736_v19  ;;  %v769_v19 = vld [vmem:[#allocation8 + $0x430] sm:$0xff] }
 0x220   :  { %v1077_v24 = vunpack.c.l.s8.bf16 %v769_v19  ;;  %v1084_v33 = vunpack.c.h.s8.bf16 %v769_v19 }
 0x221   :  { %2134 = vmatpush1.bf16.msra.mxu0 %v847_v17  ;;  %2029 = vmatpush1.bf16.msra.mxu1 %v1020_v18  ;;  %v1070_v17 = vunpack.c.h.s8.bf16 %v762_v57  ;;  %v679_v18 = vld [vmem:[#allocation8 + $0x160] sm:$0xff] }
 0x222   :  { %2135 = vmatprep.subr.bf16.mxu0 %v855_v20  ;;  %2030 = vmatprep.subr.bf16.mxu1 %v1028_v21  ;;  %v896_v20 = vunpack.c.l.s8.bf16 %v679_v18  ;;  %v1069_v21 = vunpack.c.h.s8.bf16 %v761_v2 }
 0x225   :  { %2136 = vmatpush1.bf16.msra.mxu0 %v854_v25  ;;  %2031 = vmatpush1.bf16.msra.mxu1 %v1027_v28  ;;  %v768_v25 = vld [vmem:[#allocation8 + $0x428] sm:$0xff]  ;;  %v687_v28 = vld [vmem:[#allocation8 + $0x1a0] sm:$0xff] }
 0x226   :  { %2137 = vmatprep.subr.bf16.mxu0 %v862_v29  ;;  %2041 = vmatprep.subr.bf16.mxu1 %v1035_v30  ;;  %v903_v29 = vunpack.c.h.s8.bf16 %v679_v18  ;;  %v1076_v30 = vunpack.c.l.s8.bf16 %v768_v25  ;;  %v911_v31 = vunpack.c.l.s8.bf16 %v687_v28  ;;  %v918_v40 = vunpack.c.h.s8.bf16 %v687_v28  ;;  %v708_v18 = vld [vmem:[#allocation8 + $0x248] sm:$0xff] }
 0x227   :  { %v953_v28 = vunpack.c.l.s8.bf16 %v708_v18 }
 0x228   :  { %2033 = vmatmul.mubr.bf16.vlgmr.msra.gmra.mrb[20].mxu1 %v3615_v32 }
 0x229   :  { %2138 = vmatpush1.bf16.msra.mxu0 %v861_v34  ;;  %2042 = vmatpush1.bf16.msra.mxu1 %v1034_v37  ;;  %v686_v34 = vld [vmem:[#allocation8 + $0x198] sm:$0xff]  ;;  %v776_v37 = vld [vmem:[#allocation8 + $0x468] sm:$0xff] }
 0x22a   :  { %2139 = vmatprep.subr.bf16.mxu0 %v869_v38  ;;  %2043 = vmatprep.subr.bf16.mxu1 %v1042_v39  ;;  %v910_v38 = vunpack.c.l.s8.bf16 %v686_v34  ;;  %v1083_v39 = vunpack.c.h.s8.bf16 %v768_v25  ;;  %v1091_v42 = vunpack.c.l.s8.bf16 %v776_v37  ;;  %v1098_v48 = vunpack.c.h.s8.bf16 %v776_v37 }
 0x22b   :  { %2073 = vmatprep.mubr.bf16.mxu1 %v3603_v59 }
 0x22d   :  { %2140 = vmatpush1.bf16.msra.mxu0 %v868_v43  ;;  %2044 = vmatpush1.bf16.msra.mxu1 %v1041_v44  ;;  %v775_v43 = vld [vmem:[#allocation8 + $0x460] sm:$0xff]  ;;  %v694_v44 = vld [vmem:[#allocation8 + $0x1d8] sm:$0xff] }
 0x22e   :  { %2141 = vmatprep.subr.bf16.mxu0 %v876_v45  ;;  %2045 = vmatprep.subr.bf16.mxu1 %v1049_v46  ;;  %v917_v45 = vunpack.c.h.s8.bf16 %v686_v34  ;;  %v1090_v46 = vunpack.c.l.s8.bf16 %v775_v43  ;;  %v925_v47 = vunpack.c.l.s8.bf16 %v694_v44  ;;  %v932_v36 = vunpack.c.h.s8.bf16 %v694_v44 }
 0x231   :  { %2142 = vmatpush1.bf16.msra.mxu0 %v875_v49  ;;  %2046 = vmatpush1.bf16.msra.mxu1 %v1048_v50  ;;  %v693_v49 = vld [vmem:[#allocation8 + $0x1d0] sm:$0xff]  ;;  %v783_v50 = vld [vmem:[#allocation8 + $0x4a0] sm:$0xff] }
 0x232   :  { %2143 = vmatprep.subr.bf16.mxu0 %v883_v52  ;;  %2047 = vmatprep.subr.bf16.mxu1 %v1056_v53  ;;  %v924_v52 = vunpack.c.l.s8.bf16 %v693_v49  ;;  %v1097_v53 = vunpack.c.h.s8.bf16 %v775_v43  ;;  %v1105_v57 = vunpack.c.l.s8.bf16 %v783_v50 }
 0x233   :  { %v2977_v3 = vpop.f32.mrb[4].mxu1 }
 0x234   :  { %v2978_v8 = vpop.f32.mrb[5].mxu1 }
 0x235   :  { %v3700_v9 = vadd.f32 %v2978_v8, %v2977_v3  ;;  %2144 = vmatpush1.bf16.msra.mxu0 %v882_v60  ;;  %v2980_v12 = vpop.f32.mrb[6].mxu1  ;;  %2048 = vmatpush1.bf16.msra.mxu1 %v1055_v61  ;;  %v782_v60 = vld [vmem:[#allocation8 + $0x498] sm:$0xff]  ;;  %v701_v61 = vld [vmem:[#allocation8 + $0x210] sm:$0xff]  ;;  %v1112_v3 = vunpack.c.h.s8.bf16 %v783_v50 }
 0x236   :  { %v2981_v15 = vpop.f32.mrb[7].mxu1  ;;  %2145 = vmatprep.subr.bf16.mxu0 %v890_v62  ;;  %2049 = vmatprep.subr.bf16.mxu1 %v1063_v35  ;;  %v931_v62 = vunpack.c.h.s8.bf16 %v693_v49  ;;  %v1104_v35 = vunpack.c.l.s8.bf16 %v782_v60  ;;  %v939_v2 = vunpack.c.l.s8.bf16 %v701_v61  ;;  %v790_v8 = vld [vmem:[#allocation8 + $0x4d8] sm:$0xff]  ;;  %v938_v12 = vunpack.c.l.s8.bf16 %v700_v7 }
 0x237   :  { %v1119_v15 = vunpack.c.l.s8.bf16 %v790_v8 }
 0x239   :  { %2146 = vmatpush1.bf16.msra.mxu0 %v889_v13  ;;  %2050 = vmatpush1.bf16.msra.mxu1 %v1062_v14  ;;  %v1111_v13 = vunpack.c.h.s8.bf16 %v782_v60  ;;  %v946_v14 = vunpack.c.h.s8.bf16 %v701_v61 }
 0x23a   :  { %2147 = vmatprep.subr.bf16.mxu0 %v897_v16  ;;  %2051 = vmatprep.subr.bf16.mxu1 %v1070_v17  ;;  %v789_v16 = vld [vmem:[#allocation8 + $0x4d0] sm:$0xff] }
 0x23b   :  { %v1125_v37 = vunpack.c.h.s8.bf16 %v789_v16 }
 0x23d   :  { %2148 = vmatpush1.bf16.msra.mxu0 %v896_v20  ;;  %2052 = vmatpush1.bf16.msra.mxu1 %v1069_v21 }
 0x23e   :  { %2149 = vmatprep.subr.bf16.mxu0 %v904_v22  ;;  %2053 = vmatprep.subr.bf16.mxu1 %v1077_v24  ;;  %v945_v22 = vunpack.c.h.s8.bf16 %v700_v7  ;;  %v1118_v24 = vunpack.c.l.s8.bf16 %v789_v16  ;;  %v728_v16 = vld [vmem:[#allocation8 + $0x2e8] sm:$0xff] }
 0x241   :  { %2150 = vmatpush1.bf16.msra.mxu0 %v903_v29  ;;  %2054 = vmatpush1.bf16.msra.mxu1 %v1076_v30  ;;  %v1126_v29 = vunpack.c.h.s8.bf16 %v790_v8  ;;  %v707_v30 = vld [vmem:[#allocation8 + $0x240] sm:$0xff] }
 0x242   :  { %2151 = vmatprep.subr.bf16.mxu0 %v911_v31  ;;  %2055 = vmatprep.subr.bf16.mxu1 %v1084_v33  ;;  %v797_v33 = vld [vmem:[#allocation8 + $0x510] sm:$0xff]  ;;  %v952_v34 = vunpack.c.l.s8.bf16 %v707_v30  ;;  %v959_v43 = vunpack.c.h.s8.bf16 %v707_v30 }
 0x245   :  { %2152 = vmatpush1.bf16.msra.mxu0 %v910_v38  ;;  %2056 = vmatpush1.bf16.msra.mxu1 %v1083_v39  ;;  %v960_v38 = vunpack.c.h.s8.bf16 %v708_v18  ;;  %v1133_v39 = vunpack.c.l.s8.bf16 %v797_v33  ;;  %v994_v18 = vunpack.c.l.s8.bf16 %v728_v16 }
 0x246   :  { %2153 = vmatprep.subr.bf16.mxu0 %v918_v40  ;;  %2057 = vmatprep.subr.bf16.mxu1 %v1091_v42  ;;  %v796_v40 = vld [vmem:[#allocation8 + $0x508] sm:$0xff]  ;;  %v715_v42 = vld [vmem:[#allocation8 + $0x280] sm:$0xff] }
 0x247   :  { %v1132_v44 = vunpack.c.l.s8.bf16 %v796_v40  ;;  %v1139_v49 = vunpack.c.h.s8.bf16 %v796_v40  ;;  %v974_v50 = vunpack.c.h.s8.bf16 %v715_v42  ;;  %v735_v40 = vld [vmem:[#allocation8 + $0x320] sm:$0xff] }
 0x249   :  { %2154 = vmatpush1.bf16.msra.mxu0 %v917_v45  ;;  %2058 = vmatpush1.bf16.msra.mxu1 %v1090_v46  ;;  %v967_v45 = vunpack.c.l.s8.bf16 %v715_v42  ;;  %v714_v46 = vld [vmem:[#allocation8 + $0x278] sm:$0xff] }
 0x24a   :  { %2164 = vmatprep.subr.bf16.mxu0 %v925_v47  ;;  %2059 = vmatprep.subr.bf16.mxu1 %v1098_v48  ;;  %v804_v47 = vld [vmem:[#allocation8 + $0x548] sm:$0xff]  ;;  %v966_v48 = vunpack.c.l.s8.bf16 %v714_v46  ;;  %v646_v42 = vld [vmem:[#allocation8 + $0x58] sm:$0xff] }
 0x24c   :  { %2156 = vmatmul.mubr.bf16.vlgmr.msra.gmra.mrb[8].mxu0 %v3597_v56 }
 0x24d   :  { %2165 = vmatpush1.bf16.msra.mxu0 %v924_v52  ;;  %2060 = vmatpush1.bf16.msra.mxu1 %v1097_v53  ;;  %v1147_v52 = vunpack.c.l.s8.bf16 %v804_v47  ;;  %v803_v53 = vld [vmem:[#allocation8 + $0x540] sm:$0xff] }
 0x24e   :  { %2166 = vmatprep.subr.bf16.mxu0 %v932_v36  ;;  %2061 = vmatprep.subr.bf16.mxu1 %v1105_v57  ;;  %v722_v36 = vld [vmem:[#allocation8 + $0x2b8] sm:$0xff]  ;;  %v973_v57 = vunpack.c.h.s8.bf16 %v714_v46  ;;  %v1146_v60 = vunpack.c.l.s8.bf16 %v803_v53  ;;  %v1153_v7 = vunpack.c.h.s8.bf16 %v803_v53 }
 0x24f   :  { %2196 = vmatprep.mubr.bf16.mxu0 %v3607_v41  ;;  %v981_v61 = vunpack.c.l.s8.bf16 %v722_v36  ;;  %v988_v8 = vunpack.c.h.s8.bf16 %v722_v36  ;;  %v835_v36 = vunpack.c.h.s8.bf16 %v646_v42 }
 0x251   :  { %2167 = vmatpush1.bf16.msra.mxu0 %v931_v62  ;;  %2062 = vmatpush1.bf16.msra.mxu1 %v1104_v35  ;;  %v721_v62 = vld [vmem:[#allocation8 + $0x2b0] sm:$0xff]  ;;  %v1154_v35 = vunpack.c.h.s8.bf16 %v804_v47 }
 0x252   :  { %2168 = vmatprep.subr.bf16.mxu0 %v939_v2  ;;  %2063 = vmatprep.subr.bf16.mxu1 %v1112_v3  ;;  %v640_v2 = vld [vmem:[#allocation8 + $0x28] sm:$0xff]  ;;  %v980_v3 = vunpack.c.l.s8.bf16 %v721_v62 }
 0x253   :  { %v2999_v17 = vpop.f32.mrb[8].mxu1 }
 0x254   :  { %v3000_v19 = vpop.f32.mrb[9].mxu1 }
 0x255   :  { %v3001_v20 = vadd.f32 %v3000_v19, %v2999_v17  ;;  %2169 = vmatpush1.bf16.msra.mxu0 %v938_v12  ;;  %v3002_v21 = vpop.f32.mrb[10].mxu1  ;;  %2064 = vmatpush1.bf16.msra.mxu1 %v1111_v13  ;;  %v815_v12 = vunpack.c.l.s8.bf16 %v640_v2  ;;  %v729_v13 = vld [vmem:[#allocation8 + $0x2f0] sm:$0xff]  ;;  %v639_v17 = vld [vmem:[#allocation8 + $0x20] sm:$0xff] }
 0x256   :  { %v3003_v25 = vpop.f32.mrb[11].mxu1  ;;  %2170 = vmatprep.subr.bf16.mxu0 %v946_v14  ;;  %2065 = vmatprep.subr.bf16.mxu1 %v1119_v15  ;;  %v987_v14 = vunpack.c.h.s8.bf16 %v721_v62  ;;  %v995_v15 = vunpack.c.l.s8.bf16 %v729_v13  ;;  %v814_v19 = vunpack.c.l.s8.bf16 %v639_v17  ;;  %v822_v21 = vunpack.c.h.s8.bf16 %v640_v2  ;;  %v742_v62 = vld [vmem:[#allocation8 + $0x358] sm:$0xff] }
 0x257   :  { %v3705_v31 = vadd.f32 %v3001_v20, %v3700_v9  ;;  %v1140_v9 = vunpack.c.h.s8.bf16 %v797_v33  ;;  %v1002_v20 = vunpack.c.h.s8.bf16 %v729_v13  ;;  %v647_v25 = vld [vmem:[#allocation8 + $0x60] sm:$0xff]  ;;  %v1001_v33 = vunpack.c.h.s8.bf16 %v728_v16  ;;  %v661_v13 = vld [vmem:[#allocation8 + $0xd0] sm:$0xff] }
 0x258   :  { %v836_v46 = vunpack.c.h.s8.bf16 %v647_v25  ;;  %v1022_v2 = vunpack.c.l.s8.bf16 %v742_v62 }
 0x259   :  { %2171 = vmatpush1.bf16.msra.mxu0 %v945_v22  ;;  %2066 = vmatpush1.bf16.msra.mxu1 %v1118_v24  ;;  %v736_v24 = vld [vmem:[#allocation8 + $0x328] sm:$0xff] }
 0x25a   :  { %2172 = vmatprep.subr.bf16.mxu0 %v953_v28  ;;  %2067 = vmatprep.subr.bf16.mxu1 %v1126_v29 }
 0x25d   :  { %2173 = vmatpush1.bf16.msra.mxu0 %v952_v34  ;;  %2068 = vmatpush1.bf16.msra.mxu1 %v1125_v37  ;;  %v821_v34 = vunpack.c.h.s8.bf16 %v639_v17  ;;  %v857_v17 = vunpack.c.l.s8.bf16 %v661_v13 }
 0x25e   :  { %2174 = vmatprep.subr.bf16.mxu0 %v960_v38  ;;  %2069 = vmatprep.subr.bf16.mxu1 %v1133_v39  ;;  %v1009_v38 = vunpack.c.l.s8.bf16 %v736_v24  ;;  %v829_v39 = vunpack.c.l.s8.bf16 %v647_v25  ;;  %v757_v25 = vld [vmem:[#allocation8 + $0x3d0] sm:$0xff] }
 0x261   :  { %2175 = vmatpush1.bf16.msra.mxu0 %v959_v43  ;;  %2070 = vmatpush1.bf16.msra.mxu1 %v1132_v44  ;;  %v1008_v44 = vunpack.c.l.s8.bf16 %v735_v40 }
 0x262   :  { %2176 = vmatprep.subr.bf16.mxu0 %v967_v45  ;;  %2071 = vmatprep.subr.bf16.mxu1 %v1140_v9  ;;  %v828_v45 = vunpack.c.l.s8.bf16 %v646_v42  ;;  %v1016_v9 = vunpack.c.h.s8.bf16 %v736_v24  ;;  %v864_v24 = vunpack.c.h.s8.bf16 %v661_v13  ;;  %v1058_v42 = vunpack.c.h.s8.bf16 %v757_v25 }
 0x265   :  { %2177 = vmatpush1.bf16.msra.mxu0 %v966_v48  ;;  %2072 = vmatpush1.bf16.msra.mxu1 %v1139_v49  ;;  %v743_v48 = vld [vmem:[#allocation8 + $0x360] sm:$0xff]  ;;  %v654_v49 = vld [vmem:[#allocation8 + $0x98] sm:$0xff] }
 0x266   :  { %2178 = vmatprep.subr.bf16.mxu0 %v974_v50  ;;  %2082 = vmatprep.subr.bf16.mxu1 %v1147_v52 }
 0x268   :  { %2074 = vmatmul.mubr.bf16.vlgmr.msra.gmra.mrb[20].mxu1 %v3600_v58 }
 0x269   :  { %2179 = vmatpush1.bf16.msra.mxu0 %v973_v57  ;;  %2083 = vmatpush1.bf16.msra.mxu1 %v1146_v60  ;;  %v1023_v60 = vunpack.c.l.s8.bf16 %v743_v48 }
 0x26a   :  { %2180 = vmatprep.subr.bf16.mxu0 %v981_v61  ;;  %2084 = vmatprep.subr.bf16.mxu1 %v1154_v35  ;;  %v843_v61 = vunpack.c.l.s8.bf16 %v654_v49  ;;  %v653_v35 = vld [vmem:[#allocation8 + $0x90] sm:$0xff] }
 0x26b   :  { %2114 = vmatprep.mubr.bf16.mxu1 %v3440_v23 }
 0x26d   :  { %2181 = vmatpush1.bf16.msra.mxu0 %v980_v3  ;;  %2085 = vmatpush1.bf16.msra.mxu1 %v1153_v7  ;;  %v842_v3 = vunpack.c.l.s8.bf16 %v653_v35  ;;  %v1030_v7 = vunpack.c.h.s8.bf16 %v743_v48 }
 0x26e   :  { %2182 = vmatprep.subr.bf16.mxu0 %v988_v8  ;;  %2287 = vmatprep.subr.bf16.mxu1 %v815_v12  ;;  %v850_v8 = vunpack.c.h.s8.bf16 %v654_v49  ;;  %v750_v12 = vld [vmem:[#allocation8 + $0x398] sm:$0xff]  ;;  %v763_v49 = vld [vmem:[#allocation8 + $0x400] sm:$0xff] }
 0x26f   :  { %v1037_v16 = vunpack.c.l.s8.bf16 %v750_v12 }
 0x271   :  { %2183 = vmatpush1.bf16.msra.mxu0 %v987_v14  ;;  %v1029_v14 = vunpack.c.h.s8.bf16 %v742_v62  ;;  %v1071_v62 = vunpack.c.h.s8.bf16 %v763_v49 }
 0x272   :  { %2184 = vmatprep.subr.bf16.mxu0 %v995_v15  ;;  %v849_v15 = vunpack.c.h.s8.bf16 %v653_v35 }
 0x273   :  { %v3021_v22 = vpop.f32.mrb[12].mxu1 }
 0x274   :  { %v3022_v28 = vpop.f32.mrb[13].mxu1  ;;  %2957 = vmatmul.mubr.msk.bf16.vlgmr.msra.gmra.mrb[20].mxu1 %vm1215_vm0, %v3627_v27 }
 0x275   :  { %v3023_v29 = vadd.f32 %v3022_v28, %v3021_v22  ;;  %2185 = vmatpush1.bf16.msra.mxu0 %v994_v18  ;;  %2288 = vmatpush1.bf16.msra.mxu1 %v814_v19  ;;  %v3024_v30 = vpop.f32.mrb[14].mxu1  ;;  %v749_v18 = vld [vmem:[#allocation8 + $0x390] sm:$0xff]  ;;  %v660_v19 = vld [vmem:[#allocation8 + $0xc8] sm:$0xff]  ;;  %v1044_v22 = vunpack.c.h.s8.bf16 %v750_v12 }
 0x276   :  { %v3025_v37 = vpop.f32.mrb[15].mxu1  ;;  %2186 = vmatprep.subr.bf16.mxu0 %v1002_v20  ;;  %2289 = vmatprep.subr.bf16.mxu1 %v822_v21  ;;  %v1036_v20 = vunpack.c.l.s8.bf16 %v749_v18  ;;  %v856_v21 = vunpack.c.l.s8.bf16 %v660_v19  ;;  %v668_v28 = vld [vmem:[#allocation8 + $0x108] sm:$0xff]  ;;  %v863_v30 = vunpack.c.h.s8.bf16 %v660_v19 }
 0x277   :  { %v1826_v43 = vadd.f32 %v3023_v29, %v3705_v31  ;;  %2319 = vmatprep.mubr.bf16.mxu1 %v3588_v51  ;;  %v1015_v31 = vunpack.c.h.s8.bf16 %v735_v40  ;;  %v1043_v29 = vunpack.c.h.s8.bf16 %v749_v18  ;;  %v756_v37 = vld [vmem:[#allocation8 + $0x3c8] sm:$0xff] }
 0x279   :  { %2187 = vmatpush1.bf16.msra.mxu0 %v1001_v33  ;;  %2290 = vmatpush1.bf16.msra.mxu1 %v821_v34  ;;  %v1051_v33 = vunpack.c.l.s8.bf16 %v757_v25  ;;  %v871_v34 = vunpack.c.l.s8.bf16 %v668_v28 }
 0x27a   :  { %2188 = vmatprep.subr.bf16.mxu0 %v1009_v38  ;;  %2291 = vmatprep.subr.bf16.mxu1 %v829_v39  ;;  %v667_v38 = vld [vmem:[#allocation8 + $0x100] sm:$0xff]  ;;  %v1050_v39 = vunpack.c.l.s8.bf16 %v756_v37 }
 0x27b   :  { %v1865_v47 = vpop.f32.mrb[16].mxu1  ;;  %v870_v40 = vunpack.c.l.s8.bf16 %v667_v38 }
 0x27c   :  { %v3713_v50 = vadd.f32 %v1865_v47, %v1826_v43  ;;  %v3105_v52 = vpop.f32.mrb[17].mxu1  ;;  %v878_v43 = vunpack.c.h.s8.bf16 %v668_v28 }
 0x27d   :  { %2189 = vmatpush1.bf16.msra.mxu0 %v1008_v44  ;;  %2292 = vmatpush1.bf16.msra.mxu1 %v828_v45  ;;  %v1868_v53 = vpop.f32.mrb[18].mxu1  ;;  %v764_v44 = vld [vmem:[#allocation8 + $0x408] sm:$0xff]  ;;  %v675_v45 = vld [vmem:[#allocation8 + $0x140] sm:$0xff]  ;;  %v674_v52 = vld [vmem:[#allocation8 + $0x138] sm:$0xff] }
 0x27e   :  { %v3106_v57 = vpop.f32.mrb[19].mxu1  ;;  %2190 = vmatprep.subr.bf16.mxu0 %v1016_v9  ;;  %2293 = vmatprep.subr.bf16.mxu1 %v836_v46  ;;  %v1057_v9 = vunpack.c.h.s8.bf16 %v756_v37  ;;  %v877_v46 = vunpack.c.h.s8.bf16 %v667_v38  ;;  %v1065_v47 = vunpack.c.l.s8.bf16 %v764_v44  ;;  %v885_v48 = vunpack.c.l.s8.bf16 %v675_v45 }
 0x27f   :  { %v1064_v53 = vunpack.c.l.s8.bf16 %v763_v49  ;;  %v892_v57 = vunpack.c.h.s8.bf16 %v675_v45  ;;  %v891_v35 = vunpack.c.h.s8.bf16 %v674_v52 }
 0x281   :  { %2191 = vmatpush1.bf16.msra.mxu0 %v1015_v31  ;;  %2294 = vmatpush1.bf16.msra.mxu1 %v835_v36  ;;  %v884_v31 = vunpack.c.l.s8.bf16 %v674_v52  ;;  %v1072_v36 = vunpack.c.h.s8.bf16 %v764_v44 }
 0x282   :  { %2192 = vmatprep.subr.bf16.mxu0 %v1023_v60  ;;  %2295 = vmatprep.subr.bf16.mxu1 %v843_v61  ;;  %v771_v60 = vld [vmem:[#allocation8 + $0x440] sm:$0xff]  ;;  %v682_v61 = vld [vmem:[#allocation8 + $0x178] sm:$0xff] }
 0x285   :  { %2193 = vmatpush1.bf16.msra.mxu0 %v1022_v2  ;;  %2296 = vmatpush1.bf16.msra.mxu1 %v842_v3  ;;  %v1079_v2 = vunpack.c.l.s8.bf16 %v771_v60  ;;  %v899_v3 = vunpack.c.l.s8.bf16 %v682_v61 }
 0x286   :  { %2194 = vmatprep.subr.bf16.mxu0 %v1030_v7  ;;  %2297 = vmatprep.subr.bf16.mxu1 %v850_v8  ;;  %v770_v7 = vld [vmem:[#allocation8 + $0x438] sm:$0xff]  ;;  %v681_v8 = vld [vmem:[#allocation8 + $0x170] sm:$0xff] }
 0x287   :  { %v1078_v12 = vunpack.c.l.s8.bf16 %v770_v7  ;;  %v898_v13 = vunpack.c.l.s8.bf16 %v681_v8  ;;  %v1085_v18 = vunpack.c.h.s8.bf16 %v770_v7  ;;  %v905_v19 = vunpack.c.h.s8.bf16 %v681_v8 }
 0x289   :  { %2195 = vmatpush1.bf16.msra.mxu0 %v1029_v14  ;;  %2298 = vmatpush1.bf16.msra.mxu1 %v849_v15  ;;  %v1086_v14 = vunpack.c.h.s8.bf16 %v771_v60  ;;  %v906_v15 = vunpack.c.h.s8.bf16 %v682_v61 }
 0x28a   :  { %2205 = vmatprep.subr.bf16.mxu0 %v1037_v16  ;;  %2299 = vmatprep.subr.bf16.mxu1 %v857_v17  ;;  %v778_v16 = vld [vmem:[#allocation8 + $0x478] sm:$0xff]  ;;  %v689_v17 = vld [vmem:[#allocation8 + $0x1b0] sm:$0xff] }
 0x28c   :  { %2197 = vmatmul.mubr.bf16.vlgmr.msra.gmra.mrb[8].mxu0 %v3615_v32 }
 0x28d   :  { %2206 = vmatpush1.bf16.msra.mxu0 %v1036_v20  ;;  %2300 = vmatpush1.bf16.msra.mxu1 %v856_v21  ;;  %v1093_v20 = vunpack.c.l.s8.bf16 %v778_v16  ;;  %v913_v21 = vunpack.c.l.s8.bf16 %v689_v17 }
 0x28e   :  { %2207 = vmatprep.subr.bf16.mxu0 %v1044_v22  ;;  %2301 = vmatprep.subr.bf16.mxu1 %v864_v24  ;;  %v777_v22 = vld [vmem:[#allocation8 + $0x470] sm:$0xff]  ;;  %v688_v24 = vld [vmem:[#allocation8 + $0x1a8] sm:$0xff] }
 0x28f   :  { %2237 = vmatprep.mubr.bf16.mxu0 %v3603_v59  ;;  %v1092_v25 = vunpack.c.l.s8.bf16 %v777_v22  ;;  %v912_v28 = vunpack.c.l.s8.bf16 %v688_v24  ;;  %v1099_v37 = vunpack.c.h.s8.bf16 %v777_v22  ;;  %v919_v38 = vunpack.c.h.s8.bf16 %v688_v24 }
 0x291   :  { %2208 = vmatpush1.bf16.msra.mxu0 %v1043_v29  ;;  %2302 = vmatpush1.bf16.msra.mxu1 %v863_v30  ;;  %v1100_v29 = vunpack.c.h.s8.bf16 %v778_v16  ;;  %v920_v30 = vunpack.c.h.s8.bf16 %v689_v17 }
 0x292   :  { %2209 = vmatprep.subr.bf16.mxu0 %v1051_v33  ;;  %2303 = vmatprep.subr.bf16.mxu1 %v871_v34  ;;  %v785_v33 = vld [vmem:[#allocation8 + $0x4b0] sm:$0xff]  ;;  %v696_v34 = vld [vmem:[#allocation8 + $0x1e8] sm:$0xff] }
 0x295   :  { %2210 = vmatpush1.bf16.msra.mxu0 %v1050_v39  ;;  %2304 = vmatpush1.bf16.msra.mxu1 %v870_v40  ;;  %v1107_v39 = vunpack.c.l.s8.bf16 %v785_v33  ;;  %v927_v40 = vunpack.c.l.s8.bf16 %v696_v34 }
 0x296   :  { %2211 = vmatprep.subr.bf16.mxu0 %v1058_v42  ;;  %2305 = vmatprep.subr.bf16.mxu1 %v878_v43  ;;  %v784_v42 = vld [vmem:[#allocation8 + $0x4a8] sm:$0xff]  ;;  %v695_v43 = vld [vmem:[#allocation8 + $0x1e0] sm:$0xff] }
 0x297   :  { %v1106_v44 = vunpack.c.l.s8.bf16 %v784_v42  ;;  %v926_v45 = vunpack.c.l.s8.bf16 %v695_v43  ;;  %v1113_v49 = vunpack.c.h.s8.bf16 %v784_v42  ;;  %v933_v52 = vunpack.c.h.s8.bf16 %v695_v43 }
 0x299   :  { %2212 = vmatpush1.bf16.msra.mxu0 %v1057_v9  ;;  %2306 = vmatpush1.bf16.msra.mxu1 %v877_v46  ;;  %v1114_v9 = vunpack.c.h.s8.bf16 %v785_v33  ;;  %v934_v46 = vunpack.c.h.s8.bf16 %v696_v34 }
 0x29a   :  { %2213 = vmatprep.subr.bf16.mxu0 %v1065_v47  ;;  %2307 = vmatprep.subr.bf16.mxu1 %v885_v48  ;;  %v792_v47 = vld [vmem:[#allocation8 + $0x4e8] sm:$0xff]  ;;  %v703_v48 = vld [vmem:[#allocation8 + $0x220] sm:$0xff] }
 0x29d   :  { %2214 = vmatpush1.bf16.msra.mxu0 %v1064_v53  ;;  %2308 = vmatpush1.bf16.msra.mxu1 %v884_v31  ;;  %v1121_v53 = vunpack.c.l.s8.bf16 %v792_v47  ;;  %v941_v31 = vunpack.c.l.s8.bf16 %v703_v48 }
 0x29e   :  { %2215 = vmatprep.subr.bf16.mxu0 %v1072_v36  ;;  %2309 = vmatprep.subr.bf16.mxu1 %v892_v57  ;;  %v791_v36 = vld [vmem:[#allocation8 + $0x4e0] sm:$0xff]  ;;  %v702_v57 = vld [vmem:[#allocation8 + $0x218] sm:$0xff] }
 0x29f   :  { %v1120_v60 = vunpack.c.l.s8.bf16 %v791_v36  ;;  %v940_v61 = vunpack.c.l.s8.bf16 %v702_v57  ;;  %v1127_v7 = vunpack.c.h.s8.bf16 %v791_v36  ;;  %v947_v8 = vunpack.c.h.s8.bf16 %v702_v57  ;;  %v730_v57 = vld [vmem:[#allocation8 + $0x2f8] sm:$0xff] }
 0x2a1   :  { %2216 = vmatpush1.bf16.msra.mxu0 %v1071_v62  ;;  %2310 = vmatpush1.bf16.msra.mxu1 %v891_v35  ;;  %v1128_v62 = vunpack.c.h.s8.bf16 %v792_v47  ;;  %v948_v35 = vunpack.c.h.s8.bf16 %v703_v48  ;;  %v641_v48 = vld [vmem:[#allocation8 + $0x30] sm:$0xff] }
 0x2a2   :  { %2217 = vmatprep.subr.bf16.mxu0 %v1079_v2  ;;  %2311 = vmatprep.subr.bf16.mxu1 %v899_v3  ;;  %v799_v2 = vld [vmem:[#allocation8 + $0x520] sm:$0xff]  ;;  %v710_v3 = vld [vmem:[#allocation8 + $0x258] sm:$0xff] }
 0x2a5   :  { %2218 = vmatpush1.bf16.msra.mxu0 %v1078_v12  ;;  %2312 = vmatpush1.bf16.msra.mxu1 %v898_v13  ;;  %v1135_v12 = vunpack.c.l.s8.bf16 %v799_v2  ;;  %v955_v13 = vunpack.c.l.s8.bf16 %v710_v3 }
 0x2a6   :  { %2219 = vmatprep.subr.bf16.mxu0 %v1086_v14  ;;  %2313 = vmatprep.subr.bf16.mxu1 %v906_v15  ;;  %v798_v14 = vld [vmem:[#allocation8 + $0x518] sm:$0xff]  ;;  %v709_v15 = vld [vmem:[#allocation8 + $0x250] sm:$0xff] }
 0x2a7   :  { %v1134_v16 = vunpack.c.l.s8.bf16 %v798_v14  ;;  %v954_v17 = vunpack.c.l.s8.bf16 %v709_v15  ;;  %v1141_v22 = vunpack.c.h.s8.bf16 %v798_v14  ;;  %v961_v24 = vunpack.c.h.s8.bf16 %v709_v15  ;;  %v738_v15 = vld [vmem:[#allocation8 + $0x338] sm:$0xff] }
 0x2a9   :  { %2220 = vmatpush1.bf16.msra.mxu0 %v1085_v18  ;;  %2314 = vmatpush1.bf16.msra.mxu1 %v905_v19  ;;  %v1142_v18 = vunpack.c.h.s8.bf16 %v799_v2  ;;  %v962_v19 = vunpack.c.h.s8.bf16 %v710_v3  ;;  %v996_v2 = vunpack.c.l.s8.bf16 %v730_v57  ;;  %v3730_v3 = vsub.s32 5, %v3574_v26 }
 0x2aa   :  { %2221 = vmatprep.subr.bf16.mxu0 %v1093_v20  ;;  %2315 = vmatprep.subr.bf16.mxu1 %v913_v21  ;;  %v717_v20 = vld [vmem:[#allocation8 + $0x290] sm:$0xff]  ;;  %v806_v21 = vld [vmem:[#allocation8 + $0x558] sm:$0xff] }
 0x2ad   :  { %2222 = vmatpush1.bf16.msra.mxu0 %v1092_v25  ;;  %2316 = vmatpush1.bf16.msra.mxu1 %v912_v28  ;;  %v969_v25 = vunpack.c.l.s8.bf16 %v717_v20  ;;  %v716_v28 = vld [vmem:[#allocation8 + $0x288] sm:$0xff] }
 0x2ae   :  { %2223 = vmatprep.subr.bf16.mxu0 %v1100_v29  ;;  %2317 = vmatprep.subr.bf16.mxu1 %v920_v30  ;;  %v1149_v29 = vunpack.c.l.s8.bf16 %v806_v21  ;;  %v805_v30 = vld [vmem:[#allocation8 + $0x550] sm:$0xff]  ;;  %v968_v33 = vunpack.c.l.s8.bf16 %v716_v28  ;;  %v975_v42 = vunpack.c.h.s8.bf16 %v716_v28 }
 0x2af   :  { %v1148_v34 = vunpack.c.l.s8.bf16 %v805_v30  ;;  %v1155_v43 = vunpack.c.h.s8.bf16 %v805_v30 }
 0x2b1   :  { %2224 = vmatpush1.bf16.msra.mxu0 %v1099_v37  ;;  %2318 = vmatpush1.bf16.msra.mxu1 %v919_v38  ;;  %v976_v37 = vunpack.c.h.s8.bf16 %v717_v20  ;;  %v1156_v38 = vunpack.c.h.s8.bf16 %v806_v21 }
 0x2b2   :  { %2225 = vmatprep.subr.bf16.mxu0 %v1107_v39  ;;  %2328 = vmatprep.subr.bf16.mxu1 %v927_v40  ;;  %v724_v39 = vld [vmem:[#allocation8 + $0x2c8] sm:$0xff]  ;;  %v669_v40 = vld [vmem:[#allocation8 + $0x110] sm:$0xff] }
 0x2b3   :  { %v990_v47 = vunpack.c.h.s8.bf16 %v724_v39 }
 0x2b4   :  { %2320 = vmatmul.mubr.bf16.vlgmr.msra.gmra.mrb[24].mxu1 %v3597_v56 }
 0x2b5   :  { %2226 = vmatpush1.bf16.msra.mxu0 %v1106_v44  ;;  %2329 = vmatpush1.bf16.msra.mxu1 %v926_v45  ;;  %v983_v44 = vunpack.c.l.s8.bf16 %v724_v39  ;;  %v723_v45 = vld [vmem:[#allocation8 + $0x2c0] sm:$0xff] }
 0x2b6   :  { %2227 = vmatprep.subr.bf16.mxu0 %v1114_v9  ;;  %2330 = vmatprep.subr.bf16.mxu1 %v934_v46  ;;  %v872_v9 = vunpack.c.l.s8.bf16 %v669_v40  ;;  %v982_v46 = vunpack.c.l.s8.bf16 %v723_v45 }
 0x2b7   :  { %2360 = vmatprep.mubr.bf16.mxu1 %v3607_v41 }
 0x2b9   :  { %2228 = vmatpush1.bf16.msra.mxu0 %v1113_v49  ;;  %2331 = vmatpush1.bf16.msra.mxu1 %v933_v52  ;;  %v731_v49 = vld [vmem:[#allocation8 + $0x300] sm:$0xff]  ;;  %v816_v52 = vunpack.c.l.s8.bf16 %v641_v48 }
 0x2ba   :  { %2229 = vmatprep.subr.bf16.mxu0 %v1121_v53  ;;  %2332 = vmatprep.subr.bf16.mxu1 %v941_v31  ;;  %v989_v53 = vunpack.c.h.s8.bf16 %v723_v45  ;;  %v879_v31 = vunpack.c.h.s8.bf16 %v669_v40  ;;  %v997_v36 = vunpack.c.l.s8.bf16 %v731_v49  ;;  %v655_v45 = vld [vmem:[#allocation8 + $0xa0] sm:$0xff] }
 0x2bd   :  { %2230 = vmatpush1.bf16.msra.mxu0 %v1120_v60  ;;  %2333 = vmatpush1.bf16.msra.mxu1 %v940_v61  ;;  %v3722_v60 = vsub.s32 6, %v3574_v26  ;;  %v676_v61 = vld [vmem:[#allocation8 + $0x148] sm:$0xff] }
 0x2be   :  { %2231 = vmatprep.subr.bf16.mxu0 %v1128_v62  ;;  %2334 = vmatprep.subr.bf16.mxu1 %v948_v35  ;;  %v3727_v62 = vsub.s32 4, %v3574_v26  ;;  %v823_v35 = vunpack.c.h.s8.bf16 %v641_v48  ;;  %v893_v21 = vunpack.c.h.s8.bf16 %v676_v61 }
 0x2c1   :  { %2232 = vmatpush1.bf16.msra.mxu0 %v1127_v7  ;;  %2335 = vmatpush1.bf16.msra.mxu1 %v947_v8  ;;  %v886_v7 = vunpack.c.l.s8.bf16 %v676_v61  ;;  %v1004_v8 = vunpack.c.h.s8.bf16 %v731_v49  ;;  %v844_v49 = vunpack.c.l.s8.bf16 %v655_v45 }
 0x2c2   :  { %2233 = vmatprep.subr.bf16.mxu0 %v1135_v12  ;;  %2336 = vmatprep.subr.bf16.mxu1 %v955_v13  ;;  %v648_v12 = vld [vmem:[#allocation8 + $0x68] sm:$0xff] }
 0x2c3   :  { %v3219_v13 = vld [vmem:[%s3876_s2] sm:$0x7f]  ;;  %v830_v26 = vunpack.c.l.s8.bf16 %v648_v12  ;;  %v837_v39 = vunpack.c.h.s8.bf16 %v648_v12 }
 0x2c4   :  { %v1900_v14 = vrot.slane %v3219_v13, %v3722_v60 }
 0x2c5   :  { %2234 = vmatpush1.bf16.msra.mxu0 %v1134_v16  ;;  %2337 = vmatpush1.bf16.msra.mxu1 %v954_v17  ;;  %v1892_v16 = vrot.slane %v3219_v13, %v3727_v62  ;;  %v1896_v17 = vrot.slane %v3219_v13, %v3730_v3 }
 0x2c6   :  { %2235 = vmatprep.subr.bf16.mxu0 %v1142_v18  ;;  %2338 = vmatprep.subr.bf16.mxu1 %v962_v19  ;;  %v1003_v18 = vunpack.c.h.s8.bf16 %v730_v57  ;;  %v3220_v19 = vld [vmem:[#allocation7] sm:$0x7f]  ;;  %v1914_v28 = vmul.f32 %v1900_v14, %v3713_v50  ;;  %v1018_v50 = vunpack.c.h.s8.bf16 %v738_v15 }
 0x2c7   :  { %v1936_v20 = vrot.slane %v3220_v19, %v3727_v62  ;;  %v1940_v30 = vrot.slane %v3220_v19, %v3730_v3 }
 0x2c9   :  { %2236 = vmatpush1.bf16.msra.mxu0 %v1141_v22  ;;  %2339 = vmatpush1.bf16.msra.mxu1 %v961_v24  ;;  %v1011_v22 = vunpack.c.l.s8.bf16 %v738_v15  ;;  %v737_v24 = vld [vmem:[#allocation8 + $0x330] sm:$0xff]  ;;  %v662_v15 = vld [vmem:[#allocation8 + $0xd8] sm:$0xff] }
 0x2ca   :  { %2340 = vmatprep.subr.bf16.mxu1 %v969_v25  ;;  %2246 = vmatprep.subr.bf16.mxu0 %v1149_v29  ;;  %v683_v25 = vld [vmem:[#allocation8 + $0x180] sm:$0xff]  ;;  %v1010_v40 = vunpack.c.l.s8.bf16 %v737_v24 }
 0x2cc   :  { %2238 = vmatmul.mubr.bf16.vlgmr.msra.gmra.mrb[8].mxu0 %v3600_v58 }
 0x2cd   :  { %2341 = vmatpush1.bf16.msra.mxu1 %v968_v33  ;;  %2247 = vmatpush1.bf16.msra.mxu0 %v1148_v34 }
 0x2ce   :  { %2342 = vmatprep.subr.bf16.mxu1 %v976_v37  ;;  %2248 = vmatprep.subr.bf16.mxu0 %v1156_v38 }
 0x2cf   :  { %2278 = vmatprep.mubr.bf16.mxu0 %v3440_v23 }
 0x2d1   :  { %2343 = vmatpush1.bf16.msra.mxu1 %v975_v42  ;;  %2249 = vmatpush1.bf16.msra.mxu0 %v1155_v43  ;;  %v900_v42 = vunpack.c.l.s8.bf16 %v683_v25 }
 0x2d2   :  { %2344 = vmatprep.subr.bf16.mxu1 %v983_v44  ;;  %3030 = vmatprep.subr.bf16.mxu0 %v872_v9 }
 0x2d5   :  { %2345 = vmatpush1.bf16.msra.mxu1 %v982_v46 }
 0x2d6   :  { %2346 = vmatprep.subr.bf16.mxu1 %v990_v47  ;;  %v745_v47 = vld [vmem:[#allocation8 + $0x370] sm:$0xff] }
 0x2d7   :  { %v1032_v14 = vunpack.c.h.s8.bf16 %v745_v47 }
 0x2d8   :  { %2958 = vmatmul.mubr.msk.bf16.vlgmr.msra.gmra.mrb[8].mxu0 %vm1215_vm0, %v3627_v27 }
 0x2d9   :  { %3031 = vmatpush3.bf16.msra.mxu0 %v816_v52  ;;  %2347 = vmatpush1.bf16.msra.mxu1 %v989_v53  ;;  %v1017_v52 = vunpack.c.h.s8.bf16 %v737_v24  ;;  %v907_v53 = vunpack.c.h.s8.bf16 %v683_v25 }
 0x2da   :  { %3032 = vmatprep.subr.bf16.mxu0 %v879_v31  ;;  %2348 = vmatprep.subr.bf16.mxu1 %v997_v36  ;;  %v1025_v31 = vunpack.c.l.s8.bf16 %v745_v47  ;;  %v744_v36 = vld [vmem:[#allocation8 + $0x368] sm:$0xff]  ;;  %v766_v47 = vld [vmem:[#allocation8 + $0x418] sm:$0xff] }
 0x2db   :  { %2483 = vmatprep.mubr.bf16.mxu0 %v3588_v51  ;;  %v1944_v51 = vrot.slane %v3220_v19, %v3722_v60 }
 0x2dd   :  { %3033 = vmatpush3.bf16.msra.mxu0 %v823_v35  ;;  %2349 = vmatpush1.bf16.msra.mxu1 %v996_v2  ;;  %v3745_v9 = vadd.f32 %v1944_v51, %v1914_v28  ;;  %v690_v35 = vld [vmem:[#allocation8 + $0x1b8] sm:$0xff]  ;;  %v697_v51 = vld [vmem:[#allocation8 + $0x1f0] sm:$0xff] }
 0x2de   :  { %3034 = vmatprep.subr.bf16.mxu0 %v886_v7  ;;  %2350 = vmatprep.subr.bf16.mxu1 %v1004_v8  ;;  %v851_v7 = vunpack.c.h.s8.bf16 %v655_v45  ;;  %v1024_v8 = vunpack.c.l.s8.bf16 %v744_v36  ;;  %v914_v13 = vunpack.c.l.s8.bf16 %v690_v35  ;;  %v704_v45 = vld [vmem:[#allocation8 + $0x228] sm:$0xff] }
 0x2df   :  { %v1704_v29 = vpop.f32.mrb[4].mxu0  ;;  %v2751_v57 = vrot.slane %v3745_v9, %v3688_v0 }
 0x2e0   :  { %v1912_v33 = vmul.f32 %v1892_v16, %v1704_v29  ;;  %v1706_v34 = vpop.f32.mrb[5].mxu0  ;;  %v752_v16 = vld [vmem:[#allocation8 + $0x3a8] sm:$0xff]  ;;  %v759_v29 = vld [vmem:[#allocation8 + $0x3e0] sm:$0xff] }
 0x2e1   :  { %3035 = vmatpush3.bf16.msra.mxu0 %v830_v26  ;;  %v1913_v37 = vmul.f32 %v1896_v17, %v1706_v34  ;;  %2351 = vmatpush1.bf16.msra.mxu1 %v1003_v18  ;;  %v1708_v38 = vpop.f32.mrb[6].mxu0  ;;  %v858_v26 = vunpack.c.l.s8.bf16 %v662_v15  ;;  %v1031_v17 = vunpack.c.h.s8.bf16 %v744_v36  ;;  %v921_v18 = vunpack.c.h.s8.bf16 %v690_v35 }
 0x2e2   :  { %v3743_v43 = vadd.f32 %v1936_v20, %v1912_v33  ;;  %v1709_v44 = vpop.f32.mrb[7].mxu0  ;;  %3036 = vmatprep.subr.bf16.mxu0 %v893_v21  ;;  %2352 = vmatprep.subr.bf16.mxu1 %v1011_v22  ;;  %v1039_v19 = vunpack.c.l.s8.bf16 %v752_v16  ;;  %v751_v20 = vld [vmem:[#allocation8 + $0x3a0] sm:$0xff]  ;;  %v725_v21 = vld [vmem:[#allocation8 + $0x2d0] sm:$0xff]  ;;  %v865_v22 = vunpack.c.h.s8.bf16 %v662_v15  ;;  %v1046_v28 = vunpack.c.h.s8.bf16 %v752_v16  ;;  %v758_v38 = vld [vmem:[#allocation8 + $0x3d8] sm:$0xff] }
 0x2e3   :  { %v3747_v46 = vadd.f32 %v1940_v30, %v1913_v37  ;;  %v1038_v24 = vunpack.c.l.s8.bf16 %v751_v20  ;;  %v984_v25 = vunpack.c.l.s8.bf16 %v725_v21  ;;  %v928_v30 = vunpack.c.l.s8.bf16 %v697_v51  ;;  %v772_v15 = vld [vmem:[#allocation8 + $0x448] sm:$0xff]  ;;  %v746_v16 = vld [vmem:[#allocation8 + $0x378] sm:$0xff] }
 0x2e4   :  { %v1045_v33 = vunpack.c.h.s8.bf16 %v751_v20  ;;  %v991_v34 = vunpack.c.h.s8.bf16 %v725_v21  ;;  %v1053_v37 = vunpack.c.l.s8.bf16 %v759_v29  ;;  %v949_v36 = vunpack.c.h.s8.bf16 %v704_v45  ;;  %v718_v20 = vld [vmem:[#allocation8 + $0x298] sm:$0xff]  ;;  %v780_v21 = vld [vmem:[#allocation8 + $0x488] sm:$0xff] }
 0x2e5   :  { %v2737_v48 = vcombine.low %v3743_v43, %v3747_v46  ;;  %3037 = vmatpush3.bf16.msra.mxu0 %v837_v39  ;;  %2353 = vmatpush1.bf16.msra.mxu1 %v1010_v40  ;;  %v732_v39 = vld [vmem:[#allocation8 + $0x308] sm:$0xff]  ;;  %v935_v40 = vunpack.c.h.s8.bf16 %v697_v51  ;;  %v1074_v35 = vunpack.c.h.s8.bf16 %v766_v47  ;;  %v779_v51 = vld [vmem:[#allocation8 + $0x480] sm:$0xff] }
 0x2e6   :  { %3038 = vmatprep.subr.bf16.mxu0 %v900_v42  ;;  %2354 = vmatprep.subr.bf16.mxu1 %v1018_v50  ;;  %v1052_v42 = vunpack.c.l.s8.bf16 %v758_v38  ;;  %v998_v44 = vunpack.c.l.s8.bf16 %v732_v39  ;;  %v1060_v50 = vunpack.c.h.s8.bf16 %v759_v29  ;;  %v781_v29 = vld [vmem:[#allocation8 + $0x490] sm:$0xff] }
 0x2e7   :  { %v2744_v61 = vrot.slane %v2737_v48, %v3688_v0  ;;  %v942_v48 = vunpack.c.l.s8.bf16 %v704_v45  ;;  %v786_v45 = vld [vmem:[#allocation8 + $0x4b8] sm:$0xff] }
 0x2e9   :  { %3039 = vmatpush3.bf16.msra.mxu0 %v844_v49  ;;  %2355 = vmatpush1.bf16.msra.mxu1 %v1017_v52  ;;  %v2752_v12 = vcombine.low %v2744_v61, %v2751_v57  ;;  %v1059_v49 = vunpack.c.h.s8.bf16 %v758_v38  ;;  %v1005_v52 = vunpack.c.h.s8.bf16 %v732_v39  ;;  %v753_v38 = vld [vmem:[#allocation8 + $0x3b0] sm:$0xff]  ;;  %v787_v39 = vld [vmem:[#allocation8 + $0x4c0] sm:$0xff] }
 0x2ea   :  { %3040 = vmatprep.subr.bf16.mxu0 %v907_v53  ;;  %2356 = vmatprep.subr.bf16.mxu1 %v1025_v31  ;;  %v765_v53 = vld [vmem:[#allocation8 + $0x410] sm:$0xff]  ;;  %v739_v31 = vld [vmem:[#allocation8 + $0x340] sm:$0xff] }
 0x2eb   :  { %2761 = vst.msk [vmem:[#allocation14 + $0x8] sm:$0x3f] %vm3754_vm6, %v2752_v12  ;;  %v1066_v57 = vunpack.c.l.s8.bf16 %v765_v53  ;;  %v1012_v61 = vunpack.c.l.s8.bf16 %v739_v31  ;;  %v1073_v12 = vunpack.c.h.s8.bf16 %v765_v53  ;;  %v760_v53 = vld [vmem:[#allocation8 + $0x3e8] sm:$0xff] }
 0x2ed   :  { %3041 = vmatpush3.bf16.msra.mxu0 %v851_v7  ;;  %2357 = vmatpush1.bf16.msra.mxu1 %v1024_v8  ;;  %v711_v7 = vld [vmem:[#allocation8 + $0x260] sm:$0xff] }
 0x2ee   :  { %3042 = vmatprep.subr.bf16.mxu0 %v914_v13  ;;  %2358 = vmatprep.subr.bf16.mxu1 %v1032_v14  ;;  %v956_v8 = vunpack.c.l.s8.bf16 %v711_v7  ;;  %v1019_v13 = vunpack.c.h.s8.bf16 %v739_v31  ;;  %v794_v31 = vld [vmem:[#allocation8 + $0x4f8] sm:$0xff] }
 0x2f1   :  { %3043 = vmatpush3.bf16.msra.mxu0 %v858_v26  ;;  %2359 = vmatpush1.bf16.msra.mxu1 %v1031_v17  ;;  %v963_v26 = vunpack.c.h.s8.bf16 %v711_v7  ;;  %v1080_v17 = vunpack.c.l.s8.bf16 %v772_v15  ;;  %v795_v7 = vld [vmem:[#allocation8 + $0x500] sm:$0xff] }
 0x2f2   :  { %3044 = vmatprep.subr.bf16.mxu0 %v921_v18  ;;  %2369 = vmatprep.subr.bf16.mxu1 %v1039_v19  ;;  %v1026_v18 = vunpack.c.l.s8.bf16 %v746_v16 }
 0x2f4   :  { %2361 = vmatmul.mubr.bf16.vlgmr.msra.gmra.mrb[24].mxu1 %v3615_v32 }
 0x2f5   :  { %3045 = vmatpush3.bf16.msra.mxu0 %v865_v22  ;;  %2370 = vmatpush1.bf16.msra.mxu1 %v1038_v24  ;;  %v970_v22 = vunpack.c.l.s8.bf16 %v718_v20  ;;  %v1087_v24 = vunpack.c.h.s8.bf16 %v772_v15 }
 0x2f6   :  { %3052 = vmatprep.subr.bf16.mxu0 %v984_v25  ;;  %2371 = vmatprep.subr.bf16.mxu1 %v1046_v28  ;;  %v1033_v25 = vunpack.c.h.s8.bf16 %v746_v16  ;;  %v1095_v28 = vunpack.c.l.s8.bf16 %v780_v21 }
 0x2f7   :  { %2401 = vmatprep.mubr.bf16.mxu1 %v3603_v59 }
 0x2f8   :  { %2484 = vmatmul.mubr.bf16.vlgmr.msra.gmra.mrb[12].mxu0 %v3597_v56  ;;  %v1067_v56 = vunpack.c.l.s8.bf16 %v766_v47  ;;  %v788_v47 = vld [vmem:[#allocation8 + $0x4c8] sm:$0xff] }
 0x2f9   :  { %3053 = vmatpush3.bf16.msra.mxu0 %v928_v30  ;;  %2372 = vmatpush1.bf16.msra.mxu1 %v1045_v33  ;;  %v977_v30 = vunpack.c.h.s8.bf16 %v718_v20  ;;  %v1094_v33 = vunpack.c.l.s8.bf16 %v779_v51 }
 0x2fa   :  { %3054 = vmatprep.subr.bf16.mxu0 %v991_v34  ;;  %2373 = vmatprep.subr.bf16.mxu1 %v1053_v37  ;;  %v1096_v34 = vunpack.c.l.s8.bf16 %v781_v29  ;;  %v1102_v37 = vunpack.c.h.s8.bf16 %v780_v21 }
 0x2fb   :  { %2523 = vmatprep.mubr.bf16.mxu0 %v3607_v41  ;;  %v773_v41 = vld [vmem:[#allocation8 + $0x450] sm:$0xff] }
 0x2fc   :  { %v1081_v14 = vunpack.c.l.s8.bf16 %v773_v41  ;;  %v1088_v19 = vunpack.c.h.s8.bf16 %v773_v41  ;;  %v1061_v41 = vunpack.c.h.s8.bf16 %v760_v53 }
 0x2fd   :  { %3055 = vmatpush3.bf16.msra.mxu0 %v935_v40  ;;  %2374 = vmatpush1.bf16.msra.mxu1 %v1052_v42  ;;  %v1040_v40 = vunpack.c.l.s8.bf16 %v753_v38  ;;  %v1101_v42 = vunpack.c.h.s8.bf16 %v779_v51 }
 0x2fe   :  { %3056 = vmatprep.subr.bf16.mxu0 %v998_v44  ;;  %2375 = vmatprep.subr.bf16.mxu1 %v1060_v50  ;;  %v1103_v44 = vunpack.c.h.s8.bf16 %v781_v29  ;;  %v1109_v50 = vunpack.c.l.s8.bf16 %v787_v39 }
 0x301   :  { %3057 = vmatpush3.bf16.msra.mxu0 %v942_v48  ;;  %2376 = vmatpush1.bf16.msra.mxu1 %v1059_v49  ;;  %v1047_v48 = vunpack.c.h.s8.bf16 %v753_v38  ;;  %v1108_v49 = vunpack.c.l.s8.bf16 %v786_v45 }
 0x302   :  { %3058 = vmatprep.subr.bf16.mxu0 %v1005_v52  ;;  %2377 = vmatprep.subr.bf16.mxu1 %v1067_v56  ;;  %v1110_v52 = vunpack.c.l.s8.bf16 %v788_v47  ;;  %v1116_v56 = vunpack.c.h.s8.bf16 %v787_v39  ;;  %v809_v39 = vld [vmem:[#allocation8 + $0x570] sm:$0xff] }
 0x305   :  { %3059 = vmatpush3.bf16.msra.mxu0 %v949_v36  ;;  %2378 = vmatpush1.bf16.msra.mxu1 %v1066_v57  ;;  %v1054_v36 = vunpack.c.l.s8.bf16 %v760_v53  ;;  %v1115_v57 = vunpack.c.h.s8.bf16 %v786_v45  ;;  %v3777_v45 = vld [vmem:[#allocation10] sm:$0x7f] }
 0x306   :  { %3060 = vmatprep.subr.bf16.mxu0 %v1012_v61  ;;  %2379 = vmatprep.subr.bf16.mxu1 %v1074_v35  ;;  %v1117_v61 = vunpack.c.h.s8.bf16 %v788_v47  ;;  %v793_v35 = vld [vmem:[#allocation8 + $0x4f0] sm:$0xff]  ;;  %v2620_v47 = vrot.slane %v3777_v45, %v3667_v10 }
 0x307   :  { %v1129_v16 = vunpack.c.h.s8.bf16 %v793_v35 }
 0x309   :  { %3061 = vmatpush3.bf16.msra.mxu0 %v956_v8  ;;  %2380 = vmatpush1.bf16.msra.mxu1 %v1073_v12  ;;  %v1122_v8 = vunpack.c.l.s8.bf16 %v793_v35  ;;  %v1124_v12 = vunpack.c.l.s8.bf16 %v795_v7  ;;  %v2806_v35 = vld [vmem:[%s3881_s7] sm:$0xff] }
 0x30a   :  { %3062 = vmatprep.subr.bf16.mxu0 %v1019_v13  ;;  %2381 = vmatprep.subr.bf16.mxu1 %v1081_v14  ;;  %v1130_v13 = vunpack.c.h.s8.bf16 %v794_v31  ;;  %v767_v14 = vld [vmem:[#allocation8 + $0x420] sm:$0xff] }
 0x30b   :  { %v1068_v15 = vunpack.c.l.s8.bf16 %v767_v14  ;;  %v1075_v20 = vunpack.c.h.s8.bf16 %v767_v14 }
 0x30d   :  { %3063 = vmatpush3.bf16.msra.mxu0 %v963_v26  ;;  %2382 = vmatpush1.bf16.msra.mxu1 %v1080_v17  ;;  %v1131_v26 = vunpack.c.h.s8.bf16 %v795_v7 }
 0x30e   :  { %3064 = vmatprep.subr.bf16.mxu0 %v1026_v18  ;;  %2383 = vmatprep.subr.bf16.mxu1 %v1088_v19  ;;  %v800_v18 = vld [vmem:[#allocation8 + $0x528] sm:$0xff]  ;;  %v802_v19 = vld [vmem:[#allocation8 + $0x538] sm:$0xff] }
 0x30f   :  { %v1136_v21 = vunpack.c.l.s8.bf16 %v800_v18  ;;  %v1143_v29 = vunpack.c.h.s8.bf16 %v800_v18 }
 0x311   :  { %3065 = vmatpush3.bf16.msra.mxu0 %v970_v22  ;;  %2384 = vmatpush1.bf16.msra.mxu1 %v1087_v24  ;;  %v1138_v22 = vunpack.c.l.s8.bf16 %v802_v19 }
 0x312   :  { %3066 = vmatprep.subr.bf16.mxu0 %v1033_v25  ;;  %2385 = vmatprep.subr.bf16.mxu1 %v1095_v28  ;;  %v774_v25 = vld [vmem:[#allocation8 + $0x458] sm:$0xff]  ;;  %v808_v28 = vld [vmem:[#allocation8 + $0x568] sm:$0xff] }
 0x313   :  { %v1082_v51 = vunpack.c.l.s8.bf16 %v774_v25 }
 0x315   :  { %3067 = vmatpush3.bf16.msra.mxu0 %v977_v30  ;;  %2386 = vmatpush1.bf16.msra.mxu1 %v1094_v33  ;;  %v1145_v30 = vunpack.c.h.s8.bf16 %v802_v19  ;;  %v1151_v33 = vunpack.c.l.s8.bf16 %v808_v28 }
 0x316   :  { %3074 = vmatprep.subr.bf16.mxu0 %v1096_v34  ;;  %2387 = vmatprep.subr.bf16.mxu1 %v1102_v37  ;;  %v807_v34 = vld [vmem:[#allocation8 + $0x560] sm:$0xff]  ;;  %v1089_v37 = vunpack.c.h.s8.bf16 %v774_v25 }
 0x317   :  { %v1150_v38 = vunpack.c.l.s8.bf16 %v807_v34 }
 0x318   :  { %2524 = vmatmul.mubr.bf16.vlgmr.msra.gmra.mrb[16].mxu0 %v3615_v32  ;;  %v1123_v32 = vunpack.c.l.s8.bf16 %v794_v31 }
 0x319   :  { %3075 = vmatpush3.bf16.msra.mxu0 %v1040_v40  ;;  %2388 = vmatpush1.bf16.msra.mxu1 %v1101_v42  ;;  %v1158_v40 = vunpack.c.h.s8.bf16 %v808_v28  ;;  %v1152_v42 = vunpack.c.l.s8.bf16 %v809_v39 }
 0x31a   :  { %3076 = vmatprep.subr.bf16.mxu0 %v1103_v44  ;;  %2389 = vmatprep.subr.bf16.mxu1 %v1109_v50  ;;  %v1157_v44 = vunpack.c.h.s8.bf16 %v807_v34  ;;  %v1159_v50 = vunpack.c.h.s8.bf16 %v809_v39 }
 0x31b   :  { %2563 = vmatprep.mubr.bf16.mxu0 %v3603_v59  ;;  %v801_v59 = vld [vmem:[#allocation8 + $0x530] sm:$0xff] }
 0x31c   :  { %v1137_v17 = vunpack.c.l.s8.bf16 %v801_v59  ;;  %v1144_v24 = vunpack.c.h.s8.bf16 %v801_v59 }
 0x31d   :  { %3077 = vmatpush3.bf16.msra.mxu0 %v1047_v48  ;;  %2390 = vmatpush1.bf16.msra.mxu1 %v1108_v49 }
 0x31e   :  { %3078 = vmatprep.subr.bf16.mxu0 %v1110_v52  ;;  %2391 = vmatprep.subr.bf16.mxu1 %v1116_v56 }
 0x321   :  { %3079 = vmatpush3.bf16.msra.mxu0 %v1054_v36  ;;  %2392 = vmatpush1.bf16.msra.mxu1 %v1115_v57 }
 0x322   :  { %3080 = vmatprep.subr.bf16.mxu0 %v1117_v61  ;;  %2393 = vmatprep.subr.bf16.mxu1 %v1123_v32 }
 0x325   :  { %3081 = vmatpush3.bf16.msra.mxu0 %v1061_v41  ;;  %2394 = vmatpush1.bf16.msra.mxu1 %v1122_v8 }
 0x326   :  { %3082 = vmatprep.subr.bf16.mxu0 %v1124_v12  ;;  %2395 = vmatprep.subr.bf16.mxu1 %v1130_v13 }
 0x329   :  { %3083 = vmatpush3.bf16.msra.mxu0 %v1068_v15  ;;  %2396 = vmatpush1.bf16.msra.mxu1 %v1129_v16  ;;  %v2624_v16 = vrot.slane %v3777_v45, %v3661_v6 }
 0x32a   :  { %3084 = vmatprep.subr.bf16.mxu0 %v1131_v26  ;;  %2397 = vmatprep.subr.bf16.mxu1 %v1137_v17  ;;  %v2628_v26 = vrot.slane %v3777_v45, %v3670_v11 }
 0x32d   :  { %3085 = vmatpush3.bf16.msra.mxu0 %v1075_v20  ;;  %2398 = vmatpush1.bf16.msra.mxu1 %v1136_v21 }
 0x32e   :  { %3086 = vmatprep.subr.bf16.mxu0 %v1138_v22  ;;  %2399 = vmatprep.subr.bf16.mxu1 %v1144_v24 }
 0x331   :  { %3087 = vmatpush3.bf16.msra.mxu0 %v1082_v51  ;;  %2400 = vmatpush1.bf16.msra.mxu1 %v1143_v29 }
 0x332   :  { %3088 = vmatprep.subr.bf16.mxu0 %v1145_v30  ;;  %2410 = vmatprep.subr.bf16.mxu1 %v1151_v33 }
 0x334   :  { %2402 = vmatmul.mubr.bf16.vlgmr.msra.gmra.mrb[24].mxu1 %v3600_v58 }
 0x335   :  { %3089 = vmatpush3.bf16.msra.mxu0 %v1089_v37  ;;  %2411 = vmatpush1.bf16.msra.mxu1 %v1150_v38 }
 0x336   :  { %3107 = vmatprep.subr.bf16.mxu0 %v3441_v4  ;;  %2412 = vmatprep.subr.bf16.mxu1 %v1158_v40 }
 0x337   :  { %2442 = vmatprep.mubr.bf16.mxu1 %v3440_v23  ;;  %v3779_v23 = vld [vmem:[#allocation11] sm:$0x7f] }
 0x338   :  { %2564 = vmatmul.mubr.bf16.vlgmr.msra.gmra.mrb[20].mxu0 %v3600_v58  ;;  %v2616_v58 = vrot.slane %v3777_v45, %v3658_v5  ;;  %v2664_v49 = vrot.slane %v3779_v23, %v3667_v10 }
 0x339   :  { %3108 = vmatpush3.bf16.msra.mxu0 %v1152_v42  ;;  %2413 = vmatpush1.bf16.msra.mxu1 %v1157_v44 }
 0x33a   :  { %3109 = vmatprep.subr.bf16.mxu0 %v3441_v4  ;;  %3111 = vmatprep.mubr.msk.bf16.mxu0 %vm3442_vm1, %v3441_v4  ;;  %v2660_v4 = vrot.slane %v3779_v23, %v3658_v5  ;;  %v2817_v5 = vrot.slane %v2806_v35, %v3688_v0 }
 0x33c   :  { %v2825_v7 = vcombine.high %v2817_v5, %v2817_v5 }
 0x33d   :  { %3110 = vmatpush3.bf16.msra.mxu0 %v1159_v50 }
 0x340   :  { %3112 = vmatmul.mubr.msk.bf16.vlgmr.msra.gmra.mrb[24].mxu0 %vm1215_vm0, %v3627_v27  ;;  %2959 = vmatmul.mubr.msk.bf16.vlgmr.msra.gmra.mrb[24].mxu1 %vm1215_vm0, %v3627_v27 }
 0x347   :  { %v2116_v48 = vpop.f32.mrb[20].mxu1 }
 0x348   :  { %v2648_v52 = vmul.f32 %v2616_v58, %v2116_v48  ;;  %v2118_v56 = vpop.f32.mrb[21].mxu1 }
 0x349   :  { %v2649_v27 = vmul.f32 %v2620_v47, %v2118_v56  ;;  %v2120_v53 = vpop.f32.mrb[22].mxu1 }
 0x34a   :  { %v2692_v31 = vadd.f32 %v2660_v4, %v2648_v52  ;;  %v2121_v36 = vpop.f32.mrb[23].mxu1 }
 0x34b   :  { %v2693_v57 = vadd.f32 %v2664_v49, %v2649_v27 }
 0x34c   :  { %v2699_v61 = vmul.f32 1.442695, %v2692_v31 }
 0x34d   :  { %v2701_v32 = vmul.f32 1.442695, %v2693_v57 }
 0x34e   :  { %3205 = vpow2.f32 %v2699_v61 }
 0x34f   :  { %3207 = vpow2.f32 %v2701_v32 }
 0x358   :  { %v3206_v41 = vpop.eup %3205 }
 0x359   :  { %v3208_v10 = vpop.eup %3207  ;;  %v2850_v8 = vmul.f32 %v3206_v41, %v2817_v5 }
 0x35a   :  { %v2851_v12 = vmul.f32 %v3208_v10, %v2825_v7  ;;  %v2769_v13 = vcombine.low %v3206_v41, %v3208_v10 }
 0x35b   :  { %v2857_v14 = vadd.f32 %v2850_v8, %v3681_v54 }
 0x35c   :  { %v2858_v59 = vadd.f32 %v2851_v12, %v3685_v63 }
 0x35e   :  { %v2871_v15 = vcombine.low %v2857_v14, %v2858_v59 }
 0x35f   :  { %3364 = shalt.err (!%p3361_p10)
}
 0x360   :  { %s3365_s24 = scalar_lea.hbm %s3883_s9, 224 }
 0x361   :  { %p3366_p11 = scmp.ne.s32.totalorder %s3883_s9, %s3365_s24  ;;  %p3369_p12 = scmp.lt.u32.totalorder %s3365_s24, %s3883_s9 }
 0x363   :  { %p3371_p13 = pnand %p3369_p12, %p3366_p11 }
 0x365   :  { %3374 = shalt.err (!%p3371_p13)
}
 0x366   :  { %2927 = dma.vmem_to_hbm [thread:$0]  %s2925_s11, 224, %s3883_s9, [#allocation15]   ;;  %v2668_v54 = vrot.slane %v3779_v23, %v3661_v6  ;;  %v2672_v17 = vrot.slane %v3779_v23, %v3670_v11  ;;  %v2810_v29 = vcombine.high %v2806_v35, %v2806_v35  ;;  %v2777_v42 = vrot.slane %v2769_v13, %v3688_v0 }
 0x367   :  { %v2879_v47 = vrot.slane %v2871_v15, %v3688_v0  ;;  %v2632_v8 = vrot.slane %v3777_v45, %v3727_v62  ;;  %v2636_v12 = vrot.slane %v3777_v45, %v3730_v3  ;;  %v2640_v13 = vrot.slane %v3777_v45, %v3722_v60  ;;  %s3445_s14 = smov [#allocation16]  }
 0x368   :  { %v2824_v30 = vrot.slane %v2810_v29, %v3688_v0  ;;  %v2676_v14 = vrot.slane %v3779_v23, %v3727_v62  ;;  %s2934_s19 = sshll.u32 %s3445_s14, 4  ;;  %s2935_s19 = int_to_ptr.vmem [resolvable:$true] %s2934_s19 }
 0x369   :  { %s3375_s0 = scalar_lea.vmem %s2935_s19, 224  ;;  %p3380_p1 = scmp.lt.s32.totalorder %s2935_s19, %s2935_s19 }
 0x36a   :  { %v2826_v33 = vcombine.high %v2824_v30, %v2824_v30  ;;  %p3376_p0 = scmp.ne.s32.totalorder %s2935_s19, %s3375_s0  ;;  %p3381_p2 = scmp.lt.s32.totalorder %s3375_s0, %s3375_s0 }
 0x36c   :  { %p3382_p3 = por %p3381_p2, %p3380_p1 }
 0x36e   :  { %p3383_p4 = pnand %p3382_p3, %p3376_p0 }
 0x3ab   :  { %v2280_v63 = vpop.f32.mrb[8].mxu0 }
 0x3ac   :  { %v2650_v18 = vmul.f32 %v2624_v16, %v2280_v63  ;;  %v2282_v19 = vpop.f32.mrb[9].mxu0  ;;  %v2680_v16 = vrot.slane %v3779_v23, %v3730_v3 }
 0x3ad   :  { %v2651_v20 = vmul.f32 %v2628_v26, %v2282_v19  ;;  %v2284_v21 = vpop.f32.mrb[10].mxu0 }
 0x3ae   :  { %v2694_v22 = vadd.f32 %v2668_v54, %v2650_v18  ;;  %v2285_v24 = vpop.f32.mrb[11].mxu0  ;;  %v2684_v54 = vrot.slane %v3779_v23, %v3722_v60  ;;  %v2807_v60 = vld [vmem:[%s3881_s7 + $0x8] sm:$0x3f]  ;;  %s3446_s7 = smov [#allocation13]  }
 0x3af   :  { %v2695_v25 = vadd.f32 %v2672_v17, %v2651_v20  ;;  %v2834_v3 = vrot.slane %v2807_v60, %v3688_v0  ;;  %v2827_v23 = vcombine.high %v2807_v60, %v2807_v60  ;;  %s2914_s20 = sshll.u32 %s3446_s7, 4  ;;  %s2915_s20 = int_to_ptr.vmem [resolvable:$true] %s2914_s20 }
 0x3b0   :  { %v2703_v28 = vmul.f32 1.442695, %v2694_v22 }
 0x3b1   :  { %v2705_v51 = vmul.f32 1.442695, %v2695_v25 }
 0x3b2   :  { %3209 = vpow2.f32 %v2703_v28 }
 0x3b3   :  { %3211 = vpow2.f32 %v2705_v51 }
 0x3bc   :  { %v3210_v6 = vpop.eup %3209 }
 0x3bd   :  { %v3212_v34 = vpop.eup %3211  ;;  %v2852_v37 = vmul.f32 %v3210_v6, %v2824_v30 }
 0x3be   :  { %v2853_v38 = vmul.f32 %v3212_v34, %v2826_v33  ;;  %v2770_v11 = vcombine.low %v3210_v6, %v3212_v34  ;;  %v2842_v33 = vcombine.high %v2834_v3, %v2834_v3  ;;  %v2841_v6 = vrot.slane %v2827_v23, %v3688_v0 }
 0x3bf   :  { %v2859_v39 = vadd.f32 %v2852_v37, %v3683_v55 }
 0x3c0   :  { %v2860_v40 = vadd.f32 %v2853_v38, %v3690_v1  ;;  %v2784_v44 = vrot.slane %v2770_v11, %v3688_v0 }
 0x3c2   :  { %v2872_v50 = vcombine.low %v2859_v39, %v2860_v40  ;;  %v2785_v58 = vcombine.low %v2777_v42, %v2784_v44 }
 0x3c4   :  { %v2886_v4 = vrot.slane %v2872_v50, %v3688_v0  ;;  %2804 = vst [vmem:[#allocation16] sm:$0xff] %v2785_v58 }
 0x3c6   :  { %v2887_v48 = vcombine.low %v2879_v47, %v2886_v4 }
 0x3c8   :  { %2906 = vst [vmem:[#allocation13] sm:$0xff] %v2887_v48 }
 0x3cb   :  { %v3046_v49 = vpop.f32.mrb[12].mxu0 }
 0x3cc   :  { %v3047_v52 = vpop.f32.mrb[13].mxu0 }
 0x3cd   :  { %v3048_v56 = vadd.f32 %v3047_v52, %v3046_v49  ;;  %v3049_v27 = vpop.f32.mrb[14].mxu0 }
 0x3ce   :  { %v3050_v55 = vpop.f32.mrb[15].mxu0 }
 0x3eb   :  { %v3068_v53 = vpop.f32.mrb[16].mxu0 }
 0x3ec   :  { %v3069_v1 = vpop.f32.mrb[17].mxu0 }
 0x3ed   :  { %v3070_v31 = vadd.f32 %v3069_v1, %v3068_v53  ;;  %v3071_v36 = vpop.f32.mrb[18].mxu0 }
 0x3ee   :  { %v3072_v57 = vpop.f32.mrb[19].mxu0 }
 0x3ef   :  { %v2526_v61 = vadd.f32 %v3070_v31, %v3048_v56 }
 0x40b   :  { %v3090_v32 = vpop.f32.mrb[20].mxu0 }
 0x40c   :  { %v3091_v35 = vpop.f32.mrb[21].mxu0 }
 0x40d   :  { %v3092_v5 = vadd.f32 %v3091_v35, %v3090_v32  ;;  %v3093_v7 = vpop.f32.mrb[22].mxu0 }
 0x40e   :  { %v3094_v41 = vpop.f32.mrb[23].mxu0 }
 0x40f   :  { %v2566_v10 = vadd.f32 %v3092_v5, %v2526_v61 }
 0x413   :  { %v2605_v59 = vpop.f32.mrb[24].mxu0  ;;  %v2444_v15 = vpop.f32.mrb[24].mxu1 }
 0x414   :  { %v2606_v26 = vadd.f32 %v2605_v59, %v2566_v10  ;;  %v2652_v63 = vmul.f32 %v2632_v8, %v2444_v15  ;;  %v3113_v17 = vpop.f32.mrb[25].mxu0  ;;  %v2446_v18 = vpop.f32.mrb[25].mxu1 }
 0x415   :  { %v2653_v19 = vmul.f32 %v2636_v12, %v2446_v18  ;;  %v2608_v20 = vpop.f32.mrb[26].mxu0  ;;  %v2448_v21 = vpop.f32.mrb[26].mxu1 }
 0x416   :  { %v2654_v22 = vmul.f32 %v2640_v13, %v2606_v26  ;;  %v2696_v45 = vadd.f32 %v2676_v14, %v2652_v63  ;;  %v3114_v24 = vpop.f32.mrb[27].mxu0  ;;  %v2449_v25 = vpop.f32.mrb[27].mxu1 }
 0x417   :  { %v2697_v62 = vadd.f32 %v2680_v16, %v2653_v19 }
 0x418   :  { %v2698_v28 = vadd.f32 %v2684_v54, %v2654_v22  ;;  %v2707_v51 = vmul.f32 1.442695, %v2696_v45 }
 0x419   :  { %v2709_v29 = vmul.f32 1.442695, %v2697_v62 }
 0x41a   :  { %v2711_v30 = vmul.f32 1.442695, %v2698_v28  ;;  %3213 = vpow2.f32 %v2707_v51 }
 0x41b   :  { %3215 = vpow2.f32 %v2709_v29 }
 0x41c   :  { %3217 = vpow2.f32 %v2711_v30 }
 0x424   :  { %v3214_v34 = vpop.eup %3213 }
 0x425   :  { %v3216_v37 = vpop.eup %3215  ;;  %v2854_v38 = vmul.f32 %v3214_v34, %v2834_v3 }
 0x426   :  { %v3218_v11 = vpop.eup %3217  ;;  %v2855_v39 = vmul.f32 %v3216_v37, %v2842_v33  ;;  %v2786_v40 = vcombine.low %v3214_v34, %v3216_v37 }
 0x427   :  { %v2856_v42 = vmul.f32 %v3218_v11, %v2841_v6  ;;  %v2861_v44 = vadd.f32 %v2854_v38, %v3743_v43  ;;  %v2800_v47 = vrot.slane %v3218_v11, %v3688_v0 }
 0x428   :  { %v2862_v50 = vadd.f32 %v2855_v39, %v3747_v46  ;;  %v2793_v58 = vrot.slane %v2786_v40, %v3688_v0 }
 0x429   :  { %v2863_v4 = vadd.f32 %v2856_v42, %v3745_v9 }
 0x42a   :  { %v2888_v48 = vcombine.low %v2861_v44, %v2862_v50  ;;  %v2801_v49 = vcombine.low %v2793_v58, %v2800_v47 }
 0x42b   :  { %v2902_v56 = vrot.slane %v2863_v4, %v3688_v0 }
 0x42c   :  { %v2895_v52 = vrot.slane %v2888_v48, %v3688_v0  ;;  %2805 = vst.msk [vmem:[#allocation16 + $0x8] sm:$0x3f] %vm3754_vm6, %v2801_v49 }
 0x42d   :  { %3386 = shalt.err (!%p3383_p4)
}
 0x42e   :  { %s3387_s15 = scalar_lea.hbm %s3884_s10, 224 }
 0x42f   :  { %p3388_p5 = scmp.ne.s32.totalorder %s3884_s10, %s3387_s15  ;;  %p3391_p6 = scmp.lt.u32.totalorder %s3387_s15, %s3884_s10 }
 0x431   :  { %p3393_p7 = pnand %p3391_p6, %p3388_p5 }
 0x433   :  { %3396 = shalt.err (!%p3393_p7)
}
 0x434   :  { %2937 = dma.vmem_to_hbm [thread:$0]  %s2935_s19, 224, %s3884_s10, [#allocation15]   ;;  %v2903_v0 = vcombine.low %v2895_v52, %v2902_v56 }
 0x435   :  { %s3397_s27 = scalar_lea.vmem %s2915_s20, 224  ;;  %p3402_p9 = scmp.lt.s32.totalorder %s2915_s20, %s2915_s20 }
 0x436   :  { %2907 = vst.msk [vmem:[#allocation13 + $0x8] sm:$0x3f] %vm3754_vm6, %v2903_v0  ;;  %p3398_p8 = scmp.ne.s32.totalorder %s2915_s20, %s3397_s27  ;;  %p3403_p10 = scmp.lt.s32.totalorder %s3397_s27, %s3397_s27 }
 0x438   :  { %p3404_p11 = por %p3403_p10, %p3402_p9 }
 0x43a   :  { %p3405_p12 = pnand %p3404_p11, %p3398_p8 }
 0x43c   :  { %3408 = shalt.err (!%p3405_p12)
}
 0x43d   :  { %s3409_s12 = scalar_lea.hbm %s3882_s8, 224 }
 0x43e   :  { %p3410_p13 = scmp.ne.s32.totalorder %s3882_s8, %s3409_s12  ;;  %p3413_p0 = scmp.lt.u32.totalorder %s3409_s12, %s3882_s8 }
 0x440   :  { %p3415_p1 = pnand %p3413_p0, %p3410_p13 }
 0x442   :  { %3418 = shalt.err (!%p3415_p1)
}
 0x443   :  { %2917 = dma.vmem_to_hbm [thread:$0]  %s2915_s20, 224, %s3882_s8, [#allocation4]  }
 0x444   :  { %3427 = dma.done.wait [#allocation4], 224  }
 0x445   :  { %3428 = vsyncadd [#allocation4], 4294967072 }
 0x446   :  { %3429 = dma.done.wait [#allocation15], 448  }
 0x447   :  { %3430 = vsyncadd [#allocation15], 4294966848 }
 0x448   :  { %2947 = vsyncpa [#allocation3], 1 }
 0x449   :  { %2948 = vsyncpa [#allocation6], 1 }
 0x44a   :  { %2949 = vsyncpa [#allocation9], 1 }
 0x44b   :  { %2950 = vsyncpa [#allocation12], 1 }
 0x44c   :  { %2951 = vsyncpa [#allocation4], 1 }
 0x44d   :  { %2952 = vsyncpa [#allocation15], 1 }

</bundles_post_ra>
